<compile_context>
chip_gen: v6e
topology: v6e:2x2x1
jax: 0.10.0
libtpu: 0.0.40
codegen_flags: <defaults>
</compile_context>

<pallas_src>
import functools
import math

import jax
import jax.numpy as jnp
import numpy as np
from jax.experimental import pallas as pl
from jax.experimental.pallas import tpu as pltpu


def _gelu_exact(x):
    # torch.nn.GELU() default is the exact erf-based GELU.
    return 0.5 * x * (1.0 + jax.lax.erf(x * 0.7071067811865476))


def _wave_block_kernel(x_ref, xh_ref, wz_ref, w0_ref, w1_ref, b1_ref,
                       w2_ref, b2_ref, wt_ref, bf_ref, o_ref, pad_ref, *,
                       tile_h, wq, cin, c, has_proj, view_meta):
    """One (batch, row-tile) grid step.

    x_ref : (tile_h, wq, 4*cin) bf16  corner-packed input rows of this tile
    xh_ref: (2, wq, 4*cin)      bf16  quad-row above / below the tile (halo)
    o_ref : (tile_h, wq, 4*c)   f32   corner-packed output rows
    pad_ref: (tile_h+2, wp, c)  bf16  zero-bordered ConvTranspose staging
    """
    hp2 = tile_h + 2
    t = pl.program_id(1)
    n_t = pl.num_programs(1)
    f32, bf16 = jnp.float32, jnp.bfloat16

    def mm(x3, w):
        # (r0, r1, k) @ (k, n) -> (r0, r1, n); bf16 operands, f32 MXU acc.
        r0, r1, k = x3.shape
        y = jnp.dot(x3.reshape(r0 * r1, k).astype(bf16), w,
                    preferred_element_type=f32)
        return y.reshape(r0, r1, w.shape[1])

    def ff_chain(xblk):
        # fused (proj+)reduction+Haar -> 1x1 conv -> GELU -> (dropout=id) -> 1x1 conv
        z = mm(xblk, wz_ref[...])
        f1 = _gelu_exact(mm(z, w1_ref[...]) + b1_ref[...])
        return mm(f1, w2_ref[...]) + b2_ref[...]

    # ---- residual path: project corners and park them directly in o_ref ----
    if has_proj:
        for g in range(4):                               # g = 2*row_par + col_par
            xc = x_ref[:, :, g * cin:(g + 1) * cin]
            o_ref[:, :, g * c:(g + 1) * c] = mm(xc, w0_ref[...]).astype(o_ref.dtype)

    # ---- z / feedforward on the tile rows and on the 2 halo rows ----
    f2m = ff_chain(x_ref[...])                           # (tile_h, wq, c) f32
    f2h = ff_chain(xh_ref[...])                          # (2, wq, c) f32

    # ---- stage into the zero-bordered ConvTranspose scratch (bf16) ----
    zcol = jnp.zeros((hp2, 1, c), bf16)
    pad_ref[:, 0:1, :] = zcol
    pad_ref[:, wq + 1:wq + 2, :] = zcol
    pad_ref[1:tile_h + 1, 1:wq + 1, :] = f2m.astype(bf16)
    pad_ref[0:1, 1:wq + 1, :] = f2h[0:1].astype(bf16)
    pad_ref[tile_h + 1:hp2, 1:wq + 1, :] = f2h[1:2].astype(bf16)

    # at the true image border the ConvTranspose2d sees zeros, not f2(padded x)
    zrow = jnp.zeros((1, wq, c), bf16)

    @pl.when(t == 0)
    def _():
        pad_ref[0:1, 1:wq + 1, :] = zrow

    @pl.when(t == n_t - 1)
    def _():
        pad_ref[tile_h + 1:hp2, 1:wq + 1, :] = zrow

    # ---- ConvTranspose2d(c, c, k=4, s=2, p=1), BN folded into the weights ----
    # 9 unique shifted views; the 3 column-shifted views are materialized once
    # and reused across the 3 row shifts (row slicing of a value is cheap).
    col_views = {dw: pad_ref[:, 1 + dw:1 + dw + wq, :] for dw in (0, -1, 1)}
    bfb = jnp.broadcast_to(bf_ref[...], (tile_h, wq, c))     # ConvT bias + BN shift
    accs = [bfb, bfb, bfb, bfb]
    for dh, dw, off, dests in view_meta:
        shifted = col_views[dw][1 + dh:1 + dh + tile_h]
        y = mm(shifted, wt_ref[:, off:off + len(dests) * c])
        for i, sp in enumerate(dests):
            accs[sp] = accs[sp] + y[:, :, i * c:(i + 1) * c]

    # ---- epilogue: + residual (f32), per-corner write-back ----
    for sp in range(4):
        if has_proj:
            resid = o_ref[:, :, sp * c:(sp + 1) * c].astype(f32)
        else:
            resid = x_ref[:, :, sp * cin:(sp + 1) * cin].astype(f32)
        o_ref[:, :, sp * c:(sp + 1) * c] = (accs[sp] + resid).astype(o_ref.dtype)


def init_params(key, in_ch, out_ch, mult=2):
    """Deterministic synthetic parameters, PyTorch tensor layouts."""
    assert out_ch % 4 == 0
    c, c4, cm = out_ch, out_ch // 4, out_ch * mult
    ks = jax.random.split(key, 16)

    def u(k, shape, fan_in):
        bound = 1.0 / math.sqrt(fan_in)
        return jax.random.uniform(k, shape, jnp.float32, minval=-bound, maxval=bound)

    p = {}
    p['conv_w'] = u(ks[0], (c, in_ch, 1, 1), in_ch) if in_ch != c else None
    p['red_w'] = u(ks[1], (c4, c, 1, 1), c)
    p['red_b'] = u(ks[2], (c4,), c)
    p['ff1_w'] = u(ks[3], (cm, c, 1, 1), c)
    p['ff1_b'] = u(ks[4], (cm,), c)
    p['ff2_w'] = u(ks[5], (c, cm, 1, 1), cm)
    p['ff2_b'] = u(ks[6], (c,), cm)
    p['ct_w'] = u(ks[7], (c, c, 4, 4), c * 16)
    p['ct_b'] = u(ks[8], (c,), c * 16)
    p['bn_gamma'] = 1.0 + 0.1 * jax.random.normal(ks[9], (c,), jnp.float32)
    p['bn_beta'] = 0.1 * jax.random.normal(ks[10], (c,), jnp.float32)
    p['bn_mean'] = 0.1 * jax.random.normal(ks[11], (c,), jnp.float32)
    p['bn_var'] = 1.0 + 0.1 * jax.random.uniform(ks[12], (c,), jnp.float32)
    return p


def _fold_params(params):
    """Trace-time algebraic folds (proj+Haar into one K=4*cin matmul, BN/bias
    into the conv-transpose weights, Haar bias into the ff1 bias)."""
    c = params['red_w'].shape[1]
    c4 = c // 4
    cm = params['ff1_w'].shape[0]
    has_proj = params['conv_w'] is not None
    hp = jax.lax.Precision.HIGHEST

    # Haar (db1, level-1) + torch channel-interleave as per-corner (c4, c) maps.
    coef = ((0.5, 0.5, 0.5, 0.5),     # corner (0,0):  LL  LH  HL  HH
            (0.5, 0.5, -0.5, -0.5),   # corner (0,1)
            (0.5, -0.5, 0.5, -0.5),   # corner (1,0)
            (0.5, -0.5, -0.5, 0.5))   # corner (1,1)
    S = np.zeros((4, c4, c), np.float32)
    for g in range(4):
        cll, clh, chl, chh = coef[g]
        for j in range(c4):
            S[g, j, j] = cll
            S[g, j, c4 + 3 * j + 0] = clh
            S[g, j, c4 + 3 * j + 1] = chl
            S[g, j, c4 + 3 * j + 2] = chh
    S = jnp.asarray(S)
    Wr = jnp.transpose(params['red_w'][:, :, 0, 0])                 # (c, c4)
    Wh = jnp.einsum('ck,gkn->gcn', Wr, S, precision=hp)             # (4, c, c)
    b_haar = params['red_b'] @ jnp.sum(S, axis=0)                   # (c,)

    if has_proj:
        W0 = jnp.transpose(params['conv_w'][:, :, 0, 0])            # (cin, c)
        cin = W0.shape[0]
        Wz = jnp.einsum('ic,gcn->gin', W0, Wh, precision=hp).reshape(4 * cin, c)
    else:
        W0 = jnp.zeros((8, 128), jnp.float32)                       # dummy, never read
        Wz = Wh.reshape(4 * c, c)

    W1 = jnp.transpose(params['ff1_w'][:, :, 0, 0])                 # (c, cm)
    b1 = params['ff1_b'] + b_haar @ W1                              # Haar bias folded in
    W2 = jnp.transpose(params['ff2_w'][:, :, 0, 0])                 # (cm, c)
    b2 = params['ff2_b']

    # ConvTranspose2d weights with BatchNorm2d (inference) folded in.
    eps = 1e-5
    scale = params['bn_gamma'] / jnp.sqrt(params['bn_var'] + eps)
    shift = params['bn_beta'] - params['bn_mean'] * scale
    Wt = jnp.transpose(params['ct_w'], (2, 3, 0, 1)).reshape(16, c, c) * scale
    b_out = params['ct_b'] * scale + shift

    # group conv-transpose taps by shared shifted input view (9 views)
    par_taps = {0: ((0, 1), (1, 2)), -1: ((0, 3),), 1: ((1, 0),)}   # shift -> ((parity, k),...)
    view_meta, w_cols, off = [], [], 0
    for dh in (0, -1, 1):
        for dw in (0, -1, 1):
            dests = []
            for ph, kh in par_taps[dh]:
                for pw, kw in par_taps[dw]:
                    dests.append(2 * ph + pw)
                    w_cols.append(Wt[kh * 4 + kw])
            view_meta.append((dh, dw, off, tuple(dests)))
            off += len(dests) * c
    Wt_packed = jnp.concatenate(w_cols, axis=1)                     # (c, 16c)

    bf16 = jnp.bfloat16
    weights = (Wz.astype(bf16),
               W0.astype(bf16),
               W1.astype(bf16),
               b1.reshape(1, 1, cm).astype(jnp.float32),
               W2.astype(bf16),
               b2.reshape(1, 1, c).astype(jnp.float32),
               Wt_packed.astype(bf16),
               b_out.reshape(1, 1, c).astype(jnp.float32))
    return weights, tuple(view_meta), has_proj, c, cm


def _vmem_capacity_bytes():
    try:
        return int(pltpu.get_tpu_info().vmem_capacity_bytes)
    except Exception:
        return 64 * 1024 * 1024       # conservative fallback (v7x per-core VMEM)


def _pick_tile_h(hq, wq, cin, c, cm, vmem_cap):
    """Largest divisor of hq whose rough per-step working set fits the budget."""
    budget = int(vmem_cap * 0.6)
    per_row = wq * (2 * 4 * cin * 2          # bf16 input block, double-buffered
                    + 2 * 4 * c * 4          # f32 output block, double-buffered
                    + 4 * c * 2              # bf16 staging scratch + shifted views
                    + (cm + 10 * c) * 4)     # live f32 intermediates (z, f1, accs)
    fixed = 2 * 1024 * 1024                  # weights, halo blocks, misc
    for d in sorted((d for d in range(1, hq + 1) if hq % d == 0), reverse=True):
        if fixed + d * per_row <= budget:
            return d
    return 1


def wave_block_forward(x_nchw, params, *, level=1, tile_h=None, interpret=False):
    assert level == 1, "only level=1 implemented (see TODO at top)"
    B, cin, H, W = x_nchw.shape
    assert H % 2 == 0 and W % 2 == 0
    hq, wq = H // 2, W // 2

    weights, view_meta, has_proj, c, cm = _fold_params(params)
    if not has_proj:
        assert cin == c, "conv_w is None requires in_ch == out_ch (residual add)"

    vmem_cap = _vmem_capacity_bytes()
    if tile_h is None:
        tile_h = _pick_tile_h(hq, wq, cin, c, cm, vmem_cap)
    assert hq % tile_h == 0
    n_tiles = hq // tile_h

    # ---- corner-pack NCHW -> (B, H/2, W/2, 4*cin) in bf16 ----
    x_nhwc = jnp.transpose(x_nchw, (0, 2, 3, 1))
    xq = (x_nhwc.reshape(B, hq, 2, wq, 2, cin)
                .transpose(0, 1, 3, 2, 4, 5)
                .reshape(B, hq, wq, 4 * cin)).astype(jnp.bfloat16)
    # tiny halo array: for each tile, the quad-row above and below it
    xq_pad = jnp.pad(xq, ((0, 0), (1, 1), (0, 0), (0, 0)))
    top = xq_pad[:, 0:hq:tile_h]                   # row above tile t
    bot = xq_pad[:, tile_h + 1::tile_h]            # row below tile t
    xhalo = jnp.stack([top, bot], axis=2)          # (B, n_tiles, 2, wq, 4*cin)

    kernel = functools.partial(_wave_block_kernel, tile_h=tile_h, wq=wq, cin=cin,
                               c=c, has_proj=has_proj, view_meta=view_meta)

    def _weight_spec(arr):
        shp = arr.shape
        return pl.BlockSpec(shp, lambda b, t: (0,) * len(shp))

    wp = ((wq + 2 + 7) // 8) * 8                   # staging scratch sublane padding

    out_q = pl.pallas_call(
        kernel,
        out_shape=jax.ShapeDtypeStruct((B, hq, wq, 4 * c), jnp.float32),
        grid=(B, n_tiles),
        in_specs=[pl.BlockSpec((None, tile_h, wq, 4 * cin),
                               lambda b, t: (b, t, 0, 0)),
                  pl.BlockSpec((None, None, 2, wq, 4 * cin),
                               lambda b, t: (b, t, 0, 0, 0))]
                 + [_weight_spec(w) for w in weights],
        out_specs=pl.BlockSpec((None, tile_h, wq, 4 * c), lambda b, t: (b, t, 0, 0)),
        scratch_shapes=[pltpu.VMEM((tile_h + 2, wp, c), jnp.bfloat16)],
        compiler_params=pltpu.CompilerParams(
            dimension_semantics=("parallel", "parallel"),
            vmem_limit_bytes=int(min(vmem_cap, 128 * 1024 * 1024) * 0.85)),
        interpret=interpret,
    )(xq, xhalo, *weights)

    # ---- un-pack corners back to full resolution, return NCHW ----
    out = (out_q.reshape(B, hq, wq, 2, 2, c)
                .transpose(0, 1, 3, 2, 4, 5)
                .reshape(B, H, W, c))
    return jnp.transpose(out, (0, 3, 1, 2))


def wave_block_reference(x_nchw, params):
    """Plain-JAX f32 reference (mirrors the PyTorch forward, eval mode)."""
    B, c_in, H, W = x_nchw.shape
    c = params['red_w'].shape[1]
    c4 = c // 4
    hp = jax.lax.Precision.HIGHEST
    x = jnp.transpose(x_nchw, (0, 2, 3, 1)).astype(jnp.float32)
    if params['conv_w'] is not None:
        x = jnp.einsum('bhwi,oi->bhwo', x, params['conv_w'][:, :, 0, 0], precision=hp)
    r = jnp.einsum('bhwi,oi->bhwo', x, params['red_w'][:, :, 0, 0],
                   precision=hp) + params['red_b']
    a = r[:, 0::2, 0::2, :]
    b = r[:, 0::2, 1::2, :]
    cc = r[:, 1::2, 0::2, :]
    d = r[:, 1::2, 1::2, :]
    ll = 0.5 * (a + b + cc + d)
    lh = 0.5 * (a + b - cc - d)
    hl = 0.5 * (a - b + cc - d)
    hh = 0.5 * (a - b - cc + d)
    det = jnp.stack([lh, hl, hh], axis=-1).reshape(B, H // 2, W // 2, 3 * c4)
    z = jnp.concatenate([ll, det], axis=-1)
    f1 = jnp.einsum('bhwi,oi->bhwo', z, params['ff1_w'][:, :, 0, 0],
                    precision=hp) + params['ff1_b']
    f1 = 0.5 * f1 * (1.0 + jax.lax.erf(f1 * 0.7071067811865476))
    f2 = jnp.einsum('bhwi,oi->bhwo', f1, params['ff2_w'][:, :, 0, 0],
                    precision=hp) + params['ff2_b']
    # ConvTranspose2d(k=4, s=2, p=1) via scatter-add  (oh = 2*ih - 1 + kh)
    buf = jnp.zeros((B, H + 2, W + 2, c), jnp.float32)
    for kh in range(4):
        for kw in range(4):
            contrib = jnp.einsum('bhwi,io->bhwo', f2, params['ct_w'][:, :, kh, kw],
                                 precision=hp)
            buf = buf.at[:, kh:kh + H:2, kw:kw + W:2, :].add(contrib)
    y = buf[:, 1:1 + H, 1:1 + W, :] + params['ct_b']
    eps = 1e-5
    scale = params['bn_gamma'] / jnp.sqrt(params['bn_var'] + eps)
    y = y * scale + (params['bn_beta'] - params['bn_mean'] * scale)
    out = y + x
    return jnp.transpose(out, (0, 3, 1, 2))


if __name__ == "__main__":
    key = jax.random.PRNGKey(0)
    pkey, xkey = jax.random.split(key)

    B, in_ch, out_ch, H, W = 2, 8, 16, 16, 16      # in_ch != out_ch -> 1x1 proj conv
    params = init_params(pkey, in_ch, out_ch, mult=2)
    x = jax.random.normal(xkey, (B, in_ch, H, W), jnp.float32)

    out = jax.block_until_ready(wave_block_forward(x, params, level=1))
    assert out.shape == (B, out_ch, H, W), out.shape

    ref = jax.block_until_ready(wave_block_reference(x, params))
    # bf16 matmul operands + f32 accumulation: compare against the f32 reference
    # at a bf16-appropriate tolerance.
    np.testing.assert_allclose(np.asarray(out), np.asarray(ref), rtol=5e-2, atol=5e-2)

    print("KERNEL_OK")
</pallas_src>

<mosaic_0001>
module attributes {stable_mosaic.version = 11 : i64} {
  func.func @_wave_block_kernel(%arg0: i32, %arg1: i32, %arg2: memref<1x8x8x32xbf16, #tpu.memory_space<vmem>>, %arg3: memref<1x1x2x8x32xbf16, #tpu.memory_space<vmem>>, %arg4: memref<32x16xbf16, #tpu.memory_space<vmem>>, %arg5: memref<8x16xbf16, #tpu.memory_space<vmem>>, %arg6: memref<16x32xbf16, #tpu.memory_space<vmem>>, %arg7: memref<1x1x32xf32, #tpu.memory_space<vmem>>, %arg8: memref<32x16xbf16, #tpu.memory_space<vmem>>, %arg9: memref<1x1x16xf32, #tpu.memory_space<vmem>>, %arg10: memref<16x256xbf16, #tpu.memory_space<vmem>>, %arg11: memref<1x1x16xf32, #tpu.memory_space<vmem>>, %arg12: memref<1x8x8x64xf32, #tpu.memory_space<vmem>>, %arg13: memref<10x16x16xbf16, #tpu.memory_space<vmem>>) attributes {dimension_semantics = [#tpu.dimension_semantics<parallel>, #tpu.dimension_semantics<parallel>], iteration_bounds = array<i64: 2, 1>, scalar_prefetch = 0 : i64, scratch_operands = 1 : i64, tpu.core_type = #tpu.core_type<tc>, window_params = [{transform_indices = @transform_0, window_bounds = array<i64: 1, 8, 8, 32>}, {transform_indices = @transform_1, window_bounds = array<i64: 1, 1, 2, 8, 32>}, {pipeline_mode = #tpu.pipeline_mode<synchronous>, transform_indices = @transform_2, window_bounds = array<i64: 32, 16>}, {pipeline_mode = #tpu.pipeline_mode<synchronous>, transform_indices = @transform_3, window_bounds = array<i64: 8, 16>}, {pipeline_mode = #tpu.pipeline_mode<synchronous>, transform_indices = @transform_4, window_bounds = array<i64: 16, 32>}, {pipeline_mode = #tpu.pipeline_mode<synchronous>, transform_indices = @transform_5, window_bounds = array<i64: 1, 1, 32>}, {pipeline_mode = #tpu.pipeline_mode<synchronous>, transform_indices = @transform_6, window_bounds = array<i64: 32, 16>}, {pipeline_mode = #tpu.pipeline_mode<synchronous>, transform_indices = @transform_7, window_bounds = array<i64: 1, 1, 16>}, {pipeline_mode = #tpu.pipeline_mode<synchronous>, transform_indices = @transform_8, window_bounds = array<i64: 16, 256>}, {pipeline_mode = #tpu.pipeline_mode<synchronous>, transform_indices = @transform_9, window_bounds = array<i64: 1, 1, 16>}, {transform_indices = @transform_10, window_bounds = array<i64: 1, 8, 8, 64>}]} {
    %c0 = arith.constant 0 : index
    %c0_0 = arith.constant 0 : index
    %c0_1 = arith.constant 0 : index
    %c0_2 = arith.constant 0 : index
    %0 = vector.load %arg2[%c0, %c0_0, %c0_1, %c0_2] : memref<1x8x8x32xbf16, #tpu.memory_space<vmem>>, vector<1x8x8x8xbf16>
    %1 = vector.shape_cast %0 : vector<1x8x8x8xbf16> to vector<8x8x8xbf16>
    %c0_3 = arith.constant 0 : index
    %c0_4 = arith.constant 0 : index
    %2 = vector.load %arg5[%c0_3, %c0_4] : memref<8x16xbf16, #tpu.memory_space<vmem>>, vector<8x16xbf16>
    %3 = vector.shape_cast %1 : vector<8x8x8xbf16> to vector<64x8xbf16>
    %cst = arith.constant dense<0.000000e+00> : vector<64x16xf32>
    %4 = tpu.matmul %3, %2, %cst {dimension_numbers = #tpu.dot_dimension_numbers<[1], [0], [0], [1], [0, 0, 1, 1], [], []>} : vector<64x8xbf16>, vector<8x16xbf16>, vector<64x16xf32> -> vector<64x16xf32>
    %5 = vector.shape_cast %4 : vector<64x16xf32> to vector<8x8x16xf32>
    %c0_5 = arith.constant 0 : index
    %c0_6 = arith.constant 0 : index
    %c0_7 = arith.constant 0 : index
    %c0_8 = arith.constant 0 : index
    %6 = vector.load %arg12[%c0_5, %c0_6, %c0_7, %c0_8] : memref<1x8x8x64xf32, #tpu.memory_space<vmem>>, vector<1x8x8x16xf32>
    %7 = vector.shape_cast %6 : vector<1x8x8x16xf32> to vector<8x8x16xf32>
    %8 = vector.shape_cast %5 : vector<8x8x16xf32> to vector<1x8x8x16xf32>
    tpu.vector_store %arg12[%c0_5, %c0_6, %c0_7, %c0_8], %8 {strides = array<i32>} : memref<1x8x8x64xf32, #tpu.memory_space<vmem>>, vector<1x8x8x16xf32>,
    %c0_9 = arith.constant 0 : index
    %c0_10 = arith.constant 0 : index
    %c0_11 = arith.constant 0 : index
    %c8 = arith.constant 8 : index
    %9 = vector.load %arg2[%c0_9, %c0_10, %c0_11, %c8] : memref<1x8x8x32xbf16, #tpu.memory_space<vmem>>, vector<1x8x8x8xbf16>
    %10 = vector.shape_cast %9 : vector<1x8x8x8xbf16> to vector<8x8x8xbf16>
    %c0_12 = arith.constant 0 : index
    %c0_13 = arith.constant 0 : index
    %11 = vector.load %arg5[%c0_12, %c0_13] : memref<8x16xbf16, #tpu.memory_space<vmem>>, vector<8x16xbf16>
    %12 = vector.shape_cast %10 : vector<8x8x8xbf16> to vector<64x8xbf16>
    %cst_14 = arith.constant dense<0.000000e+00> : vector<64x16xf32>
    %13 = tpu.matmul %12, %11, %cst_14 {dimension_numbers = #tpu.dot_dimension_numbers<[1], [0], [0], [1], [0, 0, 1, 1], [], []>} : vector<64x8xbf16>, vector<8x16xbf16>, vector<64x16xf32> -> vector<64x16xf32>
    %14 = vector.shape_cast %13 : vector<64x16xf32> to vector<8x8x16xf32>
    %c0_15 = arith.constant 0 : index
    %c0_16 = arith.constant 0 : index
    %c0_17 = arith.constant 0 : index
    %c16 = arith.constant 16 : index
    %15 = vector.load %arg12[%c0_15, %c0_16, %c0_17, %c16] : memref<1x8x8x64xf32, #tpu.memory_space<vmem>>, vector<1x8x8x16xf32>
    %16 = vector.shape_cast %15 : vector<1x8x8x16xf32> to vector<8x8x16xf32>
    %17 = vector.shape_cast %14 : vector<8x8x16xf32> to vector<1x8x8x16xf32>
    tpu.vector_store %arg12[%c0_15, %c0_16, %c0_17, %c16], %17 {strides = array<i32>} : memref<1x8x8x64xf32, #tpu.memory_space<vmem>>, vector<1x8x8x16xf32>,
    %c0_18 = arith.constant 0 : index
    %c0_19 = arith.constant 0 : index
    %c0_20 = arith.constant 0 : index
    %c16_21 = arith.constant 16 : index
    %18 = vector.load %arg2[%c0_18, %c0_19, %c0_20, %c16_21] : memref<1x8x8x32xbf16, #tpu.memory_space<vmem>>, vector<1x8x8x8xbf16>
    %19 = vector.shape_cast %18 : vector<1x8x8x8xbf16> to vector<8x8x8xbf16>
    %c0_22 = arith.constant 0 : index
    %c0_23 = arith.constant 0 : index
    %20 = vector.load %arg5[%c0_22, %c0_23] : memref<8x16xbf16, #tpu.memory_space<vmem>>, vector<8x16xbf16>
    %21 = vector.shape_cast %19 : vector<8x8x8xbf16> to vector<64x8xbf16>
    %cst_24 = arith.constant dense<0.000000e+00> : vector<64x16xf32>
    %22 = tpu.matmul %21, %20, %cst_24 {dimension_numbers = #tpu.dot_dimension_numbers<[1], [0], [0], [1], [0, 0, 1, 1], [], []>} : vector<64x8xbf16>, vector<8x16xbf16>, vector<64x16xf32> -> vector<64x16xf32>
    %23 = vector.shape_cast %22 : vector<64x16xf32> to vector<8x8x16xf32>
    %c0_25 = arith.constant 0 : index
    %c0_26 = arith.constant 0 : index
    %c0_27 = arith.constant 0 : index
    %c32 = arith.constant 32 : index
    %24 = vector.load %arg12[%c0_25, %c0_26, %c0_27, %c32] : memref<1x8x8x64xf32, #tpu.memory_space<vmem>>, vector<1x8x8x16xf32>
    %25 = vector.shape_cast %24 : vector<1x8x8x16xf32> to vector<8x8x16xf32>
    %26 = vector.shape_cast %23 : vector<8x8x16xf32> to vector<1x8x8x16xf32>
    tpu.vector_store %arg12[%c0_25, %c0_26, %c0_27, %c32], %26 {strides = array<i32>} : memref<1x8x8x64xf32, #tpu.memory_space<vmem>>, vector<1x8x8x16xf32>,
    %c0_28 = arith.constant 0 : index
    %c0_29 = arith.constant 0 : index
    %c0_30 = arith.constant 0 : index
    %c24 = arith.constant 24 : index
    %27 = vector.load %arg2[%c0_28, %c0_29, %c0_30, %c24] : memref<1x8x8x32xbf16, #tpu.memory_space<vmem>>, vector<1x8x8x8xbf16>
    %28 = vector.shape_cast %27 : vector<1x8x8x8xbf16> to vector<8x8x8xbf16>
    %c0_31 = arith.constant 0 : index
    %c0_32 = arith.constant 0 : index
    %29 = vector.load %arg5[%c0_31, %c0_32] : memref<8x16xbf16, #tpu.memory_space<vmem>>, vector<8x16xbf16>
    %30 = vector.shape_cast %28 : vector<8x8x8xbf16> to vector<64x8xbf16>
    %cst_33 = arith.constant dense<0.000000e+00> : vector<64x16xf32>
    %31 = tpu.matmul %30, %29, %cst_33 {dimension_numbers = #tpu.dot_dimension_numbers<[1], [0], [0], [1], [0, 0, 1, 1], [], []>} : vector<64x8xbf16>, vector<8x16xbf16>, vector<64x16xf32> -> vector<64x16xf32>
    %32 = vector.shape_cast %31 : vector<64x16xf32> to vector<8x8x16xf32>
    %c0_34 = arith.constant 0 : index
    %c0_35 = arith.constant 0 : index
    %c0_36 = arith.constant 0 : index
    %c48 = arith.constant 48 : index
    %33 = vector.load %arg12[%c0_34, %c0_35, %c0_36, %c48] : memref<1x8x8x64xf32, #tpu.memory_space<vmem>>, vector<1x8x8x16xf32>
    %34 = vector.shape_cast %33 : vector<1x8x8x16xf32> to vector<8x8x16xf32>
    %35 = vector.shape_cast %32 : vector<8x8x16xf32> to vector<1x8x8x16xf32>
    tpu.vector_store %arg12[%c0_34, %c0_35, %c0_36, %c48], %35 {strides = array<i32>} : memref<1x8x8x64xf32, #tpu.memory_space<vmem>>, vector<1x8x8x16xf32>,
    %c0_37 = arith.constant 0 : index
    %c0_38 = arith.constant 0 : index
    %c0_39 = arith.constant 0 : index
    %c0_40 = arith.constant 0 : index
    %36 = vector.load %arg2[%c0_37, %c0_38, %c0_39, %c0_40] : memref<1x8x8x32xbf16, #tpu.memory_space<vmem>>, vector<1x8x8x32xbf16>
    %37 = vector.shape_cast %36 : vector<1x8x8x32xbf16> to vector<8x8x32xbf16>
    %c0_41 = arith.constant 0 : index
    %c0_42 = arith.constant 0 : index
    %38 = vector.load %arg4[%c0_41, %c0_42] : memref<32x16xbf16, #tpu.memory_space<vmem>>, vector<32x16xbf16>
    %39 = vector.shape_cast %37 : vector<8x8x32xbf16> to vector<64x32xbf16>
    %cst_43 = arith.constant dense<0.000000e+00> : vector<64x16xf32>
    %40 = tpu.matmul %39, %38, %cst_43 {dimension_numbers = #tpu.dot_dimension_numbers<[1], [0], [0], [1], [0, 0, 1, 1], [], []>} : vector<64x32xbf16>, vector<32x16xbf16>, vector<64x16xf32> -> vector<64x16xf32>
    %41 = vector.shape_cast %40 : vector<64x16xf32> to vector<8x8x16xf32>
    %c0_44 = arith.constant 0 : index
    %c0_45 = arith.constant 0 : index
    %42 = vector.load %arg6[%c0_44, %c0_45] : memref<16x32xbf16, #tpu.memory_space<vmem>>, vector<16x32xbf16>
    %43 = vector.shape_cast %41 : vector<8x8x16xf32> to vector<64x16xf32>
    %44 = arith.truncf %43 : vector<64x16xf32> to vector<64x16xbf16>
    %cst_46 = arith.constant dense<0.000000e+00> : vector<64x32xf32>
    %45 = tpu.matmul %44, %42, %cst_46 {dimension_numbers = #tpu.dot_dimension_numbers<[1], [0], [0], [1], [0, 0, 1, 1], [], []>} : vector<64x16xbf16>, vector<16x32xbf16>, vector<64x32xf32> -> vector<64x32xf32>
    %46 = vector.shape_cast %45 : vector<64x32xf32> to vector<8x8x32xf32>
    %c0_47 = arith.constant 0 : index
    %c0_48 = arith.constant 0 : index
    %c0_49 = arith.constant 0 : index
    %47 = vector.load %arg7[%c0_47, %c0_48, %c0_49] : memref<1x1x32xf32, #tpu.memory_space<vmem>>, vector<1x1x32xf32>
    %48 = vector.broadcast %47 : vector<1x1x32xf32> to vector<8x8x32xf32>
    %49 = arith.addf %46, %48 : vector<8x8x32xf32>
    %cst_50 = arith.constant 5.000000e-01 : f32
    %50 = vector.broadcast %cst_50 : f32 to vector<8x8x32xf32>
    %51 = arith.mulf %50, %49 : vector<8x8x32xf32>
    %cst_51 = arith.constant 0.707106769 : f32
    %52 = vector.broadcast %cst_51 : f32 to vector<8x8x32xf32>
    %53 = arith.mulf %49, %52 : vector<8x8x32xf32>
    %54 = math.erf %53 : vector<8x8x32xf32>
    %cst_52 = arith.constant 1.000000e+00 : f32
    %55 = vector.broadcast %cst_52 : f32 to vector<8x8x32xf32>
    %56 = arith.addf %55, %54 : vector<8x8x32xf32>
    %57 = arith.mulf %51, %56 : vector<8x8x32xf32>
    %c0_53 = arith.constant 0 : index
    %c0_54 = arith.constant 0 : index
    %58 = vector.load %arg8[%c0_53, %c0_54] : memref<32x16xbf16, #tpu.memory_space<vmem>>, vector<32x16xbf16>
    %59 = vector.shape_cast %57 : vector<8x8x32xf32> to vector<64x32xf32>
    %60 = arith.truncf %59 : vector<64x32xf32> to vector<64x32xbf16>
    %cst_55 = arith.constant dense<0.000000e+00> : vector<64x16xf32>
    %61 = tpu.matmul %60, %58, %cst_55 {dimension_numbers = #tpu.dot_dimension_numbers<[1], [0], [0], [1], [0, 0, 1, 1], [], []>} : vector<64x32xbf16>, vector<32x16xbf16>, vector<64x16xf32> -> vector<64x16xf32>
    %62 = vector.shape_cast %61 : vector<64x16xf32> to vector<8x8x16xf32>
    %c0_56 = arith.constant 0 : index
    %c0_57 = arith.constant 0 : index
    %c0_58 = arith.constant 0 : index
    %63 = vector.load %arg9[%c0_56, %c0_57, %c0_58] : memref<1x1x16xf32, #tpu.memory_space<vmem>>, vector<1x1x16xf32>
    %64 = vector.broadcast %63 : vector<1x1x16xf32> to vector<8x8x16xf32>
    %65 = arith.addf %62, %64 : vector<8x8x16xf32>
    %c0_59 = arith.constant 0 : index
    %c0_60 = arith.constant 0 : index
    %c0_61 = arith.constant 0 : index
    %c0_62 = arith.constant 0 : index
    %c0_63 = arith.constant 0 : index
    %66 = vector.load %arg3[%c0_59, %c0_60, %c0_61, %c0_62, %c0_63] : memref<1x1x2x8x32xbf16, #tpu.memory_space<vmem>>, vector<1x1x2x8x32xbf16>
    %67 = vector.shape_cast %66 : vector<1x1x2x8x32xbf16> to vector<2x8x32xbf16>
    %c0_64 = arith.constant 0 : index
    %c0_65 = arith.constant 0 : index
    %68 = vector.load %arg4[%c0_64, %c0_65] : memref<32x16xbf16, #tpu.memory_space<vmem>>, vector<32x16xbf16>
    %69 = vector.shape_cast %67 : vector<2x8x32xbf16> to vector<16x32xbf16>
    %cst_66 = arith.constant dense<0.000000e+00> : vector<16x16xf32>
    %70 = tpu.matmul %69, %68, %cst_66 {dimension_numbers = #tpu.dot_dimension_numbers<[1], [0], [0], [1], [0, 0, 1, 1], [], []>} : vector<16x32xbf16>, vector<32x16xbf16>, vector<16x16xf32> -> vector<16x16xf32>
    %71 = vector.shape_cast %70 : vector<16x16xf32> to vector<2x8x16xf32>
    %c0_67 = arith.constant 0 : index
    %c0_68 = arith.constant 0 : index
    %72 = vector.load %arg6[%c0_67, %c0_68] : memref<16x32xbf16, #tpu.memory_space<vmem>>, vector<16x32xbf16>
    %73 = vector.shape_cast %71 : vector<2x8x16xf32> to vector<16x16xf32>
    %74 = arith.truncf %73 : vector<16x16xf32> to vector<16x16xbf16>
    %cst_69 = arith.constant dense<0.000000e+00> : vector<16x32xf32>
    %75 = tpu.matmul %74, %72, %cst_69 {dimension_numbers = #tpu.dot_dimension_numbers<[1], [0], [0], [1], [0, 0, 1, 1], [], []>} : vector<16x16xbf16>, vector<16x32xbf16>, vector<16x32xf32> -> vector<16x32xf32>
    %76 = vector.shape_cast %75 : vector<16x32xf32> to vector<2x8x32xf32>
    %c0_70 = arith.constant 0 : index
    %c0_71 = arith.constant 0 : index
    %c0_72 = arith.constant 0 : index
    %77 = vector.load %arg7[%c0_70, %c0_71, %c0_72] : memref<1x1x32xf32, #tpu.memory_space<vmem>>, vector<1x1x32xf32>
    %78 = vector.broadcast %77 : vector<1x1x32xf32> to vector<2x8x32xf32>
    %79 = arith.addf %76, %78 : vector<2x8x32xf32>
    %cst_73 = arith.constant 5.000000e-01 : f32
    %80 = vector.broadcast %cst_73 : f32 to vector<2x8x32xf32>
    %81 = arith.mulf %80, %79 : vector<2x8x32xf32>
    %cst_74 = arith.constant 0.707106769 : f32
    %82 = vector.broadcast %cst_74 : f32 to vector<2x8x32xf32>
    %83 = arith.mulf %79, %82 : vector<2x8x32xf32>
    %84 = math.erf %83 : vector<2x8x32xf32>
    %cst_75 = arith.constant 1.000000e+00 : f32
    %85 = vector.broadcast %cst_75 : f32 to vector<2x8x32xf32>
    %86 = arith.addf %85, %84 : vector<2x8x32xf32>
    %87 = arith.mulf %81, %86 : vector<2x8x32xf32>
    %c0_76 = arith.constant 0 : index
    %c0_77 = arith.constant 0 : index
    %88 = vector.load %arg8[%c0_76, %c0_77] : memref<32x16xbf16, #tpu.memory_space<vmem>>, vector<32x16xbf16>
    %89 = vector.shape_cast %87 : vector<2x8x32xf32> to vector<16x32xf32>
    %90 = arith.truncf %89 : vector<16x32xf32> to vector<16x32xbf16>
    %cst_78 = arith.constant dense<0.000000e+00> : vector<16x16xf32>
    %91 = tpu.matmul %90, %88, %cst_78 {dimension_numbers = #tpu.dot_dimension_numbers<[1], [0], [0], [1], [0, 0, 1, 1], [], []>} : vector<16x32xbf16>, vector<32x16xbf16>, vector<16x16xf32> -> vector<16x16xf32>
    %92 = vector.shape_cast %91 : vector<16x16xf32> to vector<2x8x16xf32>
    %c0_79 = arith.constant 0 : index
    %c0_80 = arith.constant 0 : index
    %c0_81 = arith.constant 0 : index
    %93 = vector.load %arg9[%c0_79, %c0_80, %c0_81] : memref<1x1x16xf32, #tpu.memory_space<vmem>>, vector<1x1x16xf32>
    %94 = vector.broadcast %93 : vector<1x1x16xf32> to vector<2x8x16xf32>
    %95 = arith.addf %92, %94 : vector<2x8x16xf32>
    %cst_82 = arith.constant 0.000000e+00 : bf16
    %96 = vector.broadcast %cst_82 : bf16 to vector<10x1x16xbf16>
    %c0_83 = arith.constant 0 : index
    %c0_84 = arith.constant 0 : index
    %c0_85 = arith.constant 0 : index
    %97 = vector.load %arg13[%c0_83, %c0_84, %c0_85] : memref<10x16x16xbf16, #tpu.memory_space<vmem>>, vector<10x1x16xbf16>
    tpu.vector_store %arg13[%c0_83, %c0_84, %c0_85], %96 {strides = array<i32>} : memref<10x16x16xbf16, #tpu.memory_space<vmem>>, vector<10x1x16xbf16>,
    %c0_86 = arith.constant 0 : index
    %c9 = arith.constant 9 : index
    %c0_87 = arith.constant 0 : index
    %98 = vector.load %arg13[%c0_86, %c9, %c0_87] : memref<10x16x16xbf16, #tpu.memory_space<vmem>>, vector<10x1x16xbf16>
    tpu.vector_store %arg13[%c0_86, %c9, %c0_87], %96 {strides = array<i32>} : memref<10x16x16xbf16, #tpu.memory_space<vmem>>, vector<10x1x16xbf16>,
    %99 = arith.truncf %65 : vector<8x8x16xf32> to vector<8x8x16xbf16>
    %c1 = arith.constant 1 : index
    %c1_88 = arith.constant 1 : index
    %c0_89 = arith.constant 0 : index
    %100 = vector.load %arg13[%c1, %c1_88, %c0_89] : memref<10x16x16xbf16, #tpu.memory_space<vmem>>, vector<8x8x16xbf16>
    tpu.vector_store %arg13[%c1, %c1_88, %c0_89], %99 {strides = array<i32>} : memref<10x16x16xbf16, #tpu.memory_space<vmem>>, vector<8x8x16xbf16>,
    %101 = vector.extract_strided_slice %95 {offsets = [0, 0, 0], sizes = [1, 8, 16], strides = [1, 1, 1]} : vector<2x8x16xf32> to vector<1x8x16xf32>
    %102 = arith.truncf %101 : vector<1x8x16xf32> to vector<1x8x16xbf16>
    %c0_90 = arith.constant 0 : index
    %c1_91 = arith.constant 1 : index
    %c0_92 = arith.constant 0 : index
    %103 = vector.load %arg13[%c0_90, %c1_91, %c0_92] : memref<10x16x16xbf16, #tpu.memory_space<vmem>>, vector<1x8x16xbf16>
    tpu.vector_store %arg13[%c0_90, %c1_91, %c0_92], %102 {strides = array<i32>} : memref<10x16x16xbf16, #tpu.memory_space<vmem>>, vector<1x8x16xbf16>,
    %104 = vector.extract_strided_slice %95 {offsets = [1, 0, 0], sizes = [1, 8, 16], strides = [1, 1, 1]} : vector<2x8x16xf32> to vector<1x8x16xf32>
    %105 = arith.truncf %104 : vector<1x8x16xf32> to vector<1x8x16xbf16>
    %c9_93 = arith.constant 9 : index
    %c1_94 = arith.constant 1 : index
    %c0_95 = arith.constant 0 : index
    %106 = vector.load %arg13[%c9_93, %c1_94, %c0_95] : memref<10x16x16xbf16, #tpu.memory_space<vmem>>, vector<1x8x16xbf16>
    tpu.vector_store %arg13[%c9_93, %c1_94, %c0_95], %105 {strides = array<i32>} : memref<10x16x16xbf16, #tpu.memory_space<vmem>>, vector<1x8x16xbf16>,
    %cst_96 = arith.constant 0.000000e+00 : bf16
    %107 = vector.broadcast %cst_96 : bf16 to vector<1x8x16xbf16>
    %c0_i32 = arith.constant 0 : i32
    %108 = arith.cmpi eq, %arg1, %c0_i32 : i32
    %109 = arith.extui %108 : i1 to i32
    %c0_i32_97 = arith.constant 0 : i32
    %110 = arith.cmpi ne, %109, %c0_i32_97 : i32
    scf.if %110 {
      %c0_162 = arith.constant 0 : index
      %c1_163 = arith.constant 1 : index
      %c0_164 = arith.constant 0 : index
      %217 = vector.load %arg13[%c0_162, %c1_163, %c0_164] : memref<10x16x16xbf16, #tpu.memory_space<vmem>>, vector<1x8x16xbf16>
      tpu.vector_store %arg13[%c0_162, %c1_163, %c0_164], %107 {strides = array<i32>} : memref<10x16x16xbf16, #tpu.memory_space<vmem>>, vector<1x8x16xbf16>,
    } else {
    }
    %c0_i32_98 = arith.constant 0 : i32
    %111 = arith.cmpi eq, %arg1, %c0_i32_98 : i32
    %112 = arith.extui %111 : i1 to i32
    %c0_i32_99 = arith.constant 0 : i32
    %113 = arith.cmpi ne, %112, %c0_i32_99 : i32
    scf.if %113 {
      %c9_162 = arith.constant 9 : index
      %c1_163 = arith.constant 1 : index
      %c0_164 = arith.constant 0 : index
      %217 = vector.load %arg13[%c9_162, %c1_163, %c0_164] : memref<10x16x16xbf16, #tpu.memory_space<vmem>>, vector<1x8x16xbf16>
      tpu.vector_store %arg13[%c9_162, %c1_163, %c0_164], %107 {strides = array<i32>} : memref<10x16x16xbf16, #tpu.memory_space<vmem>>, vector<1x8x16xbf16>,
    } else {
    }
    %c0_100 = arith.constant 0 : index
    %c1_101 = arith.constant 1 : index
    %c0_102 = arith.constant 0 : index
    %114 = vector.load %arg13[%c0_100, %c1_101, %c0_102] : memref<10x16x16xbf16, #tpu.memory_space<vmem>>, vector<10x8x16xbf16>
    %c0_103 = arith.constant 0 : index
    %c0_104 = arith.constant 0 : index
    %c0_105 = arith.constant 0 : index
    %115 = vector.load %arg13[%c0_103, %c0_104, %c0_105] : memref<10x16x16xbf16, #tpu.memory_space<vmem>>, vector<10x8x16xbf16>
    %c0_106 = arith.constant 0 : index
    %c2 = arith.constant 2 : index
    %c0_107 = arith.constant 0 : index
    %116 = vector.load %arg13[%c0_106, %c2, %c0_107] : memref<10x16x16xbf16, #tpu.memory_space<vmem>>, vector<10x8x16xbf16>
    %c0_108 = arith.constant 0 : index
    %c0_109 = arith.constant 0 : index
    %c0_110 = arith.constant 0 : index
    %117 = vector.load %arg11[%c0_108, %c0_109, %c0_110] : memref<1x1x16xf32, #tpu.memory_space<vmem>>, vector<1x1x16xf32>
    %118 = vector.shape_cast %117 : vector<1x1x16xf32> to vector<1x1x16xf32>
    %119 = vector.broadcast %118 : vector<1x1x16xf32> to vector<8x8x16xf32>
    %120 = vector.extract_strided_slice %114 {offsets = [1, 0, 0], sizes = [8, 8, 16], strides = [1, 1, 1]} : vector<10x8x16xbf16> to vector<8x8x16xbf16>
    %c0_111 = arith.constant 0 : index
    %c0_112 = arith.constant 0 : index
    %121 = vector.load %arg10[%c0_111, %c0_112] : memref<16x256xbf16, #tpu.memory_space<vmem>>, vector<16x64xbf16>
    %122 = vector.shape_cast %120 : vector<8x8x16xbf16> to vector<64x16xbf16>
    %cst_113 = arith.constant dense<0.000000e+00> : vector<64x64xf32>
    %123 = tpu.matmul %122, %121, %cst_113 {dimension_numbers = #tpu.dot_dimension_numbers<[1], [0], [0], [1], [0, 0, 1, 1], [], []>} : vector<64x16xbf16>, vector<16x64xbf16>, vector<64x64xf32> -> vector<64x64xf32>
    %124 = vector.shape_cast %123 : vector<64x64xf32> to vector<8x8x64xf32>
    %125 = vector.extract_strided_slice %124 {offsets = [0, 0, 0], sizes = [8, 8, 16], strides = [1, 1, 1]} : vector<8x8x64xf32> to vector<8x8x16xf32>
    %126 = arith.addf %119, %125 : vector<8x8x16xf32>
    %127 = vector.extract_strided_slice %124 {offsets = [0, 0, 16], sizes = [8, 8, 16], strides = [1, 1, 1]} : vector<8x8x64xf32> to vector<8x8x16xf32>
    %128 = arith.addf %119, %127 : vector<8x8x16xf32>
    %129 = vector.extract_strided_slice %124 {offsets = [0, 0, 32], sizes = [8, 8, 16], strides = [1, 1, 1]} : vector<8x8x64xf32> to vector<8x8x16xf32>
    %130 = arith.addf %119, %129 : vector<8x8x16xf32>
    %131 = vector.extract_strided_slice %124 {offsets = [0, 0, 48], sizes = [8, 8, 16], strides = [1, 1, 1]} : vector<8x8x64xf32> to vector<8x8x16xf32>
    %132 = arith.addf %119, %131 : vector<8x8x16xf32>
    %133 = vector.extract_strided_slice %115 {offsets = [1, 0, 0], sizes = [8, 8, 16], strides = [1, 1, 1]} : vector<10x8x16xbf16> to vector<8x8x16xbf16>
    %c0_114 = arith.constant 0 : index
    %c64 = arith.constant 64 : index
    %134 = vector.load %arg10[%c0_114, %c64] : memref<16x256xbf16, #tpu.memory_space<vmem>>, vector<16x32xbf16>
    %135 = vector.shape_cast %133 : vector<8x8x16xbf16> to vector<64x16xbf16>
    %cst_115 = arith.constant dense<0.000000e+00> : vector<64x32xf32>
    %136 = tpu.matmul %135, %134, %cst_115 {dimension_numbers = #tpu.dot_dimension_numbers<[1], [0], [0], [1], [0, 0, 1, 1], [], []>} : vector<64x16xbf16>, vector<16x32xbf16>, vector<64x32xf32> -> vector<64x32xf32>
    %137 = vector.shape_cast %136 : vector<64x32xf32> to vector<8x8x32xf32>
    %138 = vector.extract_strided_slice %137 {offsets = [0, 0, 0], sizes = [8, 8, 16], strides = [1, 1, 1]} : vector<8x8x32xf32> to vector<8x8x16xf32>
    %139 = arith.addf %126, %138 : vector<8x8x16xf32>
    %140 = vector.extract_strided_slice %137 {offsets = [0, 0, 16], sizes = [8, 8, 16], strides = [1, 1, 1]} : vector<8x8x32xf32> to vector<8x8x16xf32>
    %141 = arith.addf %130, %140 : vector<8x8x16xf32>
    %142 = vector.extract_strided_slice %116 {offsets = [1, 0, 0], sizes = [8, 8, 16], strides = [1, 1, 1]} : vector<10x8x16xbf16> to vector<8x8x16xbf16>
    %c0_116 = arith.constant 0 : index
    %c96 = arith.constant 96 : index
    %143 = vector.load %arg10[%c0_116, %c96] : memref<16x256xbf16, #tpu.memory_space<vmem>>, vector<16x32xbf16>
    %144 = vector.shape_cast %142 : vector<8x8x16xbf16> to vector<64x16xbf16>
    %cst_117 = arith.constant dense<0.000000e+00> : vector<64x32xf32>
    %145 = tpu.matmul %144, %143, %cst_117 {dimension_numbers = #tpu.dot_dimension_numbers<[1], [0], [0], [1], [0, 0, 1, 1], [], []>} : vector<64x16xbf16>, vector<16x32xbf16>, vector<64x32xf32> -> vector<64x32xf32>
    %146 = vector.shape_cast %145 : vector<64x32xf32> to vector<8x8x32xf32>
    %147 = vector.extract_strided_slice %146 {offsets = [0, 0, 0], sizes = [8, 8, 16], strides = [1, 1, 1]} : vector<8x8x32xf32> to vector<8x8x16xf32>
    %148 = arith.addf %128, %147 : vector<8x8x16xf32>
    %149 = vector.extract_strided_slice %146 {offsets = [0, 0, 16], sizes = [8, 8, 16], strides = [1, 1, 1]} : vector<8x8x32xf32> to vector<8x8x16xf32>
    %150 = arith.addf %132, %149 : vector<8x8x16xf32>
    %151 = vector.extract_strided_slice %114 {offsets = [0, 0, 0], sizes = [8, 8, 16], strides = [1, 1, 1]} : vector<10x8x16xbf16> to vector<8x8x16xbf16>
    %c0_118 = arith.constant 0 : index
    %c128 = arith.constant 128 : index
    %152 = vector.load %arg10[%c0_118, %c128] : memref<16x256xbf16, #tpu.memory_space<vmem>>, vector<16x32xbf16>
    %153 = vector.shape_cast %151 : vector<8x8x16xbf16> to vector<64x16xbf16>
    %cst_119 = arith.constant dense<0.000000e+00> : vector<64x32xf32>
    %154 = tpu.matmul %153, %152, %cst_119 {dimension_numbers = #tpu.dot_dimension_numbers<[1], [0], [0], [1], [0, 0, 1, 1], [], []>} : vector<64x16xbf16>, vector<16x32xbf16>, vector<64x32xf32> -> vector<64x32xf32>
    %155 = vector.shape_cast %154 : vector<64x32xf32> to vector<8x8x32xf32>
    %156 = vector.extract_strided_slice %155 {offsets = [0, 0, 0], sizes = [8, 8, 16], strides = [1, 1, 1]} : vector<8x8x32xf32> to vector<8x8x16xf32>
    %157 = arith.addf %139, %156 : vector<8x8x16xf32>
    %158 = vector.extract_strided_slice %155 {offsets = [0, 0, 16], sizes = [8, 8, 16], strides = [1, 1, 1]} : vector<8x8x32xf32> to vector<8x8x16xf32>
    %159 = arith.addf %148, %158 : vector<8x8x16xf32>
    %160 = vector.extract_strided_slice %115 {offsets = [0, 0, 0], sizes = [8, 8, 16], strides = [1, 1, 1]} : vector<10x8x16xbf16> to vector<8x8x16xbf16>
    %c0_120 = arith.constant 0 : index
    %c160 = arith.constant 160 : index
    %161 = vector.load %arg10[%c0_120, %c160] : memref<16x256xbf16, #tpu.memory_space<vmem>>, vector<16x16xbf16>
    %162 = vector.shape_cast %160 : vector<8x8x16xbf16> to vector<64x16xbf16>
    %cst_121 = arith.constant dense<0.000000e+00> : vector<64x16xf32>
    %163 = tpu.matmul %162, %161, %cst_121 {dimension_numbers = #tpu.dot_dimension_numbers<[1], [0], [0], [1], [0, 0, 1, 1], [], []>} : vector<64x16xbf16>, vector<16x16xbf16>, vector<64x16xf32> -> vector<64x16xf32>
    %164 = vector.shape_cast %163 : vector<64x16xf32> to vector<8x8x16xf32>
    %165 = arith.addf %157, %164 : vector<8x8x16xf32>
    %166 = vector.extract_strided_slice %116 {offsets = [0, 0, 0], sizes = [8, 8, 16], strides = [1, 1, 1]} : vector<10x8x16xbf16> to vector<8x8x16xbf16>
    %c0_122 = arith.constant 0 : index
    %c176 = arith.constant 176 : index
    %167 = vector.load %arg10[%c0_122, %c176] : memref<16x256xbf16, #tpu.memory_space<vmem>>, vector<16x16xbf16>
    %168 = vector.shape_cast %166 : vector<8x8x16xbf16> to vector<64x16xbf16>
    %cst_123 = arith.constant dense<0.000000e+00> : vector<64x16xf32>
    %169 = tpu.matmul %168, %167, %cst_123 {dimension_numbers = #tpu.dot_dimension_numbers<[1], [0], [0], [1], [0, 0, 1, 1], [], []>} : vector<64x16xbf16>, vector<16x16xbf16>, vector<64x16xf32> -> vector<64x16xf32>
    %170 = vector.shape_cast %169 : vector<64x16xf32> to vector<8x8x16xf32>
    %171 = arith.addf %159, %170 : vector<8x8x16xf32>
    %172 = vector.extract_strided_slice %114 {offsets = [2, 0, 0], sizes = [8, 8, 16], strides = [1, 1, 1]} : vector<10x8x16xbf16> to vector<8x8x16xbf16>
    %c0_124 = arith.constant 0 : index
    %c192 = arith.constant 192 : index
    %173 = vector.load %arg10[%c0_124, %c192] : memref<16x256xbf16, #tpu.memory_space<vmem>>, vector<16x32xbf16>
    %174 = vector.shape_cast %172 : vector<8x8x16xbf16> to vector<64x16xbf16>
    %cst_125 = arith.constant dense<0.000000e+00> : vector<64x32xf32>
    %175 = tpu.matmul %174, %173, %cst_125 {dimension_numbers = #tpu.dot_dimension_numbers<[1], [0], [0], [1], [0, 0, 1, 1], [], []>} : vector<64x16xbf16>, vector<16x32xbf16>, vector<64x32xf32> -> vector<64x32xf32>
    %176 = vector.shape_cast %175 : vector<64x32xf32> to vector<8x8x32xf32>
    %177 = vector.extract_strided_slice %176 {offsets = [0, 0, 0], sizes = [8, 8, 16], strides = [1, 1, 1]} : vector<8x8x32xf32> to vector<8x8x16xf32>
    %178 = arith.addf %141, %177 : vector<8x8x16xf32>
    %179 = vector.extract_strided_slice %176 {offsets = [0, 0, 16], sizes = [8, 8, 16], strides = [1, 1, 1]} : vector<8x8x32xf32> to vector<8x8x16xf32>
    %180 = arith.addf %150, %179 : vector<8x8x16xf32>
    %181 = vector.extract_strided_slice %115 {offsets = [2, 0, 0], sizes = [8, 8, 16], strides = [1, 1, 1]} : vector<10x8x16xbf16> to vector<8x8x16xbf16>
    %c0_126 = arith.constant 0 : index
    %c224 = arith.constant 224 : index
    %182 = vector.load %arg10[%c0_126, %c224] : memref<16x256xbf16, #tpu.memory_space<vmem>>, vector<16x16xbf16>
    %183 = vector.shape_cast %181 : vector<8x8x16xbf16> to vector<64x16xbf16>
    %cst_127 = arith.constant dense<0.000000e+00> : vector<64x16xf32>
    %184 = tpu.matmul %183, %182, %cst_127 {dimension_numbers = #tpu.dot_dimension_numbers<[1], [0], [0], [1], [0, 0, 1, 1], [], []>} : vector<64x16xbf16>, vector<16x16xbf16>, vector<64x16xf32> -> vector<64x16xf32>
    %185 = vector.shape_cast %184 : vector<64x16xf32> to vector<8x8x16xf32>
    %186 = arith.addf %178, %185 : vector<8x8x16xf32>
    %187 = vector.extract_strided_slice %116 {offsets = [2, 0, 0], sizes = [8, 8, 16], strides = [1, 1, 1]} : vector<10x8x16xbf16> to vector<8x8x16xbf16>
    %c0_128 = arith.constant 0 : index
    %c240 = arith.constant 240 : index
    %188 = vector.load %arg10[%c0_128, %c240] : memref<16x256xbf16, #tpu.memory_space<vmem>>, vector<16x16xbf16>
    %189 = vector.shape_cast %187 : vector<8x8x16xbf16> to vector<64x16xbf16>
    %cst_129 = arith.constant dense<0.000000e+00> : vector<64x16xf32>
    %190 = tpu.matmul %189, %188, %cst_129 {dimension_numbers = #tpu.dot_dimension_numbers<[1], [0], [0], [1], [0, 0, 1, 1], [], []>} : vector<64x16xbf16>, vector<16x16xbf16>, vector<64x16xf32> -> vector<64x16xf32>
    %191 = vector.shape_cast %190 : vector<64x16xf32> to vector<8x8x16xf32>
    %192 = arith.addf %180, %191 : vector<8x8x16xf32>
    %c0_130 = arith.constant 0 : index
    %c0_131 = arith.constant 0 : index
    %c0_132 = arith.constant 0 : index
    %c0_133 = arith.constant 0 : index
    %193 = vector.load %arg12[%c0_130, %c0_131, %c0_132, %c0_133] : memref<1x8x8x64xf32, #tpu.memory_space<vmem>>, vector<1x8x8x16xf32>
    %194 = vector.shape_cast %193 : vector<1x8x8x16xf32> to vector<8x8x16xf32>
    %195 = arith.addf %165, %194 : vector<8x8x16xf32>
    %c0_134 = arith.constant 0 : index
    %c0_135 = arith.constant 0 : index
    %c0_136 = arith.constant 0 : index
    %c0_137 = arith.constant 0 : index
    %196 = vector.load %arg12[%c0_134, %c0_135, %c0_136, %c0_137] : memref<1x8x8x64xf32, #tpu.memory_space<vmem>>, vector<1x8x8x16xf32>
    %197 = vector.shape_cast %196 : vector<1x8x8x16xf32> to vector<8x8x16xf32>
    %198 = vector.shape_cast %195 : vector<8x8x16xf32> to vector<1x8x8x16xf32>
    tpu.vector_store %arg12[%c0_134, %c0_135, %c0_136, %c0_137], %198 {strides = array<i32>} : memref<1x8x8x64xf32, #tpu.memory_space<vmem>>, vector<1x8x8x16xf32>,
    %c0_138 = arith.constant 0 : index
    %c0_139 = arith.constant 0 : index
    %c0_140 = arith.constant 0 : index
    %c16_141 = arith.constant 16 : index
    %199 = vector.load %arg12[%c0_138, %c0_139, %c0_140, %c16_141] : memref<1x8x8x64xf32, #tpu.memory_space<vmem>>, vector<1x8x8x16xf32>
    %200 = vector.shape_cast %199 : vector<1x8x8x16xf32> to vector<8x8x16xf32>
    %201 = arith.addf %171, %200 : vector<8x8x16xf32>
    %c0_142 = arith.constant 0 : index
    %c0_143 = arith.constant 0 : index
    %c0_144 = arith.constant 0 : index
    %c16_145 = arith.constant 16 : index
    %202 = vector.load %arg12[%c0_142, %c0_143, %c0_144, %c16_145] : memref<1x8x8x64xf32, #tpu.memory_space<vmem>>, vector<1x8x8x16xf32>
    %203 = vector.shape_cast %202 : vector<1x8x8x16xf32> to vector<8x8x16xf32>
    %204 = vector.shape_cast %201 : vector<8x8x16xf32> to vector<1x8x8x16xf32>
    tpu.vector_store %arg12[%c0_142, %c0_143, %c0_144, %c16_145], %204 {strides = array<i32>} : memref<1x8x8x64xf32, #tpu.memory_space<vmem>>, vector<1x8x8x16xf32>,
    %c0_146 = arith.constant 0 : index
    %c0_147 = arith.constant 0 : index
    %c0_148 = arith.constant 0 : index
    %c32_149 = arith.constant 32 : index
    %205 = vector.load %arg12[%c0_146, %c0_147, %c0_148, %c32_149] : memref<1x8x8x64xf32, #tpu.memory_space<vmem>>, vector<1x8x8x16xf32>
    %206 = vector.shape_cast %205 : vector<1x8x8x16xf32> to vector<8x8x16xf32>
    %207 = arith.addf %186, %206 : vector<8x8x16xf32>
    %c0_150 = arith.constant 0 : index
    %c0_151 = arith.constant 0 : index
    %c0_152 = arith.constant 0 : index
    %c32_153 = arith.constant 32 : index
    %208 = vector.load %arg12[%c0_150, %c0_151, %c0_152, %c32_153] : memref<1x8x8x64xf32, #tpu.memory_space<vmem>>, vector<1x8x8x16xf32>
    %209 = vector.shape_cast %208 : vector<1x8x8x16xf32> to vector<8x8x16xf32>
    %210 = vector.shape_cast %207 : vector<8x8x16xf32> to vector<1x8x8x16xf32>
    tpu.vector_store %arg12[%c0_150, %c0_151, %c0_152, %c32_153], %210 {strides = array<i32>} : memref<1x8x8x64xf32, #tpu.memory_space<vmem>>, vector<1x8x8x16xf32>,
    %c0_154 = arith.constant 0 : index
    %c0_155 = arith.constant 0 : index
    %c0_156 = arith.constant 0 : index
    %c48_157 = arith.constant 48 : index
    %211 = vector.load %arg12[%c0_154, %c0_155, %c0_156, %c48_157] : memref<1x8x8x64xf32, #tpu.memory_space<vmem>>, vector<1x8x8x16xf32>
    %212 = vector.shape_cast %211 : vector<1x8x8x16xf32> to vector<8x8x16xf32>
    %213 = arith.addf %192, %212 : vector<8x8x16xf32>
    %c0_158 = arith.constant 0 : index
    %c0_159 = arith.constant 0 : index
    %c0_160 = arith.constant 0 : index
    %c48_161 = arith.constant 48 : index
    %214 = vector.load %arg12[%c0_158, %c0_159, %c0_160, %c48_161] : memref<1x8x8x64xf32, #tpu.memory_space<vmem>>, vector<1x8x8x16xf32>
    %215 = vector.shape_cast %214 : vector<1x8x8x16xf32> to vector<8x8x16xf32>
    %216 = vector.shape_cast %213 : vector<8x8x16xf32> to vector<1x8x8x16xf32>
    tpu.vector_store %arg12[%c0_158, %c0_159, %c0_160, %c48_161], %216 {strides = array<i32>} : memref<1x8x8x64xf32, #tpu.memory_space<vmem>>, vector<1x8x8x16xf32>,
    return
  }
  func.func @transform_0(%arg0: i32, %arg1: i32) -> (i32, i32, i32, i32) {
    %c0_i32 = arith.constant 0 : i32
    %c0_i32_0 = arith.constant 0 : i32
    %c0_i32_1 = arith.constant 0 : i32
    return %arg0, %arg1, %c0_i32, %c0_i32_0 : i32, i32, i32, i32
  }
  func.func @transform_1(%arg0: i32, %arg1: i32) -> (i32, i32, i32, i32, i32) {
    %c0_i32 = arith.constant 0 : i32
    %c0_i32_0 = arith.constant 0 : i32
    %c0_i32_1 = arith.constant 0 : i32
    %c0_i32_2 = arith.constant 0 : i32
    return %arg0, %arg1, %c0_i32, %c0_i32_0, %c0_i32_1 : i32, i32, i32, i32, i32
  }
  func.func @transform_2(%arg0: i32, %arg1: i32) -> (i32, i32) {
    %c0_i32 = arith.constant 0 : i32
    %c0_i32_0 = arith.constant 0 : i32
    %c0_i32_1 = arith.constant 0 : i32
    return %c0_i32, %c0_i32_0 : i32, i32
  }
  func.func @transform_3(%arg0: i32, %arg1: i32) -> (i32, i32) {
    %c0_i32 = arith.constant 0 : i32
    %c0_i32_0 = arith.constant 0 : i32
    %c0_i32_1 = arith.constant 0 : i32
    return %c0_i32, %c0_i32_0 : i32, i32
  }
  func.func @transform_4(%arg0: i32, %arg1: i32) -> (i32, i32) {
    %c0_i32 = arith.constant 0 : i32
    %c0_i32_0 = arith.constant 0 : i32
    %c0_i32_1 = arith.constant 0 : i32
    return %c0_i32, %c0_i32_0 : i32, i32
  }
  func.func @transform_5(%arg0: i32, %arg1: i32) -> (i32, i32, i32) {
    %c0_i32 = arith.constant 0 : i32
    %c0_i32_0 = arith.constant 0 : i32
    %c0_i32_1 = arith.constant 0 : i32
    %c0_i32_2 = arith.constant 0 : i32
    return %c0_i32, %c0_i32_0, %c0_i32_1 : i32, i32, i32
  }
  func.func @transform_6(%arg0: i32, %arg1: i32) -> (i32, i32) {
    %c0_i32 = arith.constant 0 : i32
    %c0_i32_0 = arith.constant 0 : i32
    %c0_i32_1 = arith.constant 0 : i32
    return %c0_i32, %c0_i32_0 : i32, i32
  }
  func.func @transform_7(%arg0: i32, %arg1: i32) -> (i32, i32, i32) {
    %c0_i32 = arith.constant 0 : i32
    %c0_i32_0 = arith.constant 0 : i32
    %c0_i32_1 = arith.constant 0 : i32
    %c0_i32_2 = arith.constant 0 : i32
    return %c0_i32, %c0_i32_0, %c0_i32_1 : i32, i32, i32
  }
  func.func @transform_8(%arg0: i32, %arg1: i32) -> (i32, i32) {
    %c0_i32 = arith.constant 0 : i32
    %c0_i32_0 = arith.constant 0 : i32
    %c0_i32_1 = arith.constant 0 : i32
    return %c0_i32, %c0_i32_0 : i32, i32
  }
  func.func @transform_9(%arg0: i32, %arg1: i32) -> (i32, i32, i32) {
    %c0_i32 = arith.constant 0 : i32
    %c0_i32_0 = arith.constant 0 : i32
    %c0_i32_1 = arith.constant 0 : i32
    %c0_i32_2 = arith.constant 0 : i32
    return %c0_i32, %c0_i32_0, %c0_i32_1 : i32, i32, i32
  }
  func.func @transform_10(%arg0: i32, %arg1: i32) -> (i32, i32, i32, i32) {
    %c0_i32 = arith.constant 0 : i32
    %c0_i32_0 = arith.constant 0 : i32
    %c0_i32_1 = arith.constant 0 : i32
    return %arg0, %arg1, %c0_i32, %c0_i32_0 : i32, i32, i32, i32
  }
}

</mosaic_0001>

<bundles_post_ra>
// kernel: tpu_custom_call.1
= control target key start
LH: loop header
LB: loop body
LE: loop exit
PB: predicated region body
PF: predicated region fallthrough
CT: control target
= control target key end

     0   :  { %15 = vsyncpa [#allocation4], 0  ;;  %s5536_s0 = inlined_call_operand.hbm [shape: bf16[2,8,8,32], index: 0, kind: input, shape index: {}]   ;;  %s5537_s1 = inlined_call_operand.vmem [shape: bf16[2,1,2,8,32], index: 1, kind: input, shape index: {}]   ;;  %s5538_s2 = inlined_call_operand.vmem [shape: bf16[32,16], index: 2, kind: input, shape index: {}]   ;;  %s5539_s3 = inlined_call_operand.vmem [shape: bf16[8,16], index: 3, kind: input, shape index: {}]   ;;  %s5540_s4 = inlined_call_operand.vmem [shape: bf16[16,32], index: 4, kind: input, shape index: {}]   ;;  %s5541_s5 = inlined_call_operand.vmem [shape: f32[1,1,32], index: 5, kind: input, shape index: {}]   ;;  %s5542_s6 = inlined_call_operand.vmem [shape: bf16[32,16], index: 6, kind: input, shape index: {}]   ;;  %s5543_s7 = inlined_call_operand.vmem [shape: f32[1,1,16], index: 7, kind: input, shape index: {}]   ;;  %s5544_s8 = inlined_call_operand.vmem [shape: bf16[16,256], index: 8, kind: input, shape index: {}]   ;;  %s5545_s9 = inlined_call_operand.vmem [shape: f32[1,1,16], index: 9, kind: input, shape index: {}]   ;;  %s5546_s10 = inlined_call_operand.hbm [shape: f32[2,8,8,64], index: 10, kind: output, shape index: {}]  }
   0x1   :  { %17 = vsyncpa [#allocation4 + $0x1], 0 }
   0x2   :  { %18 = vsyncpa [#allocation5], 0 }
   0x3   :  { %20 = vsyncpa [#allocation5 + $0x1], 0  ;;  %s4376_s13 = smov 0   ;;  %s4378_s14 = smov 0  }
   0x4   :  { %s4380_s15 = smov 0   ;;  %s4382_s16 = smov 0  }
   0x5   :  { %s4384_s17 = smov 0   ;;  %s4386_s18 = smov 0  }
   0x6 LB: > { %5550 = sst [smem:[#allocation9_spill]] %s4282_s13  ;;  %s3606_s19 = sadd.s32 4294967295, %s4302_s18   ;;  %s4302_s18 = sphi %s4386_s18, %s26_s18   ;;  %s4298_s17 = sphi %s4384_s17, %s5573_s17   ;;  %s4294_s16 = sphi %s4382_s16, %s5572_s16   ;;  %s4290_s15 = sphi %s4380_s15, %s5576_s15   ;;  %s4286_s14 = sphi %s4378_s14, %s5575_s14   ;;  %s4282_s13 = sphi %s4376_s13, %s5574_s13  }
   0x7   : > { %5551 = sst [smem:[#allocation10_spill]] %s4298_s17  ;;  %s3607_s20 = sadd.s32 4294967294, %s4302_s18  }
   0x8   : > { %s38_s21 = sadd.s32 1, %s4298_s17  ;;  %s47_s22 = sadd.s32 1, %s4290_s15 }
   0x9   : > { %p40_p0 = scmp.ge.s32.totalorder %s38_s21, 2  ;;  %p54_p1 = scmp.ne.s32.totalorder %s4290_s15, %s4286_s14 }
   0xa   : > { %p55_p2 = scmp.eq.s32.totalorder %s4302_s18, 0  ;;  %p60_p3 = scmp.ne.s32.totalorder %s4286_s14, %s4282_s13 }
   0xb   : > { %s5578_s21 = smov (%p40_p0, %s38_s21), 0  ;;  %p61_p5 = scmp.eq.s32.totalorder %s3606_s19, 0 }
   0xc   : > { %5552 = sst [smem:[#allocation11_spill]] %s5578_s21  ;;  %p4417_p4 = por %p55_p2, %p54_p1 }
   0xd   : > { %s42_s24 = ssub.s32 %s4298_s17, %s5578_s21  ;;  %p282_p6 = scmp.eq.s32.totalorder %s3606_s19, 1 }
   0xe   : > { %p45_p7 = scmp.eq.s32.totalorder %s42_s24, 0  ;;  %p4423_p8 = por %p61_p5, %p60_p3 }
   0xf   : > { %p4427_p9 = por %p282_p6, %p54_p1  ;;  %p288_p10 = scmp.eq.s32.totalorder %s3607_s20, 1 }
  0x10   : > { %s4432_s27 = scalar_select %p45_p7, %s4290_s15, %s47_s22  }
  0x11   : > { %p4434_p11 = por %p288_p10, %p60_p3  ;;  %p4073_p13 = scmp.lt.s32.totalorder %s4302_s18, 2 }
  0x12   : > { %5556 = sst [smem:[#allocation12_spill]] %s4432_s27  ;;  %s332_s29 = sand.u32 1, %s4290_s15  }
  0x13   : > { %s3610_s30 = sshll.u32 %s332_s29, 5  ;;  %s3768_s11 = sshll.u32 %s4298_s17, 9 }
  0x14   : > { %s344_s24 = scalar_lea.hbm %s5536_s0, %s3768_s11  ;;  %s336_s21 = scalar_lea.vmem [#allocation3], %s3610_s30 }
  0x15   : > { %s345_s13 = sshll.u32 %s336_s21, 4  ;;  %p4447_p0 = pnand %p4073_p13, %p4417_p4  ;;  %s346_s13 = int_to_ptr.vmem [resolvable:$true] %s345_s13 }
  0x16   : > { %p3613_p1 = scmp.ge.s32.totalorder %s4302_s18, 1  ;;  %s333_s22 = scalar_lea.sflag [#allocation4], %s332_s29 }
  0x17   : > { %p4196_p2 = pneg %p4447_p0  ;;  %s4207_s27 = scalar_lea.vmem %s346_s13, 512 }
  0x18   : > { %p4208_p3 = scmp.ne.s32.totalorder %s346_s13, %s4207_s27  ;;  %s4304_s17 = smov [#allocation3]  }
  0x19   : > { %s4212_s12 = sshll.u32 %s4304_s17, 4  ;;  %s4213_s12 = int_to_ptr.vmem [resolvable:$false] %s4212_s12 }
  0x1a   : > { %p4210_p5 = pnand %p4208_p3, %p4196_p2  ;;  %s4214_s30 = scalar_lea.vmem %s4213_s12, 1024 }
  0x1b   : > { %p4215_p7 = scmp.lt.s32.totalorder %s346_s13, %s4213_s12  ;;  %p4216_p10 = scmp.lt.s32.totalorder %s4214_s30, %s4207_s27 }
  0x1c   : > { %p4211_p6 = pneg %p4210_p5 }
  0x1d   : > { %p4217_p12 = por %p4216_p10, %p4215_p7 }
  0x1f   : > { %p4218_p4 = pnand %p4217_p12, %p4211_p6 }
  0x21   : > { %4221 = shalt.err (!%p4218_p4)
}
  0x22   : > { %s4305_s21 = smov 64   ;;  %s4306_s23 = smov 4  }
  0x23   : > { %4068 = dma.hbm_to_vmem [thread:$0]  (!%p4447_p0), %s344_s24, 512, %s346_s13, %s333_s22, %s4305_s21, %s4305_s21, %s4306_s23  }
  0x24   : > { %p365_p13 = scmp.lt.s32.totalorder %s4302_s18, 3 }
  0x26   : > { %p366_p2 = pnand %p3613_p1, %p365_p13 }
  0x27   : > { %s4460_s17 = sand.u32 (!%p366_p2), 1, %s4286_s14  }
  0x28   : > { %369 = sbr.rel (%p366_p2) target bundleno = 2006 (0x7d6), region = 60  ;;  %s3614_s27 = sshll.u32 (!%p366_p2), %s4460_s17, 5 }
  0x29   : > { %s372_s29 = scalar_lea.sflag (!%p366_p2), [#allocation4], %s4460_s17  ;;  %s4464_s11 = scalar_lea.vmem (!%p366_p2), [#allocation3], %s3614_s27 }
  0x2d   : > { %4273 = dma.done.wait (%p4423_p8), %s372_s29, 512  }
  0x2e   : > { %4275 = vsyncadd (%p4423_p8), %s372_s29, 4294966784  ;;  %v4138_v0 = vld [vmem:[%s4464_s11] sm:$0xff]   ;;  %v4139_v1 = vld [vmem:[%s4464_s11 + $0x10] sm:$0xff]   ;;  %s4307_s13 = smov 112   ;;  %vm475_vm0 = vcmask 1043456   ;;  %vm462_vm1 = vcmask 64512  }
  0x2f   : > { %740 = vrot.lane.b32.xlu0 %v4138_v0, %s4307_s13  ;;  %v4140_v2 = vld [vmem:[%s4464_s11 + $0x8] sm:$0xff]   ;;  %744 = vrot.lane.b32.xlu1 %v4139_v1, %s4307_s13  ;;  %v4141_v3 = vld [vmem:[%s4464_s11 + $0x18] sm:$0xff]   ;;  %s4308_s24 = smov 120   ;;  %s4309_s27 = smov 104   ;;  %vm1071_vm2 = vcmask 261120   ;;  %vm544_vm3 = vcmask 130048  }
  0x30   : > { %v4142_v4 = vld [vmem:[%s4464_s11] sm:$0xff]   ;;  %v4143_v5 = vld [vmem:[%s4464_s11 + $0x8] sm:$0xff]   ;;  %v4144_v6 = vld [vmem:[%s4464_s11 + $0x10] sm:$0xff]   ;;  %s4310_s20 = smov 64   ;;  %s4311_s22 = smov 32   ;;  %v4314_v49 = vmov 0.0  }
  0x31   : > { %v441_v7 = vld [vmem:[%s5539_s3] sm:$0xf]  ;;  %v4145_v8 = vld [vmem:[%s4464_s11 + $0x18] sm:$0xff]   ;;  %v4146_v10 = vld [vmem:[%s4464_s11] sm:$0xff]   ;;  %s4312_s21 = smov 96   ;;  %s4313_s29 = smov 80  }
  0x32   : > { %4057 = vmatprep.subr.msk.bf16.mxu0 %vm475_vm0, %v441_v7  ;;  %v477_v9 = vsel %vm475_vm0, %v441_v7, 0  ;;  %v4147_v11 = vld [vmem:[%s4464_s11 + $0x8] sm:$0xff]   ;;  %v719_v12 = vld [vmem:[%s5539_s3] sm:$0xf]  ;;  %3873 = vmatprep.mubr.msk.bf16.mxu0 %vm462_vm1, %v4146_v10  ;;  %v4500_v15 = vld [vmem:[%s5538_s2 + $0x8] sm:$0xff]   ;;  %p422_p8 = scmp.lt.s32.totalorder %s4294_s16, 1 }
  0x33   : > { %742 = vrot.lane.b32.xlu0 %v4140_v2, %s4307_s13  ;;  %746 = vrot.lane.b32.xlu1 %v4141_v3, %s4307_s13  ;;  %v761_v13 = vsel %vm475_vm0, %v719_v12, 0  ;;  %v4148_v14 = vld [vmem:[%s4464_s11 + $0x10] sm:$0xff]   ;;  %v4149_v18 = vld [vmem:[%s4464_s11 + $0x18] sm:$0xff]   ;;  %s4315_s25 = smov 16   ;;  %vm4316_vm4 = vmmov 0   ;;  %s4317_s19 = smov 48  }
  0x34   : > { %3872 = vmatpush3.bf16.msra.mxu0 %v477_v9  ;;  %v561_v16 = vld [vmem:[%s5539_s3] sm:$0xf]  ;;  %v4156_v19 = vld [vmem:[%s4464_s11] sm:$0xff]   ;;  %v4157_v20 = vld [vmem:[%s4464_s11 + $0x8] sm:$0xff]   ;;  %vm702_vm5 = vcmask 261248   ;;  %vm860_vm6 = vcmask 392448  }
  0x35   : > { %4059 = vmatprep.subr.msk.bf16.mxu0 %vm475_vm0, %v719_v12  ;;  %v603_v17 = vsel %vm475_vm0, %v561_v16, 0  ;;  %4058 = vmatprep.subr.msk.bf16.mxu1 %vm475_vm0, %v561_v16  ;;  %v4158_v21 = vld [vmem:[%s4464_s11 + $0x10] sm:$0xff]   ;;  %v4159_v22 = vld [vmem:[%s4464_s11 + $0x18] sm:$0xff]   ;;  %v4152_v34 = vld [vmem:[%s4464_s11] sm:$0xff]   ;;  %vm1018_vm7 = vcmask 523648   ;;  %vm1560_vm8 = vcmask 122880  }
  0x36   : > { %3882 = vmatpush3.bf16.msra.mxu1 %v603_v17  ;;  %v877_v23 = vld [vmem:[%s5539_s3] sm:$0xf]  ;;  %v4530_v25 = vld [vmem:[%s5544_s8 + $0x4] ss:$8 sps:$4 sm:$0xff]   ;;  %v4153_v37 = vld [vmem:[%s4464_s11 + $0x8] sm:$0xff]   ;;  %vm1738_vm13 = vcmask 125952  }
  0x37   : > { %582 = vrot.lane.b32.xlu0 %v4142_v4, %s4308_s24  ;;  %584 = vrot.lane.b32.xlu1 %v4143_v5, %s4308_s24  ;;  %v4521_v24 = vld [vmem:[%s5544_s8] ss:$8 sps:$4 sm:$0xff]   ;;  %v919_v32 = vsel %vm475_vm0, %v877_v23, 0  ;;  %vm1561_vm9 = vsmask.f32 256 }
  0x38   : > { %3874 = vmatmul.mubr.msk.bf16.vlgmr.msra.gmra.mxu0 %vm462_vm1, %v4147_v11  ;;  %4060 = vmatprep.subr.msk.bf16.mxu1 %vm475_vm0, %v877_v23  ;;  %v4539_v28 = vld [vmem:[%s5538_s2] sm:$0xff]   ;;  %v4155_v41 = vld [vmem:[%s4464_s11 + $0x18] sm:$0xff]   ;;  %vm4743_vm10 = vmand %vm1560_vm8, %vm1561_vm9  ;;  %vm1593_vm11 = vsmask.f32 7938  ;;  %vm1884_vm15 = vsmask.f32 3328 }
  0x39   : > { %3892 = vmatpush3.bf16.msra.mxu0 %v761_v13  ;;  %3877 = vmatprep.mubr.msk.bf16.mxu0 %vm462_vm1, %v4148_v14  ;;  %v4154_v38 = vld [vmem:[%s4464_s11 + $0x10] sm:$0xff]   ;;  %s3615_s11 = sshll.u32 %s4460_s17, 6  ;;  %vm4750_vm12 = vmand %vm1560_vm8, %vm1593_vm11  ;;  %vm1885_vm0 = vsmask.f32 7440 }
  0x3a   : > { %3911 = vmatprep.subr.bf16.mxu0 %v4500_v15  ;;  %v4571_v44 = vld [vmem:[%s5540_s4] sm:$0xff]   ;;  %vm4795_vm14 = vmand %vm1738_vm13, %vm1593_vm11 }
  0x3b   : > { %586 = vrot.lane.b32.xlu0 %v4144_v6, %s4308_s24  ;;  %588 = vrot.lane.b32.xlu1 %v4145_v8, %s4308_s24  ;;  %s4576_s24 = scalar_lea.vmem [#allocation6], %s3615_s11  ;;  %s4318_s11 = smov [#allocation6]  }
  0x3f   : > { %898 = vrot.lane.b32.xlu0 %v4156_v19, %s4309_s27  ;;  %900 = vrot.lane.b32.xlu1 %v4157_v20, %s4309_s27 }
  0x40   : > { %3878 = vmatmul.mubr.msk.bf16.gmra.mxu0 %vm462_vm1, %v4149_v18 }
  0x43   : > { %902 = vrot.lane.b32.xlu0 %v4158_v21, %s4309_s27  ;;  %904 = vrot.lane.b32.xlu1 %v4159_v22, %s4309_s27 }
  0x47   : > { %2226 = vrot.lane.b32.xlu0 %v4521_v24, %s4310_s20  ;;  %2417 = vrot.lane.b32.xlu1 %v4521_v24, %s4311_s22 }
  0x4b   : > { %2703 = vrot.lane.b32.xlu0 %v4530_v25, %s4312_s21  ;;  %2802 = vrot.lane.b32.xlu1 %v4530_v25, %s4313_s29 }
  0x4f   : > { %2906 = vrot.lane.b32.xlu0 %v4530_v25, %s4310_s20  ;;  %3028 = vrot.lane.b32.xlu1 %v4530_v25, %s4311_s22  ;;  %s423_s20 = scalar_select %p422_p8, %s4294_s16, 1 }
  0x51   : > { %s3769_s12 = sshll.u32 %s423_s20, 3  ;;  %s4226_s20 = sshll.u32 %s4318_s11, 4  ;;  %s4227_s20 = int_to_ptr.vmem [resolvable:$false] %s4226_s20 }
  0x52   : > { %s4600_s27 = scalar_lea.vmem %s5537_s1, %s3769_s12  ;;  %s4228_s12 = scalar_lea.vmem %s4227_s20, 2048 }
  0x53   : > { %v4163_v20 = vld [vmem:[%s4600_s27] sm:$0xff]  }
  0xa1   : > { %v741_v26 = vpop.permute.xlu0 %740  ;;  %v745_v27 = vpop.permute.xlu1 %744 }
  0xa2   : > { %3893 = vmatprep.mubr.msk.bf16.mxu0 %vm462_vm1, %v741_v26 }
  0xa5   : > { %v743_v29 = vpop.permute.xlu0 %742  ;;  %v747_v30 = vpop.permute.xlu1 %746 }
  0xa6   : > { %3894 = vmatmul.mubr.msk.bf16.vlgmr.msra.gmra.mxu0 %vm462_vm1, %v743_v29 }
  0xa7   : > { %3912 = vmatpush3.bf16.msra.mxu0 %v4500_v15  ;;  %3897 = vmatprep.mubr.msk.bf16.mxu0 %vm462_vm1, %v745_v27 }
  0xa8   : > { %3913 = vmatprep.subr.bf16.mxu0 %v4539_v28 }
  0xa9   : > { %v583_v31 = vpop.permute.xlu0 %582  ;;  %v585_v33 = vpop.permute.xlu1 %584 }
  0xaa   : > { %3883 = vmatprep.mubr.msk.bf16.mxu1 %vm462_vm1, %v583_v31 }
  0xab   : > { %3884 = vmatmul.mubr.msk.bf16.vlgmr.msra.gmra.mxu1 %vm462_vm1, %v585_v33  ;;  %3914 = vmatpush3.bf16.msra.mxu0 %v4539_v28  ;;  %v4653_v33 = vld [vmem:[%s5542_s6 + $0x8] sm:$0xff]  }
  0xac   : > { %3902 = vmatpush3.bf16.msra.mxu1 %v919_v32  ;;  %3933 = vmatprep.subr.bf16.mxu0 %v4653_v33 }
  0xad   : > { %v587_v35 = vpop.permute.xlu0 %586  ;;  %v589_v36 = vpop.permute.xlu1 %588  ;;  %3923 = vmatprep.subr.bf16.mxu1 %v4571_v44 }
  0xae   : > { %3898 = vmatmul.mubr.msk.bf16.gmra.mxu0 %vm462_vm1, %v747_v30  ;;  %3887 = vmatprep.mubr.msk.bf16.mxu1 %vm462_vm1, %v587_v35  ;;  %v4662_v35 = vld [vmem:[%s5542_s6] sm:$0xff]  }
  0xaf   : > { %3915 = vmatprep.mubr.msk.bf16.mxu0 %vm1071_vm2, %v4152_v34 }
  0xb1   : > { %v899_v39 = vpop.permute.xlu0 %898  ;;  %v901_v40 = vpop.permute.xlu1 %900 }
  0xb3   : > { %3888 = vmatmul.mubr.msk.bf16.gmra.mxu1 %vm462_vm1, %v589_v36 }
  0xb4   : > { %3903 = vmatprep.mubr.msk.bf16.mxu1 %vm462_vm1, %v899_v39 }
  0xb5   : > { %v903_v42 = vpop.permute.xlu0 %902  ;;  %v905_v43 = vpop.permute.xlu1 %904 }
  0xb6   : > { %3916 = vmatmul.mubr.msk.bf16.vlgmr.msra.gmra.mxu0 %vm1071_vm2, %v4153_v37 }
  0xb7   : > { %3919 = vmatprep.mubr.msk.bf16.mxu0 %vm1071_vm2, %v4154_v38  ;;  %3934 = vmatpush3.bf16.msra.mxu0 %v4653_v33 }
  0xb8   : > { %3935 = vmatprep.subr.bf16.mxu0 %v4662_v35 }
  0xb9   : > { %v4642_v29 = vpop.permute.xlu0 %2226  ;;  %v4644_v30 = vpop.permute.xlu1 %2417 }
  0xbb   : > { %3904 = vmatmul.mubr.msk.bf16.vlgmr.msra.gmra.mxu1 %vm462_vm1, %v901_v40  ;;  %3936 = vmatpush3.bf16.msra.mxu0 %v4662_v35 }
  0xbc   : > { %3907 = vmatprep.mubr.msk.bf16.mxu1 %vm462_vm1, %v903_v42  ;;  %3924 = vmatpush3.bf16.msra.mxu1 %v4571_v44 }
  0xbd   : > { %3945 = vmatprep.subr.bf16.mxu1 %v4314_v49  ;;  %v4646_v31 = vpop.permute.xlu0 %2703  ;;  %v4648_v32 = vpop.permute.xlu1 %2802  ;;  %3959 = vmatprep.subr.bf16.mxu0 %v4314_v49 }
  0xbe   : > { %3920 = vmatmul.mubr.msk.bf16.gmra.mxu0 %vm1071_vm2, %v4155_v41 }
  0xc1   : > { %v4655_v34 = vpop.permute.xlu0 %2906  ;;  %v4664_v36 = vpop.permute.xlu1 %3028 }
  0xc3   : > { %3908 = vmatmul.mubr.msk.bf16.gmra.mxu1 %vm462_vm1, %v905_v43  ;;  %vm4875_vm1 = vmor %vm1884_vm15, %vm1885_vm0 }
  0xf8   : > { %v3875_v45 = vpop.f32.mrf.mxu0 }
  0xf9   : > { %547 = vst.msk [vmem:[%s4576_s24 + $0x10] sm:$0xff] %vm544_vm3, %v3875_v45 }
  0xfa   : > { %v513_v46 = vpop.f32.mrf.mxu0 }
  0xfb   : > { %545 = vst.msk [vmem:[%s4576_s24] sm:$0xff] %vm544_vm3, %v513_v46 }
  0xfc   : > { %v3876_v47 = vpop.f32.mrf.mxu0 }
  0xfd   : > { %548 = vst.msk [vmem:[%s4576_s24 + $0x18] sm:$0xff] %vm544_vm3, %v3876_v47 }
  0xfe   : > { %v516_v48 = vpop.f32.mrf.mxu0 }
  0xff   : > { %546 = vst.msk [vmem:[%s4576_s24 + $0x8] sm:$0xff] %vm544_vm3, %v516_v48 }
 0x100   : > { %v3879_v50 = vpop.f32.mrf.mxu0 }
 0x101   : > { %551 = vst.msk [vmem:[%s4576_s24 + $0x30] sm:$0xff] %vm544_vm3, %v3879_v50 }
 0x102   : > { %v529_v51 = vpop.f32.mrf.mxu0 }
 0x103   : > { %549 = vst.msk [vmem:[%s4576_s24 + $0x20] sm:$0xff] %vm544_vm3, %v529_v51 }
 0x104   : > { %v3880_v52 = vpop.f32.mrf.mxu0 }
 0x105   : > { %552 = vst.msk [vmem:[%s4576_s24 + $0x38] sm:$0xff] %vm544_vm3, %v3880_v52 }
 0x106   : > { %v532_v53 = vpop.f32.mrf.mxu0 }
 0x107   : > { %550 = vst.msk [vmem:[%s4576_s24 + $0x28] sm:$0xff] %vm544_vm3, %v532_v53 }
 0x166   : > { %v3895_v54 = vpop.f32.mrf.mxu0 }
 0x168   : > { %v797_v55 = vpop.f32.mrf.mxu0 }
 0x16a   : > { %v3896_v56 = vpop.f32.mrf.mxu0 }
 0x16b   : > { %v3885_v57 = vpop.f32.mrf.mxu1 }
 0x16c   : > { %682 = vrot.lane.b32.xlu0 %v3885_v57, %s4315_s25  ;;  %v800_v58 = vpop.f32.mrf.mxu0 }
 0x16d   : > { %v639_v59 = vpop.f32.mrf.mxu1 }
 0x16e   : > { %v3899_v60 = vpop.f32.mrf.mxu0 }
 0x16f   : > { %v3886_v61 = vpop.f32.mrf.mxu1 }
 0x170   : > { %684 = vrot.lane.b32.xlu1 %v3886_v61, %s4315_s25  ;;  %840 = vrot.lane.b32.xlu0 %v3895_v54, %s4311_s22  ;;  %v813_v62 = vpop.f32.mrf.mxu0 }
 0x171   : > { %v642_v0 = vpop.f32.mrf.mxu1 }
 0x172   : > { %v3900_v63 = vpop.f32.mrf.mxu0 }
 0x173   : > { %v3889_v2 = vpop.f32.mrf.mxu1 }
 0x174   : > { %678 = vrot.lane.b32.xlu0 %v639_v59, %s4315_s25  ;;  %842 = vrot.lane.b32.xlu1 %v3896_v56, %s4311_s22  ;;  %v816_v1 = vpop.f32.mrf.mxu0 }
 0x175   : > { %v655_v5 = vpop.f32.mrf.mxu1 }
 0x176   : > { %v3917_v3 = vpop.f32.mrf.mxu0 }
 0x177   : > { %v3890_v9 = vpop.f32.mrf.mxu1 }
 0x178   : > { %836 = vrot.lane.b32.xlu0 %v797_v55, %s4311_s22  ;;  %680 = vrot.lane.b32.xlu1 %v642_v0, %s4315_s25  ;;  %v1118_v4 = vpop.f32.mrf.mxu0 }
 0x179   : > { %v658_v17 = vpop.f32.mrf.mxu1 }
 0x17a   : > { %v3918_v6 = vpop.f32.mrf.mxu0 }
 0x17b   : > { %v1152_v11 = vpack.c.bf16 %v3918_v6, %v3917_v3  ;;  %v3905_v19 = vpop.f32.mrf.mxu1 }
 0x17c   : > { %690 = vrot.lane.b32.xlu0 %v3889_v2, %s4315_s25  ;;  %838 = vrot.lane.b32.xlu1 %v800_v58, %s4311_s22  ;;  %v1121_v7 = vpop.f32.mrf.mxu0 }
 0x17d   : > { %v1151_v8 = vpack.c.bf16 %v1121_v7, %v1118_v4 }
 0x17e   : > { %v3921_v10 = vpop.f32.mrf.mxu0 }
 0x17f   : > { %3925 = vmatprep.mubr.msk.bf16.mxu1 %vm544_vm3, %v1151_v8 }
 0x180   : > { %692 = vrot.lane.b32.xlu1 %v3890_v9, %s4315_s25  ;;  %848 = vrot.lane.b32.xlu0 %v3899_v60, %s4311_s22  ;;  %v1134_v12 = vpop.f32.mrf.mxu0 }
 0x181   : > { %3926 = vmatmul.mubr.msk.bf16.vlgmr.msra.gmra.mxu1 %vm544_vm3, %v1152_v11 }
 0x182   : > { %3946 = vmatpush3.bf16.msra.mxu1 %v4500_v15  ;;  %v3922_v13 = vpop.f32.mrf.mxu0  ;;  %v955_v15 = vpop.f32.mrf.mxu1 }
 0x183   : > { %3947 = vmatprep.subr.bf16.mxu1 %v4314_v49  ;;  %v1154_v18 = vpack.c.bf16 %v3922_v13, %v3921_v10 }
 0x184   : > { %686 = vrot.lane.b32.xlu0 %v655_v5, %s4315_s25  ;;  %850 = vrot.lane.b32.xlu1 %v3900_v63, %s4311_s22  ;;  %v1137_v14 = vpop.f32.mrf.mxu0  ;;  %v3906_v21 = vpop.f32.mrf.mxu1 }
 0x185   : > { %v1153_v16 = vpack.c.bf16 %v1137_v14, %v1134_v12 }
 0x186   : > { %3948 = vmatpush3.bf16.msra.mxu1 %v4539_v28  ;;  %v958_v22 = vpop.f32.mrf.mxu1 }
 0x187   : > { %3929 = vmatprep.mubr.msk.bf16.mxu1 %vm544_vm3, %v1153_v16  ;;  %3953 = vmatprep.subr.bf16.mxu1 %v4314_v49 }
 0x188   : > { %844 = vrot.lane.b32.xlu0 %v813_v62, %s4311_s22  ;;  %688 = vrot.lane.b32.xlu1 %v658_v17, %s4315_s25  ;;  %v3909_v23 = vpop.f32.mrf.mxu1  ;;  %v4720_v62 = vld [vmem:[%s5541_s5] ss:$0 sm:$0xff] }
 0x189   : > { %3930 = vmatmul.mubr.msk.bf16.gmra.mxu1 %vm544_vm3, %v1154_v18 }
 0x18a   : > { %3949 = vmatprep.mubr.msk.bf16.mxu1 %vm4316_vm4, %v4314_v49  ;;  %v971_v26 = vpop.f32.mrf.mxu1 }
 0x18c   : > { %846 = vrot.lane.b32.xlu1 %v816_v1, %s4311_s22  ;;  %998 = vrot.lane.b32.xlu0 %v3905_v19, %s4317_s19  ;;  %v3910_v27 = vpop.f32.mrf.mxu1 }
 0x18e   : > { %v974_v28 = vpop.f32.mrf.mxu1 }
 0x190   : > { %1000 = vrot.lane.b32.xlu1 %v3906_v21, %s4317_s19  ;;  %994 = vrot.lane.b32.xlu0 %v955_v15, %s4317_s19 }
 0x191   : > { %3950 = vmatmul.mubr.msk.bf16.vlgmr.msra.gmra.mxu1 %vm1071_vm2, %v4163_v20 }
 0x192   : > { %3954 = vmatpush3.bf16.msra.mxu1 %v4571_v44  ;;  %3955 = vmatprep.mubr.msk.bf16.mxu1 %vm4316_vm4, %v4314_v49 }
 0x193   : > { %3967 = vmatprep.subr.bf16.mxu1 %v4521_v24 }
 0x194   : > { %996 = vrot.lane.b32.xlu1 %v958_v22, %s4317_s19  ;;  %1002 = vrot.lane.b32.xlu0 %v971_v26, %s4317_s19 }
 0x198   : > { %1004 = vrot.lane.b32.xlu1 %v974_v28, %s4317_s19  ;;  %1006 = vrot.lane.b32.xlu0 %v3909_v23, %s4317_s19 }
 0x19c   : > { %1008 = vrot.lane.b32.xlu1 %v3910_v27, %s4317_s19 }
 0x1de   : > { %v683_v37 = vpop.permute.xlu0 %682 }
 0x1df   : > { %705 = vst.msk [vmem:[%s4576_s24 + $0x10] sm:$0xff] %vm702_vm5, %v683_v37 }
 0x1e2   : > { %v685_v38 = vpop.permute.xlu1 %684  ;;  %v841_v39 = vpop.permute.xlu0 %840 }
 0x1e3   : > { %706 = vst.msk [vmem:[%s4576_s24 + $0x18] sm:$0xff] %vm702_vm5, %v685_v38 }
 0x1e4   : > { %863 = vst.msk [vmem:[%s4576_s24 + $0x10] sm:$0xff] %vm860_vm6, %v841_v39 }
 0x1e6   : > { %v679_v40 = vpop.permute.xlu0 %678  ;;  %v843_v41 = vpop.permute.xlu1 %842 }
 0x1e7   : > { %703 = vst.msk [vmem:[%s4576_s24] sm:$0xff] %vm702_vm5, %v679_v40 }
 0x1e8   : > { %864 = vst.msk [vmem:[%s4576_s24 + $0x18] sm:$0xff] %vm860_vm6, %v843_v41 }
 0x1ea   : > { %v837_v42 = vpop.permute.xlu0 %836  ;;  %v681_v43 = vpop.permute.xlu1 %680 }
 0x1eb   : > { %861 = vst.msk [vmem:[%s4576_s24] sm:$0xff] %vm860_vm6, %v837_v42 }
 0x1ec   : > { %704 = vst.msk [vmem:[%s4576_s24 + $0x8] sm:$0xff] %vm702_vm5, %v681_v43 }
 0x1ee   : > { %v691_v44 = vpop.permute.xlu0 %690  ;;  %v839_v45 = vpop.permute.xlu1 %838 }
 0x1ef   : > { %709 = vst.msk [vmem:[%s4576_s24 + $0x30] sm:$0xff] %vm702_vm5, %v691_v44 }
 0x1f0   : > { %862 = vst.msk [vmem:[%s4576_s24 + $0x8] sm:$0xff] %vm860_vm6, %v839_v45 }
 0x1f2   : > { %v693_v46 = vpop.permute.xlu1 %692  ;;  %v849_v47 = vpop.permute.xlu0 %848 }
 0x1f3   : > { %710 = vst.msk [vmem:[%s4576_s24 + $0x38] sm:$0xff] %vm702_vm5, %v693_v46 }
 0x1f4   : > { %867 = vst.msk [vmem:[%s4576_s24 + $0x30] sm:$0xff] %vm860_vm6, %v849_v47 }
 0x1f6   : > { %v687_v48 = vpop.permute.xlu0 %686  ;;  %v851_v50 = vpop.permute.xlu1 %850 }
 0x1f7   : > { %707 = vst.msk [vmem:[%s4576_s24 + $0x20] sm:$0xff] %vm702_vm5, %v687_v48 }
 0x1f8   : > { %868 = vst.msk [vmem:[%s4576_s24 + $0x38] sm:$0xff] %vm860_vm6, %v851_v50 }
 0x1fa   : > { %v845_v51 = vpop.permute.xlu0 %844  ;;  %v689_v52 = vpop.permute.xlu1 %688 }
 0x1fb   : > { %865 = vst.msk [vmem:[%s4576_s24 + $0x20] sm:$0xff] %vm860_vm6, %v845_v51 }
 0x1fc   : > { %708 = vst.msk [vmem:[%s4576_s24 + $0x28] sm:$0xff] %vm702_vm5, %v689_v52 }
 0x1fe   : > { %v847_v53 = vpop.permute.xlu1 %846  ;;  %v999_v54 = vpop.permute.xlu0 %998 }
 0x1ff   : > { %866 = vst.msk [vmem:[%s4576_s24 + $0x28] sm:$0xff] %vm860_vm6, %v847_v53 }
 0x200   : > { %1021 = vst.msk [vmem:[%s4576_s24 + $0x10] sm:$0xff] %vm1018_vm7, %v999_v54 }
 0x202   : > { %v1001_v55 = vpop.permute.xlu1 %1000  ;;  %v995_v56 = vpop.permute.xlu0 %994 }
 0x203   : > { %1022 = vst.msk [vmem:[%s4576_s24 + $0x18] sm:$0xff] %vm1018_vm7, %v1001_v55  ;;  %1019 = vst.msk [vmem:[%s4576_s24] sm:$0xff] %vm1018_vm7, %v995_v56 }
 0x206   : > { %v997_v57 = vpop.permute.xlu1 %996  ;;  %v1003_v58 = vpop.permute.xlu0 %1002 }
 0x207   : > { %1020 = vst.msk [vmem:[%s4576_s24 + $0x8] sm:$0xff] %vm1018_vm7, %v997_v57  ;;  %1023 = vst.msk [vmem:[%s4576_s24 + $0x20] sm:$0xff] %vm1018_vm7, %v1003_v58 }
 0x20a   : > { %v1005_v59 = vpop.permute.xlu1 %1004  ;;  %v1007_v60 = vpop.permute.xlu0 %1006 }
 0x20b   : > { %1024 = vst.msk [vmem:[%s4576_s24 + $0x28] sm:$0xff] %vm1018_vm7, %v1005_v59  ;;  %1025 = vst.msk [vmem:[%s4576_s24 + $0x30] sm:$0xff] %vm1018_vm7, %v1007_v60 }
 0x20e   : > { %v1009_v61 = vpop.permute.xlu1 %1008 }
 0x20f   : > { %1026 = vst.msk [vmem:[%s4576_s24 + $0x38] sm:$0xff] %vm1018_vm7, %v1009_v61 }
 0x241   : > { %v3927_v63 = vpop.f32.mrf.mxu1 }
 0x242   : > { %v1247_v0 = vadd.f32 %v3927_v63, %v4720_v62 }
 0x243   : > { %v1207_v1 = vpop.f32.mrf.mxu1 }
 0x244   : > { %v1245_v2 = vadd.f32 %v4720_v62, %v1207_v1  ;;  %v1263_v3 = vmul.f32 0.70710677, %v1247_v0  ;;  %v1255_v50 = vmul.f32 0.5, %v1247_v0 }
 0x245   : > { %v3928_v4 = vpop.f32.mrf.mxu1 }
 0x246   : > { %v1261_v5 = vmul.f32 0.70710677, %v1245_v2  ;;  %v1248_v6 = vadd.f32 %v3928_v4, %v4720_v62  ;;  %v1253_v46 = vmul.f32 0.5, %v1245_v2 }
 0x247   : > { %v1210_v7 = vpop.f32.mrf.mxu1 }
 0x248   : > { %4173 = verf.f32 %v1261_v5  ;;  %v1264_v8 = vmul.f32 0.70710677, %v1248_v6  ;;  %v1246_v9 = vadd.f32 %v4720_v62, %v1210_v7  ;;  %v1256_v45 = vmul.f32 0.5, %v1248_v6 }
 0x249   : > { %4175 = verf.f32 %v1263_v3  ;;  %v3931_v10 = vpop.f32.mrf.mxu1 }
 0x24a   : > { %4177 = verf.f32 %v1264_v8  ;;  %v1262_v11 = vmul.f32 0.70710677, %v1246_v9  ;;  %v1251_v12 = vadd.f32 %v3931_v10, %v4720_v62  ;;  %v1254_v47 = vmul.f32 0.5, %v1246_v9 }
 0x24b   : > { %v1223_v13 = vpop.f32.mrf.mxu1 }
 0x24c   : > { %4179 = verf.f32 %v1262_v11  ;;  %v1249_v14 = vadd.f32 %v4720_v62, %v1223_v13  ;;  %v1267_v16 = vmul.f32 0.70710677, %v1251_v12  ;;  %v1259_v4 = vmul.f32 0.5, %v1251_v12  ;;  %v1572_v11 = vld [vmem:[#allocation2 + $0x18] sm:$0x1] }
 0x24d   : > { %v3932_v17 = vpop.f32.mrf.mxu1  ;;  %v1604_v12 = vld [vmem:[#allocation2 + $0x1c] sm:$0x1] }
 0x24e   : > { %v1265_v18 = vmul.f32 0.70710677, %v1249_v14  ;;  %v1252_v19 = vadd.f32 %v3932_v17, %v4720_v62  ;;  %v1257_v2 = vmul.f32 0.5, %v1249_v14  ;;  %v1566_v14 = vld [vmem:[#allocation2 + $0x8] sm:$0x1] }
 0x24f   : > { %v1226_v15 = vpop.f32.mrf.mxu1  ;;  %v1567_v17 = vsel %vm4743_vm10, 0, %v1566_v14 }
 0x250   : > { %4181 = verf.f32 %v1265_v18  ;;  %v1268_v20 = vmul.f32 0.70710677, %v1252_v19  ;;  %v1250_v21 = vadd.f32 %v4720_v62, %v1226_v15  ;;  %v1260_v1 = vmul.f32 0.5, %v1252_v19  ;;  %1568 = vst [vmem:[#allocation2 + $0x8] sm:$0x1] %v1567_v17 }
 0x251   : > { %4183 = verf.f32 %v1267_v16  ;;  %v1449_v22 = vpop.f32.mrf.mxu1  ;;  %v1598_v16 = vld [vmem:[#allocation2 + $0xc] sm:$0x1]  ;;  %v1575_v19 = vld [vmem:[#allocation2 + $0x20] sm:$0x1]  ;;  %v1607_v15 = vld [vmem:[#allocation2 + $0x24] sm:$0x1] }
 0x252   : > { %4185 = verf.f32 %v1268_v20  ;;  %v1266_v23 = vmul.f32 0.70710677, %v1250_v21  ;;  %v1258_v0 = vmul.f32 0.5, %v1250_v21  ;;  %v1599_v18 = vsel %vm4750_vm12, 0, %v1598_v16 }
 0x253   : > { %v3951_v26 = vpop.f32.mrf.mxu1  ;;  %1600 = vst [vmem:[#allocation2 + $0xc] sm:$0x1] %v1599_v18  ;;  %v1576_v20 = vsel %vm4743_vm10, 0, %v1575_v19  ;;  %v1608_v21 = vsel %vm4750_vm12, 0, %v1607_v15 }
 0x254   : > { %4187 = verf.f32 %v1266_v23  ;;  %1577 = vst [vmem:[#allocation2 + $0x20] sm:$0x1] %v1576_v20  ;;  %1609 = vst [vmem:[#allocation2 + $0x24] sm:$0x1] %v1608_v21  ;;  %v1601_v23 = vld [vmem:[#allocation2 + $0x14] sm:$0x1] }
 0x255   : > { %v4174_v27 = vpop.eup %4173  ;;  %v1452_v28 = vpop.f32.mrf.mxu1 }
 0x256   : > { %v4176_v37 = vpop.eup %4175  ;;  %v1456_v38 = vpack.c.bf16 %v1452_v28, %v1449_v22  ;;  %v1277_v41 = vadd.f32 1.0, %v4174_v27  ;;  %v1569_v22 = vld [vmem:[#allocation2 + $0x10] sm:$0x1]  ;;  %v1602_v27 = vsel %vm4750_vm12, 0, %v1601_v23  ;;  %v1584_v28 = vld [vmem:[#allocation2 + $0x38] sm:$0x1] }
 0x257   : > { %v4178_v39 = vpop.eup %4177  ;;  %v3952_v40 = vpop.f32.mrf.mxu1  ;;  %v1279_v44 = vadd.f32 1.0, %v4176_v37  ;;  %v1570_v26 = vsel %vm4743_vm10, 0, %v1569_v22  ;;  %1603 = vst [vmem:[#allocation2 + $0x14] sm:$0x1] %v1602_v27  ;;  %v1616_v37 = vld [vmem:[#allocation2 + $0x3c] sm:$0x1] }
 0x258   : > { %v1280_v42 = vadd.f32 1.0, %v4178_v39  ;;  %3956 = vmatmul.mubr.msk.bf16.vlgmr.msra.gmra.mxu1 %vm544_vm3, %v1456_v38  ;;  %v1285_v52 = vmul.f32 %v1277_v41, %v1253_v46  ;;  %1571 = vst [vmem:[#allocation2 + $0x10] sm:$0x1] %v1570_v26  ;;  %v1585_v38 = vsel %vm4743_vm10, 0, %v1584_v28  ;;  %v1617_v39 = vsel %vm4750_vm12, 0, %v1616_v37 }
 0x259   : > { %v4180_v43 = vpop.eup %4179  ;;  %3968 = vmatpush3.bf16.msra.mxu1 %v4521_v24  ;;  %v1287_v55 = vmul.f32 %v1279_v44, %v1255_v50  ;;  %1586 = vst [vmem:[#allocation2 + $0x38] sm:$0x1] %v1585_v38  ;;  %1618 = vst [vmem:[#allocation2 + $0x3c] sm:$0x1] %v1617_v39  ;;  %v1578_v40 = vld [vmem:[#allocation2 + $0x28] sm:$0x1] }
 0x25a   : > { %v1278_v48 = vadd.f32 1.0, %v4180_v43  ;;  %3987 = vmatprep.subr.bf16.mxu1 %v4644_v30  ;;  %v1288_v51 = vmul.f32 %v1280_v42, %v1256_v45  ;;  %v1610_v41 = vld [vmem:[#allocation2 + $0x2c] sm:$0x1]  ;;  %v1579_v42 = vsel %vm4743_vm10, 0, %v1578_v40  ;;  %v1587_v44 = vld [vmem:[#allocation2 + $0x40] sm:$0x1] }
 0x25b   : > { %v1611_v43 = vsel %vm4750_vm12, 0, %v1610_v41  ;;  %1580 = vst [vmem:[#allocation2 + $0x28] sm:$0x1] %v1579_v42  ;;  %v1588_v45 = vsel %vm4743_vm10, 0, %v1587_v44  ;;  %v1619_v46 = vld [vmem:[#allocation2 + $0x44] sm:$0x1] }
 0x25c   : > { %v1286_v53 = vmul.f32 %v1278_v48, %v1254_v47  ;;  %v1298_v59 = vpack.c.bf16 %v1288_v51, %v1287_v55  ;;  %1612 = vst [vmem:[#allocation2 + $0x2c] sm:$0x1] %v1611_v43  ;;  %1589 = vst [vmem:[#allocation2 + $0x40] sm:$0x1] %v1588_v45  ;;  %v1620_v47 = vsel %vm4750_vm12, 0, %v1619_v46 }
 0x25d   : > { %v4182_v54 = vpop.eup %4181  ;;  %1621 = vst [vmem:[#allocation2 + $0x44] sm:$0x1] %v1620_v47  ;;  %v1581_v48 = vld [vmem:[#allocation2 + $0x30] sm:$0x1]  ;;  %v1613_v51 = vld [vmem:[#allocation2 + $0x34] sm:$0x1] }
 0x25e   : > { %v4184_v56 = vpop.eup %4183  ;;  %v1297_v57 = vpack.c.bf16 %v1286_v53, %v1285_v52  ;;  %v1281_v60 = vadd.f32 1.0, %v4182_v54  ;;  %v1582_v50 = vsel %vm4743_vm10, 0, %v1581_v48  ;;  %v1614_v52 = vsel %vm4750_vm12, 0, %v1613_v51  ;;  %v1740_v26 = vld [vmem:[#allocation2 + $0x8] sm:$0xf] }
 0x25f   : > { %v4186_v58 = vpop.eup %4185  ;;  %v1283_v63 = vadd.f32 1.0, %v4184_v56  ;;  %1583 = vst [vmem:[#allocation2 + $0x30] sm:$0x1] %v1582_v50  ;;  %1615 = vst [vmem:[#allocation2 + $0x34] sm:$0x1] %v1614_v52 }
 0x260   : > { %v1284_v61 = vadd.f32 1.0, %v4186_v58  ;;  %3937 = vmatprep.mubr.msk.bf16.mxu0 %vm1071_vm2, %v1297_v57  ;;  %v1289_v6 = vmul.f32 %v1281_v60, %v1257_v2  ;;  %v1743_v27 = vld [vmem:[#allocation2 + $0xc] sm:$0x1] }
 0x261   : > { %v4188_v24 = vpop.eup %4187  ;;  %3938 = vmatmul.mubr.msk.bf16.vlgmr.msra.gmra.mxu0 %vm1071_vm2, %v1298_v59  ;;  %v1291_v8 = vmul.f32 %v1283_v63, %v1259_v4 }
 0x262   : > { %v1282_v3 = vadd.f32 1.0, %v4188_v24  ;;  %3960 = vmatpush3.bf16.msra.mxu0 %v4653_v33  ;;  %v1292_v5 = vmul.f32 %v1284_v61, %v1260_v1  ;;  %v4789_v61 = vld [vmem:[%s5543_s7] ss:$0 sm:$0xff] }
 0x263   : > { %3961 = vmatprep.subr.bf16.mxu0 %v4314_v49 }
 0x264   : > { %v1290_v7 = vmul.f32 %v1282_v3, %v1258_v0  ;;  %v1300_v10 = vpack.c.bf16 %v1292_v5, %v1291_v8 }
 0x266   : > { %v1299_v9 = vpack.c.bf16 %v1290_v7, %v1289_v6  ;;  %3962 = vmatpush3.bf16.msra.mxu0 %v4662_v35  ;;  %v1573_v35 = vsel %vm4743_vm10, 0, %v1572_v11 }
 0x267   : > { %3977 = vmatprep.subr.bf16.mxu0 %v4642_v29  ;;  %1574 = vst [vmem:[#allocation2 + $0x18] sm:$0x1] %v1573_v35 }
 0x268   : > { %3941 = vmatprep.mubr.msk.bf16.mxu0 %vm1071_vm2, %v1299_v9 }
 0x269   : > { %3942 = vmatmul.mubr.msk.bf16.gmra.mxu0 %vm1071_vm2, %v1300_v10 }
 0x26a   : > { %3963 = vmatprep.mubr.msk.bf16.mxu0 %vm4316_vm4, %v4314_v49  ;;  %v1605_v49 = vsel %vm4750_vm12, 0, %v1604_v12  ;;  %vm2371_vm4 = vcmask 1046532  }
 0x26b   : > { %1606 = vst [vmem:[#allocation2 + $0x1c] sm:$0x1] %v1605_v49 }
 0x26e   : > { %v1752_v9 = vld [vmem:[#allocation2 + $0x18] sm:$0xf] }
 0x272   : > { %v1755_v14 = vld [vmem:[#allocation2 + $0x1c] sm:$0x1] }
 0x318   : > { %v1494_v53 = vpop.f32.mrf.mxu1 }
 0x319   : > { %v1501_v54 = vadd.f32 %v4720_v62, %v1494_v53  ;;  %v1758_v53 = vld [vmem:[#allocation2 + $0x20] sm:$0xf] }
 0x31a   : > { %v3957_v55 = vpop.f32.mrf.mxu1 }
 0x31b   : > { %v1505_v56 = vmul.f32 0.70710677, %v1501_v54  ;;  %v1503_v12 = vmul.f32 0.5, %v1501_v54  ;;  %v1761_v54 = vld [vmem:[#allocation2 + $0x24] sm:$0x1] }
 0x31c   : > { %v1497_v57 = vpop.f32.mrf.mxu1 }
 0x31d   : > { %4189 = verf.f32 %v1505_v56  ;;  %v1502_v58 = vadd.f32 %v4720_v62, %v1497_v57 }
 0x31e   : > { %v3958_v59 = vpop.f32.mrf.mxu1 }
 0x31f   : > { %v1506_v60 = vmul.f32 0.70710677, %v1502_v58  ;;  %v1504_v35 = vmul.f32 0.5, %v1502_v58 }
 0x321   : > { %4191 = verf.f32 %v1506_v60  ;;  %v3939_v24 = vpop.f32.mrf.mxu0 }
 0x322   : > { %v1399_v63 = vadd.f32 %v3939_v24, %v4789_v61  ;;  %v1746_v24 = vld [vmem:[#allocation2 + $0x10] sm:$0xf] }
 0x323   : > { %v1359_v1 = vpop.f32.mrf.mxu0 }
 0x324   : > { %v3772_v2 = vpack.c.bf16 %v1399_v63, %v1399_v63  ;;  %v1397_v0 = vadd.f32 %v4789_v61, %v1359_v1 }
 0x325   : > { %v3940_v3 = vpop.f32.mrf.mxu0 }
 0x326   : > { %v1674_v4 = vshrl.u32 %v3772_v2, 16  ;;  %v3770_v5 = vpack.c.bf16 %v1397_v0, %v1397_v0  ;;  %v1400_v62 = vadd.f32 %v3940_v3, %v4789_v61  ;;  %v1677_v8 = vshll.u32 %v3772_v2, 16 }
 0x327   : > { %v1362_v6 = vpop.f32.mrf.mxu0 }
 0x328   : > { %v1676_v7 = vrot.slane %v1674_v4, 7  ;;  %v1658_v10 = vshrl.u32 %v3770_v5, 16  ;;  %v3773_v11 = vpack.c.bf16 %v1400_v62, %v1400_v62  ;;  %v1661_v16 = vshll.u32 %v3770_v5, 16 }
 0x329   : > { %v1398_v17 = vadd.f32 %v4789_v61, %v1362_v6  ;;  %v3943_v18 = vpop.f32.mrf.mxu0 }
 0x32a   : > { %v4190_v19 = vpop.eup %4189  ;;  %v1679_v15 = vor.u32 %v1677_v8, %v1676_v7  ;;  %v1680_v20 = vrot.slane %v1676_v7, 4  ;;  %v1660_v21 = vrot.slane %v1658_v10, 7  ;;  %v1682_v22 = vshrl.u32 %v3773_v11, 16  ;;  %v1749_v7 = vld [vmem:[#allocation2 + $0x14] sm:$0x1] }
 0x32b   : > { %v1509_v23 = vadd.f32 1.0, %v4190_v19  ;;  %v1685_v28 = vshll.u32 %v3773_v11, 16  ;;  %v3771_v37 = vpack.c.bf16 %v1398_v17, %v1398_v17  ;;  %v1403_v38 = vadd.f32 %v3943_v18, %v4789_v61  ;;  %v1375_v39 = vpop.f32.mrf.mxu0 }
 0x32c   : > { %v1753_v40 = vsel %vm4795_vm14, %v1679_v15, %v1752_v9  ;;  %v1756_v41 = vsel %vm4743_vm10, %v1680_v20, %v1755_v14  ;;  %v1663_v42 = vor.u32 %v1661_v16, %v1660_v21  ;;  %v1664_v43 = vrot.slane %v1660_v21, 4  ;;  %v1776_v16 = vld [vmem:[#allocation2 + $0x38] sm:$0xf] }
 0x32d   : > { %v1511_v44 = vmul.f32 %v1509_v23, %v1503_v12  ;;  %1754 = vst [vmem:[#allocation2 + $0x18] sm:$0xf] %v1753_v40  ;;  %1757 = vst [vmem:[#allocation2 + $0x1c] sm:$0x1] %v1756_v41  ;;  %v1684_v45 = vrot.slane %v1682_v22, 7  ;;  %v1666_v46 = vshrl.u32 %v3771_v37, 16  ;;  %v3944_v48 = vpop.f32.mrf.mxu0  ;;  %v3776_v55 = vpack.c.bf16 %v1403_v38, %v1403_v38 }
 0x32e   : > { %v1669_v47 = vshll.u32 %v3771_v37, 16  ;;  %v4192_v50 = vpop.eup %4191  ;;  %v1741_v51 = vsel %vm4795_vm14, %v1663_v42, %v1740_v26  ;;  %v1744_v52 = vsel %vm4743_vm10, %v1664_v43, %v1743_v27  ;;  %v1401_v56 = vadd.f32 %v4789_v61, %v1375_v39  ;;  %v1764_v22 = vld [vmem:[#allocation2 + $0x28] sm:$0xf]  ;;  %v1767_v26 = vld [vmem:[#allocation2 + $0x2c] sm:$0x1] }
 0x32f   : > { %v1510_v57 = vadd.f32 1.0, %v4192_v50  ;;  %1742 = vst [vmem:[#allocation2 + $0x8] sm:$0xf] %v1741_v51  ;;  %1745 = vst [vmem:[#allocation2 + $0xc] sm:$0x1] %v1744_v52  ;;  %v1687_v58 = vor.u32 %v1685_v28, %v1684_v45  ;;  %v1688_v59 = vrot.slane %v1684_v45, 4  ;;  %v1404_v0 = vadd.f32 %v3944_v48, %v4789_v61  ;;  %v1378_v3 = vpop.f32.mrf.mxu0 }
 0x330   : > { %v1668_v60 = vrot.slane %v1666_v46, 7  ;;  %v1706_v63 = vshrl.u32 %v3776_v55, 16  ;;  %v1709_v1 = vshll.u32 %v3776_v55, 16  ;;  %v3774_v2 = vpack.c.bf16 %v1401_v56, %v1401_v56  ;;  %v1782_v45 = vld [vmem:[#allocation2 + $0x40] sm:$0xf] }
 0x331   : > { %v1512_v4 = vmul.f32 %v1510_v57, %v1504_v35  ;;  %v1759_v5 = vsel %vm4795_vm14, %v1687_v58, %v1758_v53  ;;  %v1762_v62 = vsel %vm4743_vm10, %v1688_v59, %v1761_v54  ;;  %v1779_v35 = vld [vmem:[#allocation2 + $0x3c] sm:$0x1]  ;;  %v3777_v17 = vpack.c.bf16 %v1404_v0, %v1404_v0  ;;  %v1785_v51 = vld [vmem:[#allocation2 + $0x44] sm:$0x1]  ;;  %v1770_v52 = vld [vmem:[#allocation2 + $0x30] sm:$0xf] }
 0x332   : > { %v1671_v6 = vor.u32 %v1669_v47, %v1668_v60  ;;  %1760 = vst [vmem:[#allocation2 + $0x20] sm:$0xf] %v1759_v5  ;;  %1763 = vst [vmem:[#allocation2 + $0x24] sm:$0x1] %v1762_v62  ;;  %v1672_v8 = vrot.slane %v1668_v60, 4  ;;  %v1708_v9 = vrot.slane %v1706_v63, 7  ;;  %v1402_v18 = vadd.f32 %v4789_v61, %v1378_v3 }
 0x333   : > { %v1690_v10 = vshrl.u32 %v3774_v2, 16  ;;  %v1693_v11 = vshll.u32 %v3774_v2, 16  ;;  %v1513_v12 = vpack.c.bf16 %v1512_v4, %v1511_v44  ;;  %v1714_v27 = vshrl.u32 %v3777_v17, 16 }
 0x334   : > { %v1747_v14 = vsel %vm4795_vm14, %v1671_v6, %v1746_v24  ;;  %v1750_v19 = vsel %vm4743_vm10, %v1672_v8, %v1749_v7  ;;  %v1711_v15 = vor.u32 %v1709_v1, %v1708_v9  ;;  %v1712_v20 = vrot.slane %v1708_v9, 4  ;;  %v4820_v23 = vld [vmem:[#allocation2 + $0x18] sm:$0xf] }
 0x335   : > { %1748 = vst [vmem:[#allocation2 + $0x10] sm:$0xf] %v1747_v14  ;;  %v1692_v21 = vrot.slane %v1690_v10, 7  ;;  %1751 = vst [vmem:[#allocation2 + $0x14] sm:$0x1] %v1750_v19  ;;  %v1717_v28 = vshll.u32 %v3777_v17, 16  ;;  %v3775_v37 = vpack.c.bf16 %v1402_v18, %v1402_v18  ;;  %3964 = vmatmul.mubr.msk.bf16.vlgmr.msra.gmra.mxu0 %vm1071_vm2, %v1513_v12 }
 0x336   : > { %v1777_v38 = vsel %vm4795_vm14, %v1711_v15, %v1776_v16  ;;  %v1780_v39 = vsel %vm4743_vm10, %v1712_v20, %v1779_v35  ;;  %3978 = vmatpush3.bf16.msra.mxu0 %v4642_v29  ;;  %v4828_v42 = vld [vmem:[#allocation2 + $0x8] sm:$0xf]  ;;  %v4830_v43 = vld [vmem:[#allocation2 + $0xc] sm:$0x1]  ;;  %v1716_v44 = vrot.slane %v1714_v27, 7  ;;  %v1916_v48 = vshrl.u32 %v4820_v23, 16 }
 0x337   : > { %v1695_v40 = vor.u32 %v1693_v11, %v1692_v21  ;;  %v1696_v41 = vrot.slane %v1692_v21, 4  ;;  %1778 = vst [vmem:[#allocation2 + $0x38] sm:$0xf] %v1777_v38  ;;  %1781 = vst [vmem:[#allocation2 + $0x3c] sm:$0x1] %v1780_v39  ;;  %v1698_v46 = vshrl.u32 %v3775_v37, 16  ;;  %3997 = vmatprep.subr.bf16.mxu0 %v4530_v25 }
 0x338   : > { %v1888_v47 = vshrl.u32 %v4828_v42, 16  ;;  %v1891_v53 = vshll.u32 %v4828_v42, 16  ;;  %v1897_v54 = vshll.u32 %v4830_v43, 16  ;;  %v1719_v55 = vor.u32 %v1717_v28, %v1716_v44  ;;  %v1773_v25 = vld [vmem:[#allocation2 + $0x34] sm:$0x1] }
 0x339   : > { %v1765_v50 = vsel %vm4795_vm14, %v1695_v40, %v1764_v22  ;;  %v1768_v29 = vsel %vm4743_vm10, %v1696_v41, %v1767_v26  ;;  %v1720_v56 = vrot.slane %v1716_v44, 4  ;;  %v1700_v57 = vrot.slane %v1698_v46, 7  ;;  %v4841_v59 = vld [vmem:[#allocation2 + $0x20] sm:$0xf]  ;;  %v4855_v10 = vld [vmem:[#allocation2 + $0x1c] sm:$0x1] }
 0x33a   : > { %1766 = vst [vmem:[#allocation2 + $0x28] sm:$0xf] %v1765_v50  ;;  %1769 = vst [vmem:[#allocation2 + $0x2c] sm:$0x1] %v1768_v29  ;;  %v1701_v58 = vshll.u32 %v3775_v37, 16  ;;  %v3698_v60 = vcombine.low %v4820_v23, %v4841_v59  ;;  %v1890_v24 = vrot.slane %v1888_v47, 4  ;;  %v1783_v2 = vsel %vm4795_vm14, %v1719_v55, %v1782_v45 }
 0x33b   : > { %v1893_v63 = vrot.slane %v1891_v53, 5  ;;  %v1899_v1 = vrot.slane %v1897_v54, 5  ;;  %v1786_v0 = vsel %vm4743_vm10, %v1720_v56, %v1785_v51  ;;  %v1704_v4 = vrot.slane %v1700_v57, 4  ;;  %1784 = vst [vmem:[#allocation2 + $0x40] sm:$0xf] %v1783_v2 }
 0x33c   : > { %v1703_v3 = vor.u32 %v1701_v58, %v1700_v57  ;;  %v1849_v5 = vld [vmem:[#allocation2 + $0x10] sm:$0xf]  ;;  %1787 = vst [vmem:[#allocation2 + $0x44] sm:$0x1] %v1786_v0  ;;  %v4853_v9 = vld [vmem:[#allocation2 + $0x14] sm:$0x1] }
 0x33d   : > { %v1902_v62 = vshrl.u32 %v1849_v5, 16  ;;  %v1905_v6 = vshll.u32 %v1849_v5, 16  ;;  %v3697_v7 = vcombine.low %v4828_v42, %v1849_v5  ;;  %v4851_v8 = vcombine.low %v1849_v5, %v4820_v23  ;;  %v4861_v14 = vld [vmem:[#allocation2 + $0x24] sm:$0x1] }
 0x33e   : > { %v1771_v11 = vsel %vm4795_vm14, %v1703_v3, %v1770_v52  ;;  %v1774_v12 = vsel %vm4743_vm10, %v1704_v4, %v1773_v25  ;;  %v1894_v16 = vor.u32 %v1893_v63, %v1890_v24  ;;  %v1911_v35 = vshll.u32 %v4853_v9, 16  ;;  %v4869_v27 = vld [vmem:[#allocation2 + $0x38] sm:$0xf]  ;;  %v4884_v41 = vld [vmem:[%s5544_s8 + $0x4] ss:$8 sps:$4 sm:$0xff]  }
 0x33f   : > { %1772 = vst [vmem:[#allocation2 + $0x30] sm:$0xf] %v1771_v11  ;;  %1775 = vst [vmem:[#allocation2 + $0x34] sm:$0x1] %v1774_v12  ;;  %3979 = vmatprep.mubr.msk.bf16.mxu0 %vm544_vm3, %v3697_v7  ;;  %v1904_v17 = vrot.slane %v1902_v62, 4  ;;  %v1907_v18 = vrot.slane %v1905_v6, 5 }
 0x340   : > { %v1918_v19 = vrot.slane %v1916_v48, 4  ;;  %v1919_v15 = vshll.u32 %v4820_v23, 16  ;;  %3980 = vmatmul.mubr.msk.bf16.vlgmr.msra.gmra.mxu0 %vm544_vm3, %v3698_v60  ;;  %v1895_v20 = vrot.slane %v1894_v16, 4  ;;  %v1913_v21 = vrot.slane %v1911_v35, 5 }
 0x341   : > { %v1925_v22 = vshll.u32 %v4855_v10, 16  ;;  %v1930_v26 = vshrl.u32 %v4841_v59, 16  ;;  %v4871_v28 = vld [vmem:[#allocation2 + $0x28] sm:$0xf]  ;;  %v1908_v38 = vor.u32 %v1907_v18, %v1904_v17  ;;  %v1933_v39 = vshll.u32 %v4841_v59, 16  ;;  %3998 = vmatpush3.bf16.msra.mxu0 %v4884_v41 }
 0x342   : > { %v1921_v23 = vrot.slane %v1919_v15, 5  ;;  %v1939_v40 = vshll.u32 %v4861_v14, 16  ;;  %v1944_v44 = vshrl.u32 %v4871_v28, 16  ;;  %v1947_v45 = vshll.u32 %v4871_v28, 16  ;;  %4017 = vmatprep.subr.bf16.mxu0 %v4648_v32  ;;  %v4894_v53 = vld [vmem:[#allocation2 + $0x40] sm:$0xf] }
 0x343   : > { %v4891_v46 = vsel %vm4875_vm1, %v1895_v20, %v1899_v1  ;;  %v1927_v47 = vrot.slane %v1925_v22, 5  ;;  %v1909_v48 = vrot.slane %v1908_v38, 4  ;;  %v1932_v29 = vrot.slane %v1930_v26, 4  ;;  %v4901_v24 = vld [vmem:[#allocation2 + $0x2c] sm:$0x1] }
 0x344   : > { %v1922_v50 = vor.u32 %v1921_v23, %v1918_v19  ;;  %v1935_v51 = vrot.slane %v1933_v39, 5  ;;  %v1941_v52 = vrot.slane %v1939_v40, 5  ;;  %v1972_v54 = vshrl.u32 %v4869_v27, 16  ;;  %v4921_v17 = vld [vmem:[#allocation2 + $0x3c] sm:$0x1] }
 0x345   : > { %v1975_v55 = vshll.u32 %v4869_v27, 16  ;;  %v1946_v56 = vrot.slane %v1944_v44, 4  ;;  %v1914_v57 = vsel %vm4875_vm1, %v1909_v48, %v1913_v21  ;;  %v1986_v60 = vshrl.u32 %v4894_v53, 16  ;;  %v4930_v26 = vld [vmem:[#allocation2 + $0x44] sm:$0x1] }
 0x346   : > { %v1923_v58 = vrot.slane %v1922_v50, 4  ;;  %v1936_v25 = vor.u32 %v1935_v51, %v1932_v29  ;;  %vm2370_vm2 = vcmask 1042432   ;;  %v4903_v63 = vld [vmem:[#allocation2 + $0x30] sm:$0xf]  ;;  %v3688_v1 = vcombine.low %v4891_v46, %v1914_v57  ;;  %v4909_v3 = vld [vmem:[#allocation2 + $0x34] sm:$0x1] }
 0x347   : > { %v1989_v2 = vshll.u32 %v4894_v53, 16  ;;  %v3700_v0 = vcombine.low %v4869_v27, %v4894_v53  ;;  %v1949_v4 = vrot.slane %v1947_v45, 5  ;;  %v1958_v5 = vshrl.u32 %v4903_v63, 16  ;;  %v1866_v23 = vld [vmem:[#allocation2 + $0x8] sm:$0xe]  ;;  %vm4946_vm8 = vmor %vm2370_vm2, %vm2371_vm4 }
 0x348   : > { %v1961_v62 = vshll.u32 %v4903_v63, 16  ;;  %v3699_v6 = vcombine.low %v4871_v28, %v4903_v63  ;;  %v1928_v7 = vsel %vm4875_vm1, %v1923_v58, %v1927_v47  ;;  %v1937_v11 = vrot.slane %v1936_v25, 4  ;;  %3969 = vmatprep.mubr.msk.bf16.mxu1 %vm544_vm3, %v3688_v1  ;;  %v1867_v47 = vld [vmem:[#allocation2 + $0x10] sm:$0xe]  ;;  %v1869_v1 = vld [vmem:[#allocation2 + $0x20] sm:$0xe] }
 0x349   : > { %v4918_v12 = vcombine.low %v1914_v57, %v1928_v7  ;;  %v1950_v16 = vor.u32 %v1949_v4, %v1946_v56  ;;  %v1953_v35 = vshll.u32 %v4901_v24, 16  ;;  %v1960_v18 = vrot.slane %v1958_v5, 4 }
 0x34a   : > { %3983 = vmatprep.mubr.msk.bf16.mxu0 %vm544_vm3, %v3699_v6  ;;  %v1963_v19 = vrot.slane %v1961_v62, 5  ;;  %v1967_v15 = vshll.u32 %v4909_v3, 16  ;;  %v1974_v20 = vrot.slane %v1972_v54, 4  ;;  %v4927_v21 = vsel %vm4875_vm1, %v1937_v11, %v1941_v52  ;;  %v1868_v52 = vld [vmem:[#allocation2 + $0x18] sm:$0xe] }
 0x34b   : > { %3984 = vmatmul.mubr.msk.bf16.gmra.mxu0 %vm544_vm3, %v3700_v0  ;;  %v1951_v22 = vrot.slane %v1950_v16, 4  ;;  %v1977_v38 = vrot.slane %v1975_v55, 5  ;;  %v3689_v39 = vcombine.low %v1928_v7, %v4927_v21  ;;  %v1955_v40 = vrot.slane %v1953_v35, 5  ;;  %v1870_v6 = vld [vmem:[#allocation2 + $0x28] sm:$0xe] }
 0x34c   : > { %v1964_v44 = vor.u32 %v1963_v19, %v1960_v18  ;;  %v1981_v45 = vshll.u32 %v4921_v17, 16  ;;  %v1969_v48 = vrot.slane %v1967_v15, 5  ;;  %v1988_v29 = vrot.slane %v1986_v60, 4 }
 0x34d   : > { %v1978_v50 = vor.u32 %v1977_v38, %v1974_v20  ;;  %v1991_v51 = vrot.slane %v1989_v2, 5  ;;  %3970 = vmatmul.mubr.msk.bf16.vlgmr.msra.gmra.mxu1 %vm544_vm3, %v3689_v39  ;;  %v1956_v54 = vsel %vm4875_vm1, %v1951_v22, %v1955_v40  ;;  %v1995_v55 = vshll.u32 %v4930_v26, 16 }
 0x34e   : > { %v1965_v56 = vrot.slane %v1964_v44, 4  ;;  %v3705_v57 = vrot.slane %v1866_v23, 9  ;;  %v2375_v0 = vrot.slane %v4830_v43, 5  ;;  %v3706_v4 = vrot.slane %v1867_v47, 9  ;;  %3988 = vmatpush3.bf16.msra.mxu1 %v4644_v30  ;;  %v1871_v30 = vld [vmem:[#allocation2 + $0x30] sm:$0xe] }
 0x34f   : > { %v1979_v58 = vrot.slane %v1978_v50, 4  ;;  %v1992_v25 = vor.u32 %v1991_v51, %v1988_v29  ;;  %v1983_v2 = vrot.slane %v1981_v45, 5  ;;  %v2379_v5 = vrot.slane %v4853_v9, 5  ;;  %4007 = vmatprep.subr.bf16.mxu1 %v4646_v31  ;;  %v1872_v23 = vld [vmem:[#allocation2 + $0x38] sm:$0xe] }
 0x350   : > { %v1970_v60 = vsel %vm4875_vm1, %v1965_v56, %v1969_v48  ;;  %v3707_v62 = vrot.slane %v1868_v52, 9  ;;  %v1997_v16 = vrot.slane %v1995_v55, 5  ;;  %v4954_v9 = vsel %vm4946_vm8, %v3705_v57, %v2375_v0  ;;  %v1595_v0 = vld [vmem:[#allocation2 + $0x4] sm:$0x1] }
 0x351   : > { %v3690_v7 = vcombine.low %v1956_v54, %v1970_v60  ;;  %v1993_v11 = vrot.slane %v1992_v25, 4  ;;  %v1984_v35 = vsel %vm4875_vm1, %v1979_v58, %v1983_v2  ;;  %v2380_v18 = vsel %vm4946_vm8, %v3706_v4, %v2379_v5 }
 0x352   : > { %v2383_v19 = vrot.slane %v4855_v10, 5  ;;  %v3708_v20 = vrot.slane %v1869_v1, 9  ;;  %v3709_v22 = vrot.slane %v1870_v6, 9  ;;  %v2391_v38 = vrot.slane %v4901_v24, 5  ;;  %v1563_v1 = vld [vmem:[#allocation2] sm:$0x1] }
 0x353   : > { %3973 = vmatprep.mubr.msk.bf16.mxu1 %vm544_vm3, %v3690_v7  ;;  %v4962_v15 = vsel %vm4875_vm1, %v1993_v11, %v1997_v16  ;;  %v2387_v44 = vrot.slane %v4861_v14, 5  ;;  %v3710_v45 = vrot.slane %v1871_v30, 9  ;;  %v3713_v10 = vcombine.low %v4954_v9, %v2380_v18 }
 0x354   : > { %v3691_v39 = vcombine.low %v1984_v35, %v4962_v15  ;;  %v2384_v40 = vsel %vm4946_vm8, %v3707_v62, %v2383_v19  ;;  %v2395_v48 = vrot.slane %v4909_v3, 5  ;;  %v2392_v24 = vsel %vm4946_vm8, %v3709_v22, %v2391_v38 }
 0x355   : > { %v4970_v47 = vcombine.low %v2380_v18, %v2384_v40  ;;  %v3711_v50 = vrot.slane %v1872_v23, 9  ;;  %v2399_v29 = vrot.slane %v4921_v17, 5  ;;  %v4982_v51 = vcombine.low %v4841_v59, %v4871_v28  ;;  %v1873_v59 = vld [vmem:[#allocation2 + $0x40] sm:$0xe] }
 0x356   : > { %3974 = vmatmul.mubr.msk.bf16.gmra.mxu1 %vm544_vm3, %v3691_v39  ;;  %v2396_v14 = vsel %vm4946_vm8, %v3710_v45, %v2395_v48  ;;  %v4986_v3 = vcombine.low %v4903_v63, %v4869_v27  ;;  %v4989_v52 = vcombine.low %v4927_v21, %v1956_v54  ;;  %v2388_v56 = vsel %vm4946_vm8, %v3708_v20, %v2387_v44 }
 0x357   : > { %3989 = vmatprep.mubr.msk.bf16.mxu1 %vm544_vm3, %v3713_v10  ;;  %v2400_v17 = vsel %vm4946_vm8, %v3711_v50, %v2399_v29  ;;  %v4995_v55 = vcombine.low %v1970_v60, %v1984_v35  ;;  %v4997_v57 = vcombine.low %v2388_v56, %v2392_v24  ;;  %v3714_v28 = vcombine.low %v2384_v40, %v2388_v56  ;;  %v1622_v60 = vld [vmem:[#allocation2 + $0x4c] sm:$0x1] }
 0x358   : > { %v4999_v58 = vcombine.low %v2396_v14, %v2400_v17  ;;  %v3715_v25 = vcombine.low %v2392_v24, %v2396_v14  ;;  %v3712_v27 = vrot.slane %v1873_v59, 9  ;;  %v2403_v63 = vrot.slane %v4930_v26, 5 }
 0x359   : > { %v1564_v26 = vsel %vm4743_vm10, 0, %v1563_v1  ;;  %v1596_v4 = vsel %vm4750_vm12, 0, %v1595_v0  ;;  %v1623_v5 = vsel %vm4750_vm12, 0, %v1622_v60 }
 0x35a   : > { %v5008_v21 = vsel %vm4946_vm8, %v3712_v27, %v2403_v63  ;;  %1565 = vst [vmem:[#allocation2] sm:$0x1] %v1564_v26  ;;  %1597 = vst [vmem:[#allocation2 + $0x4] sm:$0x1] %v1596_v4 }
 0x35b   : > { %v3716_v54 = vcombine.low %v2400_v17, %v5008_v21  ;;  %1624 = vst [vmem:[#allocation2 + $0x4c] sm:$0x1] %v1623_v5 }
 0x35e   : > { %3990 = vmatmul.mubr.msk.bf16.vlgmr.msra.gmra.mxu1 %vm544_vm3, %v3714_v28 }
 0x35f   : > { %3993 = vmatprep.mubr.msk.bf16.mxu1 %vm544_vm3, %v3715_v25  ;;  %4008 = vmatpush3.bf16.msra.mxu1 %v4646_v31  ;;  %v1590_v31 = vld [vmem:[#allocation2 + $0x48] sm:$0x1] }
 0x360   : > { %4027 = vmatprep.subr.bf16.mxu1 %v4655_v34  ;;  %v1591_v2 = vsel %vm4743_vm10, 0, %v1590_v31 }
 0x361   : > { %1592 = vst [vmem:[#allocation2 + $0x48] sm:$0x1] %v1591_v2  ;;  %v1802_v38 = vld [vmem:[#allocation2] sm:$0xf]  ;;  %v1805_v23 = vld [vmem:[#allocation2 + $0x4] sm:$0x1] }
 0x362   : > { %v1826_v24 = vld [vmem:[#allocation2 + $0x4c] sm:$0x1] }
 0x366   : > { %3994 = vmatmul.mubr.msk.bf16.gmra.mxu1 %vm544_vm3, %v3716_v54 }
 0x3f5   : > { %v1551_v62 = vpop.f32.mrf.mxu0 }
 0x3f6   : > { %v1558_v6 = vadd.f32 %v4789_v61, %v1551_v62 }
 0x3f7   : > { %v3965_v7 = vpop.f32.mrf.mxu0 }
 0x3f8   : > { %v3778_v11 = vpack.c.bf16 %v1558_v6, %v1558_v6 }
 0x3f9   : > { %v1554_v16 = vpop.f32.mrf.mxu0 }
 0x3fa   : > { %v1793_v30 = vshrl.u32 %v3778_v11, 16  ;;  %v1559_v35 = vadd.f32 %v4789_v61, %v1554_v16  ;;  %v1796_v20 = vshll.u32 %v3778_v11, 16  ;;  %v1823_v61 = vld [vmem:[#allocation2 + $0x48] sm:$0xf] }
 0x3fb   : > { %v3966_v18 = vpop.f32.mrf.mxu0 }
 0x3fc   : > { %v1795_v19 = vrot.slane %v1793_v30, 7  ;;  %v3779_v22 = vpack.c.bf16 %v1559_v35, %v1559_v35 }
 0x3fe   : > { %v1798_v39 = vor.u32 %v1796_v20, %v1795_v19  ;;  %v1799_v13 = vrot.slane %v1795_v19, 4  ;;  %v1813_v40 = vshrl.u32 %v3779_v22, 16  ;;  %v1816_v48 = vshll.u32 %v3779_v22, 16 }
 0x400   : > { %v1803_v44 = vsel %vm4795_vm14, %v1798_v39, %v1802_v38  ;;  %v1806_v45 = vsel %vm4743_vm10, %v1799_v13, %v1805_v23  ;;  %v1815_v10 = vrot.slane %v1813_v40, 7 }
 0x401   : > { %1804 = vst [vmem:[#allocation2] sm:$0xf] %v1803_v44  ;;  %1807 = vst [vmem:[#allocation2 + $0x4] sm:$0x1] %v1806_v45 }
 0x402   : > { %v1818_v50 = vor.u32 %v1816_v48, %v1815_v10  ;;  %v1819_v29 = vrot.slane %v1815_v10, 4 }
 0x404   : > { %v1824_v14 = vsel %vm4795_vm14, %v1818_v50, %v1823_v61  ;;  %v1827_v56 = vsel %vm4743_vm10, %v1819_v29, %v1826_v24 }
 0x405   : > { %1825 = vst [vmem:[#allocation2 + $0x48] sm:$0xf] %v1824_v14  ;;  %1828 = vst [vmem:[#allocation2 + $0x4c] sm:$0x1] %v1827_v56 }
 0x408   : > { %v1833_v17 = vld [vmem:[#allocation2] sm:$0xf]  ;;  %v1836_v59 = vld [vmem:[#allocation2 + $0x4] sm:$0x1] }
 0x409   : > { %v1834_v28 = vsel %vm4795_vm14, 0, %v1833_v17  ;;  %v1837_v25 = vsel %vm4743_vm10, 0, %v1836_v59 }
 0x40a   : > { %1835 = vst [vmem:[#allocation2] sm:$0xf] %v1834_v28  ;;  %1838 = vst [vmem:[#allocation2 + $0x4] sm:$0x1] %v1837_v25  ;;  %v5156_v28 = vld [vmem:[%s5545_s9] ss:$0 sm:$0xff] }
 0x40c   : > { %v1839_v27 = vld [vmem:[#allocation2 + $0x48] sm:$0xf]  ;;  %v1842_v63 = vld [vmem:[#allocation2 + $0x4c] sm:$0x1] }
 0x40d   : > { %v5034_v54 = vpop.f32.mrf.mxu1  ;;  %v1840_v1 = vsel %vm4795_vm14, 0, %v1839_v27  ;;  %v1843_v0 = vsel %vm4743_vm10, 0, %v1842_v63 }
 0x40e   : > { %2114 = vrot.lane.b32.xlu0 %v5034_v54, %s4307_s13  ;;  %1841 = vst [vmem:[#allocation2 + $0x48] sm:$0xf] %v1840_v1  ;;  %1844 = vst [vmem:[#allocation2 + $0x4c] sm:$0x1] %v1843_v0  ;;  %v2096_v1 = vadd.f32 %v5034_v54, %v5156_v28 }
 0x40f   : > { %v5042_v26 = vpop.f32.mrf.mxu1 }
 0x411   : > { %v5044_v4 = vpop.f32.mrf.mxu1  ;;  %v1845_v49 = vld [vmem:[#allocation2] sm:$0xf]  ;;  %v1846_v31 = vld [vmem:[#allocation2 + $0x4] sm:$0x1] }
 0x412   : > { %2110 = vrot.lane.b32.xlu0 %v5042_v26, %s4307_s13  ;;  %2116 = vrot.lane.b32.xlu1 %v5044_v4, %s4307_s13  ;;  %v2548_v33 = vshrl.u32 %v1845_v49, 16  ;;  %v2551_v2 = vshll.u32 %v1845_v49, 16  ;;  %v3730_v5 = vcombine.low %v1845_v49, %v4828_v42  ;;  %v2557_v11 = vshll.u32 %v1846_v31, 16  ;;  %v1865_v39 = vld [vmem:[#allocation2] sm:$0xe] }
 0x413   : > { %v5050_v60 = vpop.f32.mrf.mxu1  ;;  %v3738_v44 = vrot.slane %v1865_v39, 9  ;;  %v2795_v45 = vrot.slane %v1846_v31, 5  ;;  %v2094_v49 = vadd.f32 %v5156_v28, %v5042_v26 }
 0x414   : > { %v2550_v6 = vrot.slane %v2548_v33, 4  ;;  %v2553_v7 = vrot.slane %v2551_v2, 5  ;;  %4009 = vmatprep.mubr.msk.bf16.mxu1 %vm544_vm3, %v3730_v5  ;;  %v2559_v19 = vrot.slane %v2557_v11, 5  ;;  %v2097_v2 = vadd.f32 %v5044_v4, %v5156_v28 }
 0x415   : > { %4010 = vmatmul.mubr.msk.bf16.vlgmr.msra.gmra.mxu1 %vm544_vm3, %v4851_v8  ;;  %v1863_v42 = vld [vmem:[#allocation2 + $0x48] sm:$0xf]  ;;  %v2796_v48 = vsel %vm4946_vm8, %v3738_v44, %v2795_v45 }
 0x416   : > { %v5053_v62 = vpop.f32.mrf.mxu1  ;;  %2112 = vrot.lane.b32.xlu1 %v5050_v60, %s4307_s13  ;;  %v2554_v30 = vor.u32 %v2553_v7, %v2550_v6  ;;  %4013 = vmatprep.mubr.msk.bf16.mxu1 %vm544_vm3, %v4982_v51  ;;  %v2891_v20 = vshrl.u32 %v1863_v42, 16  ;;  %v2894_v22 = vshll.u32 %v1863_v42, 16  ;;  %v3739_v24 = vcombine.low %v2796_v48, %v4954_v9  ;;  %v3194_v48 = vld [vmem:[%s4576_s24] sm:$0xff] }
 0x417   : > { %2122 = vrot.lane.b32.xlu0 %v5053_v62, %s4307_s13  ;;  %4028 = vmatpush3.bf16.msra.mxu1 %v4655_v34  ;;  %v3752_v37 = vcombine.low %v4894_v53, %v1863_v42  ;;  %v2095_v7 = vadd.f32 %v5156_v28, %v5050_v60 }
 0x418   : > { %v5060_v16 = vpop.f32.mrf.mxu1  ;;  %v2555_v18 = vrot.slane %v2554_v30, 4  ;;  %v2893_v34 = vrot.slane %v2891_v20, 4  ;;  %v2896_v40 = vrot.slane %v2894_v22, 5 }
 0x41a   : > { %v5067_v35 = vpop.f32.mrf.mxu1  ;;  %v2560_v38 = vsel %vm4875_vm1, %v2555_v18, %v2559_v19  ;;  %v2897_v10 = vor.u32 %v2896_v40, %v2893_v34  ;;  %v2100_v18 = vadd.f32 %v5053_v62, %v5156_v28  ;;  %v2098_v40 = vadd.f32 %v5156_v28, %v5060_v16 }
 0x41b   : > { %2118 = vrot.lane.b32.xlu0 %v5060_v16, %s4307_s13  ;;  %2124 = vrot.lane.b32.xlu1 %v5067_v35, %s4307_s13  ;;  %v3721_v23 = vcombine.low %v2560_v38, %v4891_v46  ;;  %v5090_v46 = vld [vmem:[#allocation2 + $0x4c] sm:$0x1] }
 0x41c   : > { %v5076_v13 = vpop.f32.mrf.mxu1  ;;  %v2900_v61 = vshll.u32 %v5090_v46, 16  ;;  %v2898_v50 = vrot.slane %v2897_v10, 4 }
 0x41d   : > { %3999 = vmatprep.mubr.msk.bf16.mxu0 %vm544_vm3, %v3721_v23  ;;  %4014 = vmatmul.mubr.msk.bf16.gmra.mxu1 %vm544_vm3, %v4986_v3  ;;  %v3196_v23 = vld [vmem:[%s4576_s24 + $0x10] sm:$0xff] }
 0x41e   : > { %4000 = vmatmul.mubr.msk.bf16.vlgmr.msra.gmra.mxu0 %vm544_vm3, %v4918_v12  ;;  %4029 = vmatprep.mubr.msk.bf16.mxu1 %vm544_vm3, %v4918_v12  ;;  %v5125_v9 = vpop.f32.mrf.mxu1 }
 0x41f   : > { %2120 = vrot.lane.b32.xlu1 %v5076_v13, %s4307_s13  ;;  %4003 = vmatprep.mubr.msk.bf16.mxu0 %vm544_vm3, %v4989_v52 }
 0x420   : > { %4018 = vmatpush3.bf16.msra.mxu0 %v4648_v32  ;;  %v2902_v32 = vrot.slane %v2900_v61, 5 }
 0x421   : > { %4037 = vmatprep.subr.bf16.mxu0 %v4664_v36 }
 0x422   : > { %v2903_v12 = vsel %vm4875_vm1, %v2898_v50, %v2902_v32 }
 0x423   : > { %v3747_v29 = vcombine.low %v4962_v15, %v2903_v12  ;;  %v5127_v15 = vpop.f32.mrf.mxu1 }
 0x425   : > { %4030 = vmatmul.mubr.msk.bf16.vlgmr.msra.gmra.mxu1 %vm544_vm3, %v4989_v52 }
 0x426   : > { %4004 = vmatmul.mubr.msk.bf16.gmra.mxu0 %vm544_vm3, %v4995_v55  ;;  %4033 = vmatprep.mubr.msk.bf16.mxu1 %vm544_vm3, %v4995_v55 }
 0x427   : > { %4019 = vmatprep.mubr.msk.bf16.mxu0 %vm544_vm3, %v3739_v24 }
 0x42d   : > { %4034 = vmatmul.mubr.msk.bf16.gmra.mxu1 %vm544_vm3, %v3747_v29  ;;  %v2101_v29 = vadd.f32 %v5067_v35, %v5156_v28 }
 0x42e   : > { %4020 = vmatmul.mubr.msk.bf16.vlgmr.msra.gmra.mxu0 %vm544_vm3, %v4970_v47  ;;  %4049 = vmatprep.mubr.msk.bf16.mxu1 %vm544_vm3, %v4970_v47  ;;  %v5131_v47 = vpop.f32.mrf.mxu1 }
 0x42f   : > { %4023 = vmatprep.mubr.msk.bf16.mxu0 %vm544_vm3, %v4997_v57  ;;  %4038 = vmatpush3.bf16.msra.mxu0 %v4664_v36  ;;  %v5129_v36 = vpop.f32.mrf.mxu0 }
 0x430   : > { %v2308_v33 = vadd.f32 %v5129_v36, %v2096_v1 }
 0x431   : > { %v5133_v52 = vpop.f32.mrf.mxu0 }
 0x432   : > { %v2306_v30 = vadd.f32 %v5133_v52, %v2094_v49  ;;  %v2099_v49 = vadd.f32 %v5156_v28, %v5076_v13 }
 0x436   : > { %4024 = vmatmul.mubr.msk.bf16.gmra.mxu0 %vm544_vm3, %v4999_v58 }
 0x437   : > { %4039 = vmatprep.mubr.msk.bf16.mxu0 %vm544_vm3, %v4851_v8  ;;  %v5135_v8 = vpop.f32.mrf.mxu1 }
 0x439   : > { %v5139_v55 = vpop.f32.mrf.mxu1 }
 0x43b   : > { %v5143_v53 = vpop.f32.mrf.mxu1 }
 0x43d   : > { %v5147_v56 = vpop.f32.mrf.mxu1 }
 0x43e   : > { %4040 = vmatmul.mubr.msk.bf16.vlgmr.msra.gmra.mxu0 %vm544_vm3, %v4982_v51  ;;  %v5137_v51 = vpop.f32.mrf.mxu0 }
 0x43f   : > { %4043 = vmatprep.mubr.msk.bf16.mxu0 %vm544_vm3, %v4986_v3  ;;  %v5151_v59 = vpop.f32.mrf.mxu1  ;;  %v2309_v22 = vadd.f32 %v5137_v51, %v2097_v2 }
 0x440   : > { %v5141_v3 = vpop.f32.mrf.mxu0 }
 0x441   : > { %v2307_v34 = vadd.f32 %v5141_v3, %v2095_v7 }
 0x442   : > { %v5145_v14 = vpop.f32.mrf.mxu0 }
 0x443   : > { %v2312_v24 = vadd.f32 %v5145_v14, %v2100_v18 }
 0x444   : > { %v5149_v17 = vpop.f32.mrf.mxu0 }
 0x445   : > { %v2310_v1 = vadd.f32 %v5149_v17, %v2098_v40 }
 0x446   : > { %4044 = vmatmul.mubr.msk.bf16.gmra.mxu0 %vm544_vm3, %v3752_v37  ;;  %v5158_v27 = vpop.f32.mrf.mxu0 }
 0x447   : > { %v2313_v18 = vadd.f32 %v5158_v27, %v2101_v29 }
 0x448   : > { %v5164_v31 = vpop.f32.mrf.mxu0 }
 0x4d5   : > { %v4011_v25 = vpop.f32.mrf.mxu1 }
 0x4d7   : > { %v2752_v63 = vpop.f32.mrf.mxu1 }
 0x4d9   : > { %v4012_v0 = vpop.f32.mrf.mxu1 }
 0x4db   : > { %v2755_v5 = vpop.f32.mrf.mxu1 }
 0x4dd   : > { %v4015_v38 = vpop.f32.mrf.mxu1 }
 0x4de   : > { %v4001_v6 = vpop.f32.mrf.mxu0 }
 0x4df   : > { %v2651_v11 = vadd.f32 %v4001_v6, %v2308_v33  ;;  %2669 = vrot.lane.b32.xlu0 %v4001_v6, %s4307_s13  ;;  %v2768_v37 = vpop.f32.mrf.mxu1  ;;  %v3195_v6 = vld [vmem:[%s4576_s24 + $0x8] sm:$0xff] }
 0x4e0   : > { %v2618_v42 = vpop.f32.mrf.mxu0 }
 0x4e1   : > { %v2785_v19 = vadd.f32 %v4011_v25, %v2651_v11  ;;  %v2649_v20 = vadd.f32 %v2618_v42, %v2306_v30  ;;  %v3197_v25 = vld [vmem:[%s4576_s24 + $0x18] sm:$0xff] }
 0x4e2   : > { %v4002_v39 = vpop.f32.mrf.mxu0 }
 0x4e3   : > { %v3204_v44 = vadd.f32 %v3196_v23, %v2785_v19  ;;  %v2783_v45 = vadd.f32 %v2752_v63, %v2649_v20  ;;  %v2652_v10 = vadd.f32 %v4002_v39, %v2309_v22  ;;  %2665 = vrot.lane.b32.xlu0 %v2618_v42, %s4307_s13  ;;  %2671 = vrot.lane.b32.xlu1 %v4002_v39, %s4307_s13  ;;  %v4016_v19 = vpop.f32.mrf.mxu1  ;;  %v3200_v20 = vld [vmem:[%s4576_s24 + $0x30] sm:$0xff] }
 0x4e4   : > { %v2621_v61 = vpop.f32.mrf.mxu0  ;;  %v2311_v22 = vadd.f32 %v5164_v31, %v2099_v49 }
 0x4e5   : > { %3212 = vst.msk [vmem:[%s4576_s24 + $0x10] sm:$0xff] %vm544_vm3, %v3204_v44  ;;  %v3202_v50 = vadd.f32 %v3194_v48, %v2783_v45  ;;  %v2786_v32 = vadd.f32 %v4012_v0, %v2652_v10  ;;  %v2650_v12 = vadd.f32 %v2621_v61, %v2307_v34  ;;  %v2771_v48 = vpop.f32.mrf.mxu1 }
 0x4e6   : > { %v4005_v63 = vpop.f32.mrf.mxu0 }
 0x4e7   : > { %3210 = vst.msk [vmem:[%s4576_s24] sm:$0xff] %vm544_vm3, %v3202_v50  ;;  %v3205_v33 = vadd.f32 %v3197_v25, %v2786_v32  ;;  %v2784_v2 = vadd.f32 %v2755_v5, %v2650_v12  ;;  %v2655_v0 = vadd.f32 %v4005_v63, %v2312_v24  ;;  %2677 = vrot.lane.b32.xlu0 %v4005_v63, %s4307_s13  ;;  %v3199_v12 = vld [vmem:[%s4576_s24 + $0x28] sm:$0xff] }
 0x4e8   : > { %2667 = vrot.lane.b32.xlu1 %v2621_v61, %s4307_s13  ;;  %v2634_v7 = vpop.f32.mrf.mxu0  ;;  %v3201_v61 = vld [vmem:[%s4576_s24 + $0x38] sm:$0xff] }
 0x4e9   : > { %3213 = vst.msk [vmem:[%s4576_s24 + $0x18] sm:$0xff] %vm544_vm3, %v3205_v33  ;;  %v3203_v11 = vadd.f32 %v3195_v6, %v2784_v2  ;;  %v2789_v30 = vadd.f32 %v4015_v38, %v2655_v0  ;;  %v2653_v42 = vadd.f32 %v2634_v7, %v2310_v1  ;;  %v3198_v38 = vld [vmem:[%s4576_s24 + $0x20] sm:$0xff]  ;;  %v2115_v0 = vpop.permute.xlu0 %2114  ;;  %v2117_v6 = vpop.permute.xlu1 %2116 }
 0x4ea   : > { %v4006_v5 = vpop.f32.mrf.mxu0 }
 0x4eb   : > { %3211 = vst.msk [vmem:[%s4576_s24 + $0x8] sm:$0xff] %vm544_vm3, %v3203_v11  ;;  %v3208_v23 = vadd.f32 %v3200_v20, %v2789_v30  ;;  %v2787_v39 = vadd.f32 %v2768_v37, %v2653_v42  ;;  %v2656_v34 = vadd.f32 %v4006_v5, %v2313_v18  ;;  %2673 = vrot.lane.b32.xlu0 %v2634_v7, %s4307_s13 }
 0x4ec   : > { %2679 = vrot.lane.b32.xlu1 %v4006_v5, %s4307_s13  ;;  %v2637_v40 = vpop.f32.mrf.mxu0  ;;  %v3220_v24 = vld [vmem:[%s4576_s24 + $0x10] sm:$0xff] }
 0x4ed   : > { %3216 = vst.msk [vmem:[%s4576_s24 + $0x30] sm:$0xff] %vm544_vm3, %v3208_v23  ;;  %v3206_v44 = vadd.f32 %v3198_v38, %v2787_v39  ;;  %v2790_v45 = vadd.f32 %v4016_v19, %v2656_v34  ;;  %v2654_v10 = vadd.f32 %v2637_v40, %v2311_v22  ;;  %v2111_v7 = vpop.permute.xlu0 %2110  ;;  %v2113_v11 = vpop.permute.xlu1 %2112  ;;  %v2136_v34 = vadd.f32 %v5156_v28, %v2115_v0 }
 0x4ee   : > { %v3218_v37 = vld [vmem:[%s4576_s24] sm:$0xff]  ;;  %v4021_v19 = vpop.f32.mrf.mxu0 }
 0x4ef   : > { %3214 = vst.msk [vmem:[%s4576_s24 + $0x20] sm:$0xff] %vm544_vm3, %v3206_v44  ;;  %v3209_v50 = vadd.f32 %v3201_v61, %v2790_v45  ;;  %v2788_v32 = vadd.f32 %v2771_v48, %v2654_v10  ;;  %3238 = vrot.lane.b32.xlu0 %v3220_v24, %s4307_s13  ;;  %v2134_v44 = vadd.f32 %v5156_v28, %v2111_v7 }
 0x4f0   : > { %2675 = vrot.lane.b32.xlu1 %v2637_v40, %s4307_s13  ;;  %v3221_v25 = vld [vmem:[%s4576_s24 + $0x18] sm:$0xff]  ;;  %v2851_v22 = vpop.f32.mrf.mxu0  ;;  %v2137_v45 = vadd.f32 %v5156_v28, %v2117_v6  ;;  %v2499_v10 = vadd.f32 %v5125_v9, %v2136_v34 }
 0x4f1   : > { %3217 = vst.msk [vmem:[%s4576_s24 + $0x38] sm:$0xff] %vm544_vm3, %v3209_v50  ;;  %v3207_v29 = vadd.f32 %v3199_v12, %v2788_v32  ;;  %v2123_v30 = vpop.permute.xlu0 %2122  ;;  %v2125_v42 = vpop.permute.xlu1 %2124  ;;  %v2135_v32 = vadd.f32 %v5156_v28, %v2113_v11 }
 0x4f2   : > { %v3219_v63 = vld [vmem:[%s4576_s24 + $0x8] sm:$0xff]  ;;  %v4022_v38 = vpop.f32.mrf.mxu0 }
 0x4f3   : > { %3215 = vst.msk [vmem:[%s4576_s24 + $0x28] sm:$0xff] %vm544_vm3, %v3207_v29  ;;  %3234 = vrot.lane.b32.xlu0 %v3218_v37, %s4307_s13  ;;  %v2497_v29 = vadd.f32 %v5127_v15, %v2134_v44  ;;  %v2500_v37 = vadd.f32 %v5131_v47, %v2137_v45  ;;  %v2498_v7 = vadd.f32 %v5135_v8, %v2135_v32 }
 0x4f4   : > { %3240 = vrot.lane.b32.xlu1 %v3221_v25, %s4307_s13  ;;  %v3224_v49 = vld [vmem:[%s4576_s24 + $0x30] sm:$0xff]  ;;  %v2854_v48 = vpop.f32.mrf.mxu0 }
 0x4f5   : > { %v2119_v18 = vpop.permute.xlu0 %2118  ;;  %v2121_v20 = vpop.permute.xlu1 %2120 }
 0x4f6   : > { %v3222_v1 = vld [vmem:[%s4576_s24 + $0x20] sm:$0xff]  ;;  %v2138_v12 = vadd.f32 %v5156_v28, %v2119_v18  ;;  %v4025_v25 = vpop.f32.mrf.mxu0  ;;  %v2139_v6 = vadd.f32 %v5156_v28, %v2121_v20 }
 0x4f7   : > { %3242 = vrot.lane.b32.xlu0 %v3222_v1, %s4307_s13 }
 0x4f8   : > { %3236 = vrot.lane.b32.xlu1 %v3219_v63, %s4307_s13  ;;  %v3225_v2 = vld [vmem:[%s4576_s24 + $0x38] sm:$0xff]  ;;  %v2501_v11 = vadd.f32 %v5143_v53, %v2138_v12  ;;  %v2867_v18 = vpop.f32.mrf.mxu0  ;;  %v2502_v20 = vadd.f32 %v5151_v59, %v2139_v6 }
 0x4fa   : > { %v3223_v33 = vld [vmem:[%s4576_s24 + $0x28] sm:$0xff] }
 0x4fb   : > { %3246 = vrot.lane.b32.xlu0 %v3224_v49, %s4307_s13 }
 0x4fc   : > { %3244 = vrot.lane.b32.xlu1 %v3223_v33, %s4307_s13  ;;  %v2140_v33 = vadd.f32 %v5156_v28, %v2123_v30 }
 0x4ff   : > { %3115 = vrot.lane.b32.xlu0 %v4884_v41, %s4315_s25 }
 0x500   : > { %3248 = vrot.lane.b32.xlu1 %v3225_v2, %s4307_s13 }
 0x551   : > { %v2670_v5 = vpop.permute.xlu0 %2669 }
 0x552   : > { %v2691_v61 = vadd.f32 %v2670_v5, %v2499_v10  ;;  %v2141_v10 = vadd.f32 %v5156_v28, %v2125_v42 }
 0x554   : > { %v2884_v49 = vadd.f32 %v4021_v19, %v2691_v61  ;;  %v2503_v19 = vadd.f32 %v5139_v55, %v2140_v33 }
 0x555   : > { %v2666_v23 = vpop.permute.xlu0 %2665  ;;  %v2672_v39 = vpop.permute.xlu1 %2671 }
 0x556   : > { %v2689_v63 = vadd.f32 %v2666_v23, %v2497_v29  ;;  %v2692_v1 = vadd.f32 %v2672_v39, %v2500_v37  ;;  %v4026_v29 = vpop.f32.mrf.mxu0 }
 0x558   : > { %v2882_v45 = vadd.f32 %v2851_v22, %v2689_v63  ;;  %v2885_v23 = vadd.f32 %v4022_v38, %v2692_v1  ;;  %v2504_v63 = vadd.f32 %v5147_v56, %v2141_v10  ;;  %v2870_v42 = vpop.f32.mrf.mxu0 }
 0x559   : > { %v2678_v40 = vpop.permute.xlu0 %2677 }
 0x55a   : > { %v2668_v41 = vpop.permute.xlu1 %2667  ;;  %v2695_v12 = vadd.f32 %v2678_v40, %v2503_v19 }
 0x55b   : > { %v2690_v34 = vadd.f32 %v2668_v41, %v2498_v7 }
 0x55c   : > { %v2888_v40 = vadd.f32 %v4025_v25, %v2695_v12 }
 0x55d   : > { %v2674_v24 = vpop.permute.xlu0 %2673  ;;  %v2883_v41 = vadd.f32 %v2854_v48, %v2690_v34 }
 0x55e   : > { %v2680_v50 = vpop.permute.xlu1 %2679  ;;  %v2693_v44 = vadd.f32 %v2674_v24, %v2501_v11 }
 0x55f   : > { %v2696_v33 = vadd.f32 %v2680_v50, %v2504_v63  ;;  %v1874_v50 = vld [vmem:[#allocation2 + $0x48] sm:$0xe]  ;;  %v4041_v63 = vpop.f32.mrf.mxu0 }
 0x560   : > { %v2886_v22 = vadd.f32 %v2867_v18, %v2693_v44  ;;  %v3757_v25 = vrot.slane %v1874_v50, 9  ;;  %v3111_v44 = vrot.slane %v5090_v46, 5 }
 0x561   : > { %v3239_v0 = vpop.permute.xlu0 %3238  ;;  %v2889_v48 = vadd.f32 %v4026_v29, %v2696_v33  ;;  %v3068_v33 = vpop.f32.mrf.mxu0 }
 0x562   : > { %v2676_v2 = vpop.permute.xlu1 %2675  ;;  %v3260_v5 = vadd.f32 %v3239_v0, %v2884_v49 }
 0x563   : > { %v2694_v37 = vadd.f32 %v2676_v2, %v2502_v20 }
 0x564   : > { %3278 = vrot.lane.b32.xlu1 %v3260_v5, %s4315_s25 }
 0x565   : > { %v3235_v39 = vpop.permute.xlu0 %3234  ;;  %v2887_v2 = vadd.f32 %v2870_v42, %v2694_v37 }
 0x566   : > { %v3241_v30 = vpop.permute.xlu1 %3240  ;;  %v3258_v61 = vadd.f32 %v3235_v39, %v2882_v45  ;;  %v3112_v45 = vsel %vm4946_vm8, %v3757_v25, %v3111_v44 }
 0x567   : > { %v3261_v32 = vadd.f32 %v3241_v30, %v2885_v23 }
 0x568   : > { %3274 = vrot.lane.b32.xlu1 %v3258_v61, %s4315_s25 }
 0x569   : > { %3280 = vrot.lane.b32.xlu0 %v3261_v32, %s4315_s25  ;;  %v3243_v24 = vpop.permute.xlu0 %3242 }
 0x56a   : > { %v3237_v38 = vpop.permute.xlu1 %3236  ;;  %v3262_v49 = vadd.f32 %v3243_v24, %v2886_v22  ;;  %v5333_v22 = vpop.f32.mrf.mxu1 }
 0x56b   : > { %v3259_v1 = vadd.f32 %v3237_v38, %v2883_v41 }
 0x56c   : > { %3282 = vrot.lane.b32.xlu1 %v3262_v49, %s4315_s25  ;;  %v5335_v24 = vpop.f32.mrf.mxu1 }
 0x56d   : > { %3276 = vrot.lane.b32.xlu0 %v3259_v1, %s4315_s25  ;;  %v3247_v0 = vpop.permute.xlu0 %3246 }
 0x56e   : > { %v3245_v6 = vpop.permute.xlu1 %3244  ;;  %v3264_v7 = vadd.f32 %v3247_v0, %v2888_v40  ;;  %v5337_v42 = vpop.f32.mrf.mxu1 }
 0x56f   : > { %v3263_v11 = vadd.f32 %v3245_v6, %v2887_v2  ;;  %v4042_v6 = vpop.f32.mrf.mxu0 }
 0x570   : > { %3286 = vrot.lane.b32.xlu1 %v3264_v7, %s4315_s25  ;;  %v5339_v2 = vpop.f32.mrf.mxu1 }
 0x571   : > { %3284 = vrot.lane.b32.xlu0 %v3263_v11, %s4315_s25  ;;  %v3116_v5 = vpop.permute.xlu0 %3115 }
 0x572   : > { %v3249_v18 = vpop.permute.xlu1 %3248  ;;  %4047 = vmatprep.subr.bf16.mxu1 %v3116_v5 }
 0x573   : > { %v3265_v34 = vadd.f32 %v3249_v18, %v2889_v48  ;;  %4048 = vmatpush3.bf16.msra.mxu1 %v3116_v5  ;;  %v5342_v48 = vpop.f32.mrf.mxu1 }
 0x574   : > { %2142 = vrot.lane.b32.xlu1 %v5042_v26, %s4312_s21 }
 0x575   : > { %3288 = vrot.lane.b32.xlu0 %v3265_v34, %s4315_s25  ;;  %v3071_v34 = vpop.f32.mrf.mxu0 }
 0x576   : > { %4050 = vmatmul.mubr.msk.bf16.vlgmr.msra.gmra.mxu1 %vm544_vm3, %v4997_v57  ;;  %v3758_v57 = vcombine.low %v5008_v21, %v3112_v45 }
 0x577   : > { %4053 = vmatprep.mubr.msk.bf16.mxu1 %vm544_vm3, %v4999_v58 }
 0x578   : > { %2146 = vrot.lane.b32.xlu1 %v5034_v54, %s4312_s21 }
 0x579   : > { %2144 = vrot.lane.b32.xlu0 %v5050_v60, %s4312_s21 }
 0x57c   : > { %2150 = vrot.lane.b32.xlu1 %v5060_v16, %s4312_s21 }
 0x57d   : > { %2148 = vrot.lane.b32.xlu0 %v5044_v4, %s4312_s21 }
 0x57e   : > { %4054 = vmatmul.mubr.msk.bf16.gmra.mxu1 %vm544_vm3, %v3758_v57 }
 0x580   : > { %2154 = vrot.lane.b32.xlu1 %v5053_v62, %s4312_s21 }
 0x581   : > { %2152 = vrot.lane.b32.xlu0 %v5076_v13, %s4312_s21 }
 0x584   : > { %2322 = vrot.lane.b32.xlu1 %v5133_v52, %s4307_s13 }
 0x585   : > { %2156 = vrot.lane.b32.xlu0 %v5067_v35, %s4312_s21 }
 0x588   : > { %2326 = vrot.lane.b32.xlu1 %v5129_v36, %s4307_s13 }
 0x589   : > { %2324 = vrot.lane.b32.xlu0 %v5141_v3, %s4307_s13 }
 0x58c   : > { %2330 = vrot.lane.b32.xlu1 %v5149_v17, %s4307_s13 }
 0x58d   : > { %2328 = vrot.lane.b32.xlu0 %v5137_v51, %s4307_s13 }
 0x590   : > { %2334 = vrot.lane.b32.xlu1 %v5145_v14, %s4307_s13 }
 0x591   : > { %2332 = vrot.lane.b32.xlu0 %v5164_v31, %s4307_s13 }
 0x595   : > { %2336 = vrot.lane.b32.xlu0 %v5158_v27, %s4307_s13 }
 0x5d6   : > { %v3279_v43 = vpop.permute.xlu1 %3278 }
 0x5d7   : > { %3300 = vst.msk [vmem:[%s4576_s24 + $0x10] sm:$0xff] %vm702_vm5, %v3279_v43 }
 0x5da   : > { %v3275_v21 = vpop.permute.xlu1 %3274 }
 0x5db   : > { %v3281_v58 = vpop.permute.xlu0 %3280  ;;  %3298 = vst.msk [vmem:[%s4576_s24] sm:$0xff] %vm702_vm5, %v3275_v21  ;;  %v5349_v21 = vpop.f32.mrf.mxu1 }
 0x5dc   : > { %3301 = vst.msk [vmem:[%s4576_s24 + $0x18] sm:$0xff] %vm702_vm5, %v3281_v58 }
 0x5de   : > { %v3283_v36 = vpop.permute.xlu1 %3282  ;;  %v3308_v52 = vld [vmem:[%s4576_s24 + $0x10] sm:$0xff] }
 0x5df   : > { %v3277_v46 = vpop.permute.xlu0 %3276  ;;  %3302 = vst.msk [vmem:[%s4576_s24 + $0x20] sm:$0xff] %vm702_vm5, %v3283_v36  ;;  %3326 = vrot.lane.b32.xlu1 %v3308_v52, %s4312_s21 }
 0x5e0   : > { %3299 = vst.msk [vmem:[%s4576_s24 + $0x8] sm:$0xff] %vm702_vm5, %v3277_v46  ;;  %v4045_v46 = vpop.f32.mrf.mxu0 }
 0x5e2   : > { %v3287_v3 = vpop.permute.xlu1 %3286  ;;  %v3306_v17 = vld [vmem:[%s4576_s24] sm:$0xff] }
 0x5e3   : > { %v3285_v51 = vpop.permute.xlu0 %3284  ;;  %v3309_v14 = vld [vmem:[%s4576_s24 + $0x18] sm:$0xff]  ;;  %3304 = vst.msk [vmem:[%s4576_s24 + $0x30] sm:$0xff] %vm702_vm5, %v3287_v3  ;;  %3322 = vrot.lane.b32.xlu1 %v3306_v17, %s4312_s21 }
 0x5e4   : > { %3303 = vst.msk [vmem:[%s4576_s24 + $0x28] sm:$0xff] %vm702_vm5, %v3285_v51  ;;  %3328 = vrot.lane.b32.xlu0 %v3309_v14, %s4312_s21 }
 0x5e6   : > { %v3310_v23 = vld [vmem:[%s4576_s24 + $0x20] sm:$0xff]  ;;  %v2143_v10 = vpop.permute.xlu1 %2142 }
 0x5e7   : > { %v3289_v27 = vpop.permute.xlu0 %3288  ;;  %v3307_v31 = vld [vmem:[%s4576_s24 + $0x8] sm:$0xff]  ;;  %3330 = vrot.lane.b32.xlu1 %v3310_v23, %s4312_s21  ;;  %v2166_v5 = vadd.f32 %v5156_v28, %v2143_v10 }
 0x5e8   : > { %3305 = vst.msk [vmem:[%s4576_s24 + $0x38] sm:$0xff] %vm702_vm5, %v3289_v27  ;;  %3324 = vrot.lane.b32.xlu0 %v3307_v31, %s4312_s21 }
 0x5ea   : > { %v3312_v39 = vld [vmem:[%s4576_s24 + $0x30] sm:$0xff]  ;;  %v2147_v61 = vpop.permute.xlu1 %2146 }
 0x5eb   : > { %v3311_v19 = vld [vmem:[%s4576_s24 + $0x28] sm:$0xff]  ;;  %3334 = vrot.lane.b32.xlu1 %v3312_v39, %s4312_s21  ;;  %v2145_v20 = vpop.permute.xlu0 %2144  ;;  %v2168_v0 = vadd.f32 %v5156_v28, %v2147_v61  ;;  %v5355_v39 = vpop.f32.mrf.mxu1 }
 0x5ec   : > { %3332 = vrot.lane.b32.xlu0 %v3311_v19, %s4312_s21  ;;  %v2167_v57 = vadd.f32 %v5156_v28, %v2145_v20 }
 0x5ee   : > { %v2151_v29 = vpop.permute.xlu1 %2150 }
 0x5ef   : > { %v3313_v30 = vld [vmem:[%s4576_s24 + $0x38] sm:$0xff]  ;;  %v2149_v32 = vpop.permute.xlu0 %2148  ;;  %v2170_v43 = vadd.f32 %v5156_v28, %v2151_v29 }
 0x5f0   : > { %3336 = vrot.lane.b32.xlu0 %v3313_v30, %s4312_s21  ;;  %v2169_v18 = vadd.f32 %v5156_v28, %v2149_v32  ;;  %v3084_v30 = vpop.f32.mrf.mxu0 }
 0x5f2   : > { %v2155_v37 = vpop.permute.xlu1 %2154 }
 0x5f3   : > { %v2153_v12 = vpop.permute.xlu0 %2152  ;;  %v2172_v23 = vadd.f32 %v5156_v28, %v2155_v37 }
 0x5f4   : > { %v2171_v31 = vadd.f32 %v5156_v28, %v2153_v12 }
 0x5f6   : > { %v2323_v38 = vpop.permute.xlu1 %2322 }
 0x5f7   : > { %v2157_v41 = vpop.permute.xlu0 %2156  ;;  %v2346_v25 = vadd.f32 %v2323_v38, %v2166_v5 }
 0x5f8   : > { %v2173_v12 = vadd.f32 %v5156_v28, %v2157_v41 }
 0x5f9   : > { %v2977_v51 = vadd.f32 %v5335_v24, %v2346_v25 }
 0x5fa   : > { %v2327_v49 = vpop.permute.xlu1 %2326 }
 0x5fb   : > { %v2325_v1 = vpop.permute.xlu0 %2324  ;;  %v2348_v11 = vadd.f32 %v2327_v49, %v2168_v0  ;;  %v3099_v38 = vadd.f32 %v3068_v33, %v2977_v51  ;;  %v4046_v0 = vpop.f32.mrf.mxu0 }
 0x5fc   : > { %v2347_v36 = vadd.f32 %v2325_v1, %v2167_v57 }
 0x5fd   : > { %v2979_v44 = vadd.f32 %v5333_v22, %v2348_v11 }
 0x5fe   : > { %v2331_v7 = vpop.permute.xlu1 %2330  ;;  %v2978_v10 = vadd.f32 %v5339_v2, %v2347_v36 }
 0x5ff   : > { %v2329_v40 = vpop.permute.xlu0 %2328  ;;  %v2350_v52 = vadd.f32 %v2331_v7, %v2170_v43  ;;  %v3101_v14 = vadd.f32 %v4041_v63, %v2979_v44 }
 0x600   : > { %v2349_v45 = vadd.f32 %v2329_v40, %v2169_v18  ;;  %v2965_v40 = vpop.f32.mrf.mxu1  ;;  %v3100_v7 = vadd.f32 %v3071_v34, %v2978_v10 }
 0x601   : > { %v2981_v20 = vadd.f32 %v5349_v21, %v2350_v52 }
 0x602   : > { %v2335_v58 = vpop.permute.xlu1 %2334  ;;  %v2980_v3 = vadd.f32 %v5337_v42, %v2349_v45  ;;  %v3087_v45 = vpop.f32.mrf.mxu0 }
 0x603   : > { %v2333_v50 = vpop.permute.xlu0 %2332  ;;  %v2352_v32 = vadd.f32 %v2335_v58, %v2172_v23  ;;  %v3103_v11 = vadd.f32 %v3084_v30, %v2981_v20 }
 0x604   : > { %v2351_v61 = vadd.f32 %v2333_v50, %v2171_v31  ;;  %v3102_v29 = vadd.f32 %v4042_v6, %v2980_v3 }
 0x605   : > { %v2983_v18 = vadd.f32 %v5342_v48, %v2352_v32 }
 0x606   : > { %v2982_v5 = vadd.f32 %v2965_v40, %v2351_v61 }
 0x607   : > { %v2337_v17 = vpop.permute.xlu0 %2336  ;;  %v3105_v57 = vadd.f32 %v4045_v46, %v2983_v18 }
 0x608   : > { %v2353_v25 = vadd.f32 %v2337_v17, %v2173_v12  ;;  %v3104_v34 = vadd.f32 %v3087_v45, %v2982_v5 }
 0x60a   : > { %v2984_v41 = vadd.f32 %v5355_v39, %v2353_v25 }
 0x60c   : > { %v3106_v51 = vadd.f32 %v4046_v0, %v2984_v41 }
 0x636   : > { %v4051_v32 = vpop.f32.mrf.mxu1 }
 0x651   : > { %v3327_v27 = vpop.permute.xlu1 %3326 }
 0x652   : > { %v3348_v19 = vadd.f32 %v3327_v27, %v3101_v14 }
 0x654   : > { %3366 = vrot.lane.b32.xlu1 %v3348_v19, %s4311_s22 }
 0x655   : > { %v3323_v1 = vpop.permute.xlu1 %3322 }
 0x656   : > { %v3329_v63 = vpop.permute.xlu0 %3328  ;;  %v3346_v37 = vadd.f32 %v3323_v1, %v3099_v38 }
 0x657   : > { %v3349_v49 = vadd.f32 %v3329_v63, %v3102_v29  ;;  %v3155_v63 = vpop.f32.mrf.mxu1 }
 0x658   : > { %3362 = vrot.lane.b32.xlu1 %v3346_v37, %s4311_s22 }
 0x659   : > { %3368 = vrot.lane.b32.xlu0 %v3349_v49, %s4311_s22  ;;  %v3331_v33 = vpop.permute.xlu1 %3330  ;;  %v4052_v12 = vpop.f32.mrf.mxu1 }
 0x65a   : > { %v3325_v6 = vpop.permute.xlu0 %3324  ;;  %v3350_v44 = vadd.f32 %v3331_v33, %v3103_v11 }
 0x65b   : > { %v3347_v50 = vadd.f32 %v3325_v6, %v3100_v7  ;;  %v3158_v0 = vpop.f32.mrf.mxu1 }
 0x65c   : > { %3370 = vrot.lane.b32.xlu1 %v3350_v44, %s4311_s22 }
 0x65d   : > { %3364 = vrot.lane.b32.xlu0 %v3347_v50, %s4311_s22  ;;  %v3335_v58 = vpop.permute.xlu1 %3334  ;;  %v4055_v50 = vpop.f32.mrf.mxu1 }
 0x65e   : > { %v3333_v43 = vpop.permute.xlu0 %3332  ;;  %v3352_v52 = vadd.f32 %v3335_v58, %v3105_v57 }
 0x65f   : > { %v3351_v36 = vadd.f32 %v3333_v43, %v3104_v34 }
 0x660   : > { %3374 = vrot.lane.b32.xlu1 %v3352_v52, %s4311_s22 }
 0x661   : > { %3372 = vrot.lane.b32.xlu0 %v3351_v36, %s4311_s22 }
 0x662   : > { %v3337_v3 = vpop.permute.xlu0 %3336 }
 0x663   : > { %v3353_v14 = vadd.f32 %v3337_v3, %v3106_v51  ;;  %v3171_v3 = vpop.f32.mrf.mxu1 }
 0x664   : > { %2174 = vrot.lane.b32.xlu1 %v5042_v26, %s4313_s29 }
 0x665   : > { %3376 = vrot.lane.b32.xlu0 %v3353_v14, %s4311_s22  ;;  %s3498_s22 = sshll.u32 %s4576_s24, 4  ;;  %s5486_s22 = int_to_ptr.vmem [resolvable:$true] %s3498_s22 }
 0x666   : > { %p4229_p3 = scmp.lt.s32.totalorder %s5486_s22, %s4227_s20 }
 0x668   : > { %2178 = vrot.lane.b32.xlu1 %v5034_v54, %s4313_s29 }
 0x669   : > { %2176 = vrot.lane.b32.xlu0 %v5050_v60, %s4313_s29 }
 0x66c   : > { %2182 = vrot.lane.b32.xlu1 %v5060_v16, %s4313_s29 }
 0x66d   : > { %2180 = vrot.lane.b32.xlu0 %v5044_v4, %s4313_s29 }
 0x670   : > { %2186 = vrot.lane.b32.xlu1 %v5053_v62, %s4313_s29 }
 0x671   : > { %2184 = vrot.lane.b32.xlu0 %v5076_v13, %s4313_s29 }
 0x674   : > { %2513 = vrot.lane.b32.xlu1 %v5127_v15, %s4307_s13 }
 0x675   : > { %2188 = vrot.lane.b32.xlu0 %v5067_v35, %s4313_s29 }
 0x678   : > { %2517 = vrot.lane.b32.xlu1 %v5125_v9, %s4307_s13 }
 0x679   : > { %2515 = vrot.lane.b32.xlu0 %v5135_v8, %s4307_s13 }
 0x67c   : > { %2521 = vrot.lane.b32.xlu1 %v5143_v53, %s4307_s13 }
 0x67d   : > { %2519 = vrot.lane.b32.xlu0 %v5131_v47, %s4307_s13 }
 0x680   : > { %2525 = vrot.lane.b32.xlu1 %v5139_v55, %s4307_s13 }
 0x681   : > { %2523 = vrot.lane.b32.xlu0 %v5151_v59, %s4307_s13 }
 0x684   : > { %2993 = vrot.lane.b32.xlu1 %v5335_v24, %s4307_s13 }
 0x685   : > { %2527 = vrot.lane.b32.xlu0 %v5147_v56, %s4307_s13 }
 0x688   : > { %2997 = vrot.lane.b32.xlu1 %v5333_v22, %s4307_s13 }
 0x689   : > { %2995 = vrot.lane.b32.xlu0 %v5339_v2, %s4307_s13 }
 0x68c   : > { %3001 = vrot.lane.b32.xlu1 %v5349_v21, %s4307_s13 }
 0x68d   : > { %2999 = vrot.lane.b32.xlu0 %v5337_v42, %s4307_s13 }
 0x690   : > { %3005 = vrot.lane.b32.xlu1 %v5342_v48, %s4307_s13 }
 0x691   : > { %3003 = vrot.lane.b32.xlu0 %v2965_v40, %s4307_s13 }
 0x695   : > { %3007 = vrot.lane.b32.xlu0 %v5355_v39, %s4307_s13  ;;  %s3780_s13 = sshll.u32 %s4294_s16, 10  ;;  %s3483_s16 = scalar_lea.sflag [#allocation5], %s4460_s17 }
 0x696   : > { %s5484_s25 = scalar_lea.hbm %s5546_s10, %s3780_s13 }
 0x6c6   : > { %v3367_v54 = vpop.permute.xlu1 %3366 }
 0x6c7   : > { %3388 = vst.msk [vmem:[%s4576_s24 + $0x10] sm:$0xff] %vm860_vm6, %v3367_v54 }
 0x6ca   : > { %v3363_v4 = vpop.permute.xlu1 %3362 }
 0x6cb   : > { %v3369_v26 = vpop.permute.xlu0 %3368  ;;  %3386 = vst.msk [vmem:[%s4576_s24] sm:$0xff] %vm860_vm6, %v3363_v4 }
 0x6cc   : > { %3389 = vst.msk [vmem:[%s4576_s24 + $0x18] sm:$0xff] %vm860_vm6, %v3369_v26 }
 0x6ce   : > { %v3371_v62 = vpop.permute.xlu1 %3370  ;;  %v3396_v16 = vld [vmem:[%s4576_s24 + $0x10] sm:$0xff] }
 0x6cf   : > { %v3365_v60 = vpop.permute.xlu0 %3364  ;;  %3390 = vst.msk [vmem:[%s4576_s24 + $0x20] sm:$0xff] %vm860_vm6, %v3371_v62  ;;  %3414 = vrot.lane.b32.xlu1 %v3396_v16, %s4313_s29 }
 0x6d0   : > { %3387 = vst.msk [vmem:[%s4576_s24 + $0x8] sm:$0xff] %vm860_vm6, %v3365_v60 }
 0x6d2   : > { %v3375_v13 = vpop.permute.xlu1 %3374  ;;  %v3394_v15 = vld [vmem:[%s4576_s24] sm:$0xff] }
 0x6d3   : > { %v3373_v35 = vpop.permute.xlu0 %3372  ;;  %v3397_v9 = vld [vmem:[%s4576_s24 + $0x18] sm:$0xff]  ;;  %3392 = vst.msk [vmem:[%s4576_s24 + $0x30] sm:$0xff] %vm860_vm6, %v3375_v13  ;;  %3410 = vrot.lane.b32.xlu1 %v3394_v15, %s4313_s29 }
 0x6d4   : > { %3391 = vst.msk [vmem:[%s4576_s24 + $0x28] sm:$0xff] %vm860_vm6, %v3373_v35  ;;  %3416 = vrot.lane.b32.xlu0 %v3397_v9, %s4313_s29 }
 0x6d6   : > { %v3398_v55 = vld [vmem:[%s4576_s24 + $0x20] sm:$0xff]  ;;  %v2175_v22 = vpop.permute.xlu1 %2174 }
 0x6d7   : > { %v3377_v47 = vpop.permute.xlu0 %3376  ;;  %v3395_v8 = vld [vmem:[%s4576_s24 + $0x8] sm:$0xff]  ;;  %3418 = vrot.lane.b32.xlu1 %v3398_v55, %s4313_s29  ;;  %v2198_v11 = vadd.f32 %v5156_v28, %v2175_v22 }
 0x6d8   : > { %3393 = vst.msk [vmem:[%s4576_s24 + $0x38] sm:$0xff] %vm860_vm6, %v3377_v47  ;;  %3412 = vrot.lane.b32.xlu0 %v3395_v8, %s4313_s29  ;;  %v4056_v8 = vpop.f32.mrf.mxu1 }
 0x6da   : > { %v3400_v56 = vld [vmem:[%s4576_s24 + $0x30] sm:$0xff]  ;;  %v2179_v42 = vpop.permute.xlu1 %2178 }
 0x6db   : > { %v3399_v53 = vld [vmem:[%s4576_s24 + $0x28] sm:$0xff]  ;;  %3422 = vrot.lane.b32.xlu1 %v3400_v56, %s4313_s29  ;;  %v2177_v24 = vpop.permute.xlu0 %2176  ;;  %v2200_v37 = vadd.f32 %v5156_v28, %v2179_v42 }
 0x6dc   : > { %3420 = vrot.lane.b32.xlu0 %v3399_v53, %s4313_s29  ;;  %v2199_v44 = vadd.f32 %v5156_v28, %v2177_v24 }
 0x6de   : > { %v2183_v48 = vpop.permute.xlu1 %2182 }
 0x6df   : > { %v3401_v59 = vld [vmem:[%s4576_s24 + $0x38] sm:$0xff]  ;;  %v2181_v2 = vpop.permute.xlu0 %2180  ;;  %v2202_v45 = vadd.f32 %v5156_v28, %v2183_v48 }
 0x6e0   : > { %3424 = vrot.lane.b32.xlu0 %v3401_v59, %s4313_s29  ;;  %v2201_v5 = vadd.f32 %v5156_v28, %v2181_v2 }
 0x6e2   : > { %v2187_v46 = vpop.permute.xlu1 %2186 }
 0x6e3   : > { %v2185_v21 = vpop.permute.xlu0 %2184  ;;  %v2204_v26 = vadd.f32 %v5156_v28, %v2187_v46  ;;  %v3174_v46 = vpop.f32.mrf.mxu1 }
 0x6e4   : > { %v2203_v14 = vadd.f32 %v5156_v28, %v2185_v21 }
 0x6e6   : > { %v2514_v27 = vpop.permute.xlu1 %2513 }
 0x6e7   : > { %v2189_v17 = vpop.permute.xlu0 %2188  ;;  %v2537_v6 = vadd.f32 %v2514_v27, %v2198_v11 }
 0x6e8   : > { %v2205_v55 = vadd.f32 %v5156_v28, %v2189_v17 }
 0x6ea   : > { %v2518_v23 = vpop.permute.xlu1 %2517 }
 0x6eb   : > { %v2516_v31 = vpop.permute.xlu0 %2515  ;;  %v2539_v40 = vadd.f32 %v2518_v23, %v2200_v37 }
 0x6ec   : > { %v2538_v43 = vadd.f32 %v2516_v31, %v2199_v44 }
 0x6ee   : > { %v2522_v39 = vpop.permute.xlu1 %2521 }
 0x6ef   : > { %v2520_v19 = vpop.permute.xlu0 %2519  ;;  %v2541_v52 = vadd.f32 %v2522_v39, %v2202_v45 }
 0x6f0   : > { %v2540_v33 = vadd.f32 %v2520_v19, %v2201_v5 }
 0x6f2   : > { %v2526_v10 = vpop.permute.xlu1 %2525 }
 0x6f3   : > { %v2524_v30 = vpop.permute.xlu0 %2523  ;;  %v2543_v9 = vadd.f32 %v2526_v10, %v2204_v26 }
 0x6f4   : > { %v2542_v13 = vadd.f32 %v2524_v30, %v2203_v14 }
 0x6f6   : > { %v2994_v61 = vpop.permute.xlu1 %2993 }
 0x6f7   : > { %v2528_v20 = vpop.permute.xlu0 %2527  ;;  %v3017_v41 = vadd.f32 %v2994_v61, %v2537_v6 }
 0x6f8   : > { %v2544_v2 = vadd.f32 %v2528_v20, %v2205_v55 }
 0x6f9   : > { %v3186_v62 = vadd.f32 %v3155_v63, %v3017_v41 }
 0x6fa   : > { %v2998_v38 = vpop.permute.xlu1 %2997 }
 0x6fb   : > { %v2996_v29 = vpop.permute.xlu0 %2995  ;;  %v3019_v18 = vadd.f32 %v2998_v38, %v2539_v40 }
 0x6fc   : > { %v3018_v54 = vadd.f32 %v2996_v29, %v2538_v43 }
 0x6fd   : > { %v3188_v57 = vadd.f32 %v4051_v32, %v3019_v18 }
 0x6fe   : > { %v3002_v49 = vpop.permute.xlu1 %3001  ;;  %v3187_v53 = vadd.f32 %v3158_v0, %v3018_v54 }
 0x6ff   : > { %v3000_v1 = vpop.permute.xlu0 %2999  ;;  %v3021_v4 = vadd.f32 %v3002_v49, %v2541_v52 }
 0x700   : > { %v3020_v34 = vadd.f32 %v3000_v1, %v2540_v33 }
 0x701   : > { %v3190_v22 = vadd.f32 %v3171_v3, %v3021_v4 }
 0x702   : > { %v3006_v25 = vpop.permute.xlu1 %3005  ;;  %v3189_v60 = vadd.f32 %v4052_v12, %v3020_v34 }
 0x703   : > { %v3004_v7 = vpop.permute.xlu0 %3003  ;;  %v3023_v59 = vadd.f32 %v3006_v25, %v2543_v9 }
 0x704   : > { %v3022_v56 = vadd.f32 %v3004_v7, %v2542_v13 }
 0x705   : > { %v3192_v17 = vadd.f32 %v4055_v50, %v3023_v59 }
 0x706   : > { %v3191_v28 = vadd.f32 %v3174_v46, %v3022_v56 }
 0x707   : > { %v3008_v58 = vpop.permute.xlu0 %3007 }
 0x708   : > { %v3024_v27 = vadd.f32 %v3008_v58, %v2544_v2 }
 0x70a   : > { %v3193_v30 = vadd.f32 %v4056_v8, %v3024_v27 }
 0x741   : > { %v3415_v36 = vpop.permute.xlu1 %3414 }
 0x742   : > { %v3436_v51 = vadd.f32 %v3415_v36, %v3188_v57 }
 0x744   : > { %3454 = vrot.lane.b32.xlu1 %v3436_v51, %s4317_s19 }
 0x745   : > { %v3411_v35 = vpop.permute.xlu1 %3410 }
 0x746   : > { %v3417_v16 = vpop.permute.xlu0 %3416  ;;  %v3434_v47 = vadd.f32 %v3411_v35, %v3186_v62 }
 0x747   : > { %v3437_v15 = vadd.f32 %v3417_v16, %v3189_v60 }
 0x748   : > { %3450 = vrot.lane.b32.xlu1 %v3434_v47, %s4317_s19 }
 0x749   : > { %3456 = vrot.lane.b32.xlu0 %v3437_v15, %s4317_s19  ;;  %v3419_v42 = vpop.permute.xlu1 %3418 }
 0x74a   : > { %v3413_v24 = vpop.permute.xlu0 %3412  ;;  %v3438_v21 = vadd.f32 %v3419_v42, %v3190_v22 }
 0x74b   : > { %v3435_v48 = vadd.f32 %v3413_v24, %v3187_v53 }
 0x74c   : > { %3458 = vrot.lane.b32.xlu1 %v3438_v21, %s4317_s19 }
 0x74d   : > { %3452 = vrot.lane.b32.xlu0 %v3435_v48, %s4317_s19  ;;  %v3423_v23 = vpop.permute.xlu1 %3422 }
 0x74e   : > { %v3421_v31 = vpop.permute.xlu0 %3420  ;;  %v3440_v39 = vadd.f32 %v3423_v23, %v3192_v17 }
 0x74f   : > { %v3439_v19 = vadd.f32 %v3421_v31, %v3191_v28 }
 0x750   : > { %3462 = vrot.lane.b32.xlu1 %v3440_v39, %s4317_s19 }
 0x751   : > { %3460 = vrot.lane.b32.xlu0 %v3439_v19, %s4317_s19 }
 0x752   : > { %v3425_v10 = vpop.permute.xlu0 %3424 }
 0x753   : > { %v3441_v20 = vadd.f32 %v3425_v10, %v3193_v30 }
 0x755   : > { %3464 = vrot.lane.b32.xlu0 %v3441_v20, %s4317_s19  ;;  %s4222_s19 = scalar_lea.vmem %s5486_s22, 1024 }
 0x756   : > { %p4223_p12 = scmp.ne.s32.totalorder %s5486_s22, %s4222_s19  ;;  %p4230_p5 = scmp.lt.s32.totalorder %s4228_s12, %s4222_s19 }
 0x758   : > { %p4224_p0 = pnand %p4223_p12, %p4427_p9  ;;  %p4231_p6 = por %p4230_p5, %p4229_p3 }
 0x75a   : > { %p4225_p1 = pneg %p4224_p0 }
 0x75c   : > { %p4232_p7 = pnand %p4231_p6, %p4225_p1 }
 0x7b6   : > { %v3455_v61 = vpop.permute.xlu1 %3454 }
 0x7b7   : > { %3476 = vst.msk [vmem:[%s4576_s24 + $0x10] sm:$0xff] %vm1018_vm7, %v3455_v61 }
 0x7ba   : > { %v3451_v29 = vpop.permute.xlu1 %3450 }
 0x7bb   : > { %v3457_v32 = vpop.permute.xlu0 %3456  ;;  %3474 = vst.msk [vmem:[%s4576_s24] sm:$0xff] %vm1018_vm7, %v3451_v29 }
 0x7bc   : > { %3477 = vst.msk [vmem:[%s4576_s24 + $0x18] sm:$0xff] %vm1018_vm7, %v3457_v32 }
 0x7be   : > { %v3459_v63 = vpop.permute.xlu1 %3458 }
 0x7bf   : > { %v3453_v38 = vpop.permute.xlu0 %3452  ;;  %3478 = vst.msk [vmem:[%s4576_s24 + $0x20] sm:$0xff] %vm1018_vm7, %v3459_v63 }
 0x7c0   : > { %3475 = vst.msk [vmem:[%s4576_s24 + $0x8] sm:$0xff] %vm1018_vm7, %v3453_v38 }
 0x7c2   : > { %v3463_v12 = vpop.permute.xlu1 %3462 }
 0x7c3   : > { %v3461_v1 = vpop.permute.xlu0 %3460  ;;  %3480 = vst.msk [vmem:[%s4576_s24 + $0x30] sm:$0xff] %vm1018_vm7, %v3463_v12 }
 0x7c4   : > { %3479 = vst.msk [vmem:[%s4576_s24 + $0x28] sm:$0xff] %vm1018_vm7, %v3461_v1 }
 0x7c7   : > { %v3465_v49 = vpop.permute.xlu0 %3464 }
 0x7c8   : > { %3481 = vst.msk [vmem:[%s4576_s24 + $0x38] sm:$0xff] %vm1018_vm7, %v3465_v49 }
 0x7c9   : > { %4235 = shalt.err (!%p4232_p7)
}
 0x7ca   : > { %s4236_s24 = scalar_lea.hbm %s5484_s25, 1024  ;;  %s4240_s27 = scalar_lea.hbm %s5546_s10, 2048 }
 0x7cb   : > { %p4237_p10 = scmp.ne.s32.totalorder %s5484_s25, %s4236_s24  ;;  %p4241_p2 = scmp.lt.s32.totalorder %s5484_s25, %s5546_s10 }
 0x7cc   : > { %p4242_p8 = scmp.lt.s32.totalorder %s4240_s27, %s4236_s24 }
 0x7cd   : > { %p4238_p4 = pnand %p4237_p10, %p4427_p9 }
 0x7ce   : > { %p4243_p12 = por %p4242_p8, %p4241_p2 }
 0x7cf   : > { %p4239_p13 = pneg %p4238_p4 }
 0x7d1   : > { %p4244_p0 = pnand %p4243_p12, %p4239_p13 }
 0x7d3   : > { %4247 = shalt.err (!%p4244_p0)
}
 0x7d4   : > { %s4319_s29 = smov 128   ;;  %s4320_s19 = smov 8  }
 0x7d5   : > { %4063 = dma.vmem_to_hbm [thread:$0]  (%p4427_p9), %s5486_s22, 1024, %s5484_s25, %s3483_s16, %s4319_s29, %s4319_s29, %s4320_s19  }
 0x7d6 PF: > { %s5569_s11 = sld [smem:[#allocation9_spill]]  ;;  %p5570_p1 = scmp.ge.s32.totalorder %s4302_s18, 2 }
 0x7d8   : > { %p4070_p3 = pnand %p5570_p1, %p4434_p11 }
 0x7da   : > { %p4071_p5 = pneg %p4070_p3 }
 0x7dc   : > { %s3513_s20 = sand.u32 1, %s5569_s11  }
 0x7dd   : > { %s3514_s12 = scalar_lea.sflag [#allocation5], %s3513_s20 }
 0x7de   : > { %4277 = dma.done.wait (%p4071_p5), %s3514_s12, 1024  }
 0x7df   : > { %4279 = vsyncadd (%p4071_p5), %s3514_s12, 4294966272  ;;  %s26_s18 = sadd.s32 1, %s4302_s18   ;;  %s5571_s26 = sld [smem:[#allocation12_spill]] }
 0x7e0   : > { %p23_p6 = scmp.ge.s32.totalorder %s26_s18, 4   ;;  %s5572_s16 = sld [smem:[#allocation10_spill]] }
 0x7e1   : > { %s5573_s17 = sld [smem:[#allocation11_spill]]  ;;  %s5574_s13 = smov %s4286_s14 }
 0x7e2   : > { %s5575_s14 = smov %s4290_s15  ;;  %25 = sbr.rel (!%p23_p6) target bundleno = 6 (0x6), region = 114 }
 0x7e5   : > { %s5576_s15 = smov %s5571_s26 }
 0x7e7   :  { %3519 = vsyncpa [#allocation4], 1 }
 0x7e8   :  { %3521 = vsyncpa [#allocation4 + $0x1], 1 }
 0x7e9   :  { %3522 = vsyncpa [#allocation5], 1 }
 0x7ea   :  { %3524 = vsyncpa [#allocation5 + $0x1], 1 }

</bundles_post_ra>
